<compile_context>
chip_gen: v5e
topology: v5e:2x2
jax: 0.10.0
libtpu: 0.0.40
codegen_flags: <defaults>
</compile_context>

<pallas_src>
import functools
import math

import jax
import jax.numpy as jnp
from jax.experimental import pallas as pl
from jax.experimental.pallas import tpu as pltpu

# ---- module hyper-parameters (from gpt_model.py) -----------------------------
N_EMBD = 384          # n_embd
BLOCK_SIZE = 256      # block_size (max sequence length for the causal mask)
NUM_HEADS = 6
HEAD_SIZE = N_EMBD // NUM_HEADS   # 64 ; num_heads * head_size == n_embd

_NEG_INF = -1e30      # large finite negative (safe for bf16/f32 max-subtract)


# ---- Pallas kernel -----------------------------------------------------------
def _mha_kernel(x_ref, wq_ref, wk_ref, wv_ref, wp_ref, bp_ref, o_ref,
                k_scr, v_scr, *, num_heads, head_size, q_tile):
    """One (batch, query-tile) per grid step.

    x_ref  : (T, C)   f32   full sequence for this batch element
    wq/wk/wv_ref : (C, C)   bf16  projection weights (y = x @ W layout)
    wp_ref : (C, C)   bf16  output-projection weight
    bp_ref : (1, C)   f32   output-projection bias
    o_ref  : (TQ, C)        output rows for this query tile
    k_scr/v_scr : (H, T, hs) bf16 VMEM scratch, persistent across qi steps
    """
    T, C = x_ref.shape
    H, hs = num_heads, head_size
    TQ = q_tile
    qi = pl.program_id(1)
    scale = 1.0 / math.sqrt(float(C))        # PyTorch: wei = q @ k^T / C ** 0.5

    # --- K/V projections: exactly once per batch element (qi is innermost) ----
    @pl.when(qi == 0)
    def _():
        xkv = x_ref[...].astype(jnp.bfloat16)                       # (T, C)
        k = jnp.dot(xkv, wk_ref[...], preferred_element_type=jnp.float32)
        v = jnp.dot(xkv, wv_ref[...], preferred_element_type=jnp.float32)
        # head-major (H, T, hs): reshape splits only the minor dim; the
        # transpose permutes major dims (lane axis untouched).
        k_scr[...] = jnp.transpose(k.astype(jnp.bfloat16).reshape(T, H, hs),
                                   (1, 0, 2))
        v_scr[...] = jnp.transpose(v.astype(jnp.bfloat16).reshape(T, H, hs),
                                   (1, 0, 2))

    # --- Q projection for this query tile (rows sliced from the same block) ---
    q0 = pl.multiple_of(qi * TQ, TQ)
    xq = x_ref[pl.ds(q0, TQ), :].astype(jnp.bfloat16)               # (TQ, C)
    q = jnp.dot(xq, wq_ref[...], preferred_element_type=jnp.float32) * scale
    qh = jnp.transpose(q.astype(jnp.bfloat16).reshape(TQ, H, hs), (1, 0, 2))

    # --- scores for all heads in one batched matmul (no explicit k.T) ---------
    s = jnp.einsum('hqd,hkd->hqk', qh, k_scr[...],
                   preferred_element_type=jnp.float32)              # (H, TQ, T)

    # causal mask as a 2-D additive bias, broadcast over heads
    row = q0 + jax.lax.broadcasted_iota(jnp.int32, (TQ, T), 0)
    col = jax.lax.broadcasted_iota(jnp.int32, (TQ, T), 1)
    mask_bias = jnp.where(col > row, _NEG_INF, 0.0).astype(jnp.float32)
    s = s + mask_bias[None, :, :]

    # --- numerically-stable softmax over keys (f32, EUP exp + approx recip) ---
    s = s - jnp.max(s, axis=-1, keepdims=True)
    p = jnp.exp(s)
    p = p * pl.reciprocal(jnp.sum(p, axis=-1, keepdims=True), approx=True)

    # --- context: (H, TQ, T) x (H, T, hs) -> (H, TQ, hs) ----------------------
    ctx = jnp.einsum('hqk,hkd->hqd', p.astype(jnp.bfloat16), v_scr[...],
                     preferred_element_type=jnp.float32)

    # --- head concat (cheap bf16 relayout) + single K=384 output projection ---
    ctx2d = jnp.transpose(ctx.astype(jnp.bfloat16), (1, 0, 2)).reshape(TQ, C)
    out = jnp.dot(ctx2d, wp_ref[...], preferred_element_type=jnp.float32)
    out = out + bp_ref[...]
    o_ref[...] = out.astype(o_ref.dtype)


def multi_head_attention(x, wq, wk, wv, wp, bp,
                         *, num_heads=NUM_HEADS, head_size=HEAD_SIZE):
    """x: (B,T,C) f32; wq/wk/wv/wp: (C,C) (bf16 preferred, cached); bp: (C,) or (1,C)."""
    B, T, C = x.shape
    assert C == num_heads * head_size
    assert T <= BLOCK_SIZE and T % 8 == 0

    # Full-T query tiles: no redundant work, best MXU fill (M=T, K=384).
    # Only split into 128-row tiles when B == 1 and T is long, to keep >= 2
    # pipelined grid steps; K/V are computed once either way (VMEM scratch).
    if B >= 2 or T <= 128 or T % 128 != 0:
        q_tile = T
    else:
        q_tile = 128
    nq = T // q_tile

    # bf16 operands for the MXU; asarray is a no-op if the caller cached bf16.
    wqb = jnp.asarray(wq, jnp.bfloat16)
    wkb = jnp.asarray(wk, jnp.bfloat16)
    wvb = jnp.asarray(wv, jnp.bfloat16)
    wpb = jnp.asarray(wp, jnp.bfloat16)
    bpf = jnp.asarray(bp, jnp.float32).reshape(1, C)

    kernel = functools.partial(_mha_kernel, num_heads=num_heads,
                               head_size=head_size, q_tile=q_tile)

    # NOTE: weight BlockSpecs have constant index_maps, so Pallas fetches them
    # once; single-buffering them (pl.Buffered(1)) would save ~1 MB VMEM but
    # VMEM is nowhere near the limit here, so it is left at the default.
    return pl.pallas_call(
        kernel,
        out_shape=jax.ShapeDtypeStruct((B, T, C), x.dtype),
        grid=(B, nq),
        in_specs=[
            # x: full sequence for this batch element (queries sliced in-kernel)
            pl.BlockSpec((pl.Squeezed(), T, C), lambda b, qi: (b, 0, 0)),
            pl.BlockSpec((C, C), lambda b, qi: (0, 0)),          # Wq
            pl.BlockSpec((C, C), lambda b, qi: (0, 0)),          # Wk
            pl.BlockSpec((C, C), lambda b, qi: (0, 0)),          # Wv
            pl.BlockSpec((C, C), lambda b, qi: (0, 0)),          # Wproj
            pl.BlockSpec((1, C), lambda b, qi: (0, 0)),          # bias
        ],
        out_specs=pl.BlockSpec((pl.Squeezed(), q_tile, C),
                               lambda b, qi: (b, qi, 0)),
        scratch_shapes=[
            pltpu.VMEM((num_heads, T, head_size), jnp.bfloat16),  # K head-major
            pltpu.VMEM((num_heads, T, head_size), jnp.bfloat16),  # V head-major
        ],
        compiler_params=pltpu.CompilerParams(
            dimension_semantics=("parallel", "arbitrary")),
    )(x, wqb, wkb, wvb, wpb, bpf)


# ---- pure-JAX reference (f32, faithful to the PyTorch module) ----------------
def _reference(x, wq, wk, wv, wp, bp, num_heads, head_size):
    B, T, C = x.shape
    scale = 1.0 / math.sqrt(float(C))
    q = x @ wq
    k = x @ wk
    v = x @ wv
    tril = jnp.tril(jnp.ones((T, T), dtype=jnp.float32))
    outs = []
    for h in range(num_heads):
        lo, hi = h * head_size, (h + 1) * head_size
        s = jnp.einsum("btd,bsd->bts", q[..., lo:hi], k[..., lo:hi]) * scale
        s = jnp.where(tril == 0.0, -jnp.inf, s)
        w = jax.nn.softmax(s, axis=-1)
        outs.append(jnp.einsum("bts,bsd->btd", w, v[..., lo:hi]))
    ctx = jnp.concatenate(outs, axis=-1)
    return ctx @ wp + bp.reshape(1, C)


# ---- driver ------------------------------------------------------------------
if __name__ == "__main__":
    key = jax.random.PRNGKey(0)
    kx, kq, kk, kv, kp, kb = jax.random.split(key, 6)

    init = 0.02
    # Per-head nn.Linear(n_embd, head_size, bias=False) weights are
    # (head_size, n_embd) in PyTorch; concatenated + transposed here so the
    # kernel computes y = x @ W directly:  (C, H*hs).
    wq = init * jax.random.normal(kq, (N_EMBD, NUM_HEADS * HEAD_SIZE), dtype=jnp.float32)
    wk = init * jax.random.normal(kk, (N_EMBD, NUM_HEADS * HEAD_SIZE), dtype=jnp.float32)
    wv = init * jax.random.normal(kv, (N_EMBD, NUM_HEADS * HEAD_SIZE), dtype=jnp.float32)
    # proj = nn.Linear(n_embd, n_embd): weight (C, C) -> pass transposed, bias (C,).
    wp = init * jax.random.normal(kp, (N_EMBD, N_EMBD), dtype=jnp.float32)
    bp = init * jax.random.normal(kb, (1, N_EMBD), dtype=jnp.float32)

    # bf16 weight copies cached ONCE and reused for every kernel call.
    wq_b = wq.astype(jnp.bfloat16)
    wk_b = wk.astype(jnp.bfloat16)
    wv_b = wv.astype(jnp.bfloat16)
    wp_b = wp.astype(jnp.bfloat16)

    ok = True
    # small shape (single query tile) + full block_size (exercises the nq=2 /
    # persistent-K/V-scratch path)
    for (B, T) in [(2, 16), (1, BLOCK_SIZE)]:
        x = jax.random.normal(kx, (B, T, N_EMBD), dtype=jnp.float32)
        out = multi_head_attention(x, wq_b, wk_b, wv_b, wp_b, bp)
        out = jax.block_until_ready(out)
        ref = _reference(x, wq, wk, wv, wp, bp, NUM_HEADS, HEAD_SIZE)
        assert out.shape == (B, T, N_EMBD)
        err = float(jnp.max(jnp.abs(out - ref)))
        if not bool(jnp.allclose(out, ref, rtol=5e-2, atol=1e-2)):
            ok = False
            print(f"MISMATCH at B={B}, T={T}: max abs err = {err}")

    assert ok, "kernel output mismatch vs JAX reference"
    print("KERNEL_OK")
</pallas_src>

<mosaic_0001>
module attributes {stable_mosaic.version = 11 : i64} {
  func.func @_mha_kernel(%arg0: i32, %arg1: i32, %arg2: memref<1x16x384xf32, #tpu.memory_space<vmem>>, %arg3: memref<384x384xbf16, #tpu.memory_space<vmem>>, %arg4: memref<384x384xbf16, #tpu.memory_space<vmem>>, %arg5: memref<384x384xbf16, #tpu.memory_space<vmem>>, %arg6: memref<384x384xbf16, #tpu.memory_space<vmem>>, %arg7: memref<1x384xf32, #tpu.memory_space<vmem>>, %arg8: memref<1x16x384xf32, #tpu.memory_space<vmem>>, %arg9: memref<6x16x64xbf16, #tpu.memory_space<vmem>>, %arg10: memref<6x16x64xbf16, #tpu.memory_space<vmem>>) attributes {dimension_semantics = [#tpu.dimension_semantics<parallel>, #tpu.dimension_semantics<arbitrary>], iteration_bounds = array<i64: 2, 1>, scalar_prefetch = 0 : i64, scratch_operands = 2 : i64, tpu.core_type = #tpu.core_type<tc>, window_params = [{transform_indices = @transform_0, window_bounds = array<i64: 1, 16, 384>}, {pipeline_mode = #tpu.pipeline_mode<synchronous>, transform_indices = @transform_1, window_bounds = array<i64: 384, 384>}, {pipeline_mode = #tpu.pipeline_mode<synchronous>, transform_indices = @transform_2, window_bounds = array<i64: 384, 384>}, {pipeline_mode = #tpu.pipeline_mode<synchronous>, transform_indices = @transform_3, window_bounds = array<i64: 384, 384>}, {pipeline_mode = #tpu.pipeline_mode<synchronous>, transform_indices = @transform_4, window_bounds = array<i64: 384, 384>}, {pipeline_mode = #tpu.pipeline_mode<synchronous>, transform_indices = @transform_5, window_bounds = array<i64: 1, 384>}, {transform_indices = @transform_6, window_bounds = array<i64: 1, 16, 384>}]} {
    %c0_i32 = arith.constant 0 : i32
    %0 = arith.cmpi eq, %arg1, %c0_i32 : i32
    %1 = arith.extui %0 : i1 to i32
    %c0_i32_0 = arith.constant 0 : i32
    %2 = arith.cmpi ne, %1, %c0_i32_0 : i32
    scf.if %2 {
      %c0_25 = arith.constant 0 : index
      %c0_26 = arith.constant 0 : index
      %c0_27 = arith.constant 0 : index
      %53 = vector.load %arg2[%c0_25, %c0_26, %c0_27] : memref<1x16x384xf32, #tpu.memory_space<vmem>>, vector<1x16x384xf32>
      %54 = vector.shape_cast %53 : vector<1x16x384xf32> to vector<16x384xf32>
      %55 = arith.truncf %54 : vector<16x384xf32> to vector<16x384xbf16>
      %c0_28 = arith.constant 0 : index
      %c0_29 = arith.constant 0 : index
      %56 = vector.load %arg4[%c0_28, %c0_29] : memref<384x384xbf16, #tpu.memory_space<vmem>>, vector<384x384xbf16>
      %cst_30 = arith.constant dense<0.000000e+00> : vector<16x384xf32>
      %57 = tpu.matmul %55, %56, %cst_30 {dimension_numbers = #tpu.dot_dimension_numbers<[1], [0], [0], [1], [0, 0, 1, 1], [], []>} : vector<16x384xbf16>, vector<384x384xbf16>, vector<16x384xf32> -> vector<16x384xf32>
      %c0_31 = arith.constant 0 : index
      %c0_32 = arith.constant 0 : index
      %58 = vector.load %arg5[%c0_31, %c0_32] : memref<384x384xbf16, #tpu.memory_space<vmem>>, vector<384x384xbf16>
      %cst_33 = arith.constant dense<0.000000e+00> : vector<16x384xf32>
      %59 = tpu.matmul %55, %58, %cst_33 {dimension_numbers = #tpu.dot_dimension_numbers<[1], [0], [0], [1], [0, 0, 1, 1], [], []>} : vector<16x384xbf16>, vector<384x384xbf16>, vector<16x384xf32> -> vector<16x384xf32>
      %60 = arith.truncf %57 : vector<16x384xf32> to vector<16x384xbf16>
      %61 = vector.shape_cast %60 : vector<16x384xbf16> to vector<16x6x64xbf16>
      %62 = tpu.transpose %61, [1, 0, 2] : vector<16x6x64xbf16> -> vector<6x16x64xbf16>
      %c0_34 = arith.constant 0 : index
      %c0_35 = arith.constant 0 : index
      %c0_36 = arith.constant 0 : index
      %63 = vector.load %arg9[%c0_34, %c0_35, %c0_36] : memref<6x16x64xbf16, #tpu.memory_space<vmem>>, vector<6x16x64xbf16>
      tpu.vector_store %arg9[%c0_34, %c0_35, %c0_36], %62 {strides = array<i32>} : memref<6x16x64xbf16, #tpu.memory_space<vmem>>, vector<6x16x64xbf16>,
      %64 = arith.truncf %59 : vector<16x384xf32> to vector<16x384xbf16>
      %65 = vector.shape_cast %64 : vector<16x384xbf16> to vector<16x6x64xbf16>
      %66 = tpu.transpose %65, [1, 0, 2] : vector<16x6x64xbf16> -> vector<6x16x64xbf16>
      %c0_37 = arith.constant 0 : index
      %c0_38 = arith.constant 0 : index
      %c0_39 = arith.constant 0 : index
      %67 = vector.load %arg10[%c0_37, %c0_38, %c0_39] : memref<6x16x64xbf16, #tpu.memory_space<vmem>>, vector<6x16x64xbf16>
      tpu.vector_store %arg10[%c0_37, %c0_38, %c0_39], %66 {strides = array<i32>} : memref<6x16x64xbf16, #tpu.memory_space<vmem>>, vector<6x16x64xbf16>,
    } else {
    }
    %c16_i32 = arith.constant 16 : i32
    %3 = arith.muli %arg1, %c16_i32 : i32
    %4 = tpu.assume_multiple %3, 16 : i32
    %c0 = arith.constant 0 : index
    %5 = arith.index_cast %4 : i32 to index
    %c0_1 = arith.constant 0 : index
    %6 = vector.load %arg2[%c0, %5, %c0_1] : memref<1x16x384xf32, #tpu.memory_space<vmem>>, vector<1x16x384xf32>
    %7 = vector.shape_cast %6 : vector<1x16x384xf32> to vector<16x384xf32>
    %8 = arith.truncf %7 : vector<16x384xf32> to vector<16x384xbf16>
    %c0_2 = arith.constant 0 : index
    %c0_3 = arith.constant 0 : index
    %9 = vector.load %arg3[%c0_2, %c0_3] : memref<384x384xbf16, #tpu.memory_space<vmem>>, vector<384x384xbf16>
    %cst = arith.constant dense<0.000000e+00> : vector<16x384xf32>
    %10 = tpu.matmul %8, %9, %cst {dimension_numbers = #tpu.dot_dimension_numbers<[1], [0], [0], [1], [0, 0, 1, 1], [], []>} : vector<16x384xbf16>, vector<384x384xbf16>, vector<16x384xf32> -> vector<16x384xf32>
    %cst_4 = arith.constant 0.0510310382 : f32
    %11 = vector.broadcast %cst_4 : f32 to vector<16x384xf32>
    %12 = arith.mulf %10, %11 : vector<16x384xf32>
    %13 = arith.truncf %12 : vector<16x384xf32> to vector<16x384xbf16>
    %14 = vector.shape_cast %13 : vector<16x384xbf16> to vector<16x6x64xbf16>
    %15 = tpu.transpose %14, [1, 0, 2] : vector<16x6x64xbf16> -> vector<6x16x64xbf16>
    %c0_5 = arith.constant 0 : index
    %c0_6 = arith.constant 0 : index
    %c0_7 = arith.constant 0 : index
    %16 = vector.load %arg9[%c0_5, %c0_6, %c0_7] : memref<6x16x64xbf16, #tpu.memory_space<vmem>>, vector<6x16x64xbf16>
    "tpu.trace_start"() <{level = 10 : i32, message = "hqd,hkd->hqk"}> : () -> ()
    %cst_8 = arith.constant dense<0.000000e+00> : vector<6x16x16xf32>
    %17 = tpu.matmul %15, %16, %cst_8 {dimension_numbers = #tpu.dot_dimension_numbers<[2], [2], [1], [1], [0, 0, 0, 1, 1, 1], [0], [0]>} : vector<6x16x64xbf16>, vector<6x16x64xbf16>, vector<6x16x16xf32> -> vector<6x16x16xf32>
    "tpu.trace_stop"() : () -> ()
    %18 = tpu.iota {dimensions = array<i32: 0>} : vector<16x16xi32>
    %19 = vector.broadcast %4 : i32 to vector<16x16xi32>
    %20 = arith.addi %19, %18 : vector<16x16xi32>
    %21 = tpu.iota {dimensions = array<i32: 1>} : vector<16x16xi32>
    %22 = arith.cmpi sgt, %21, %20 : vector<16x16xi32>
    %cst_9 = arith.constant -1.000000e+30 : f32
    %cst_10 = arith.constant 0.000000e+00 : f32
    %23 = vector.broadcast %cst_9 : f32 to vector<16x16xf32>
    %24 = vector.broadcast %cst_10 : f32 to vector<16x16xf32>
    %25 = arith.select %22, %23, %24 : vector<16x16xi1>, vector<16x16xf32>
    %26 = vector.shape_cast %25 : vector<16x16xf32> to vector<1x16x16xf32>
    %27 = vector.broadcast %26 : vector<1x16x16xf32> to vector<6x16x16xf32>
    %28 = arith.addf %17, %27 : vector<6x16x16xf32>
    %cst_11 = arith.constant dense<0xFF800000> : vector<6x16xf32>
    %29 = vector.multi_reduction <maximumf>, %28, %cst_11 [2] : vector<6x16x16xf32> to vector<6x16xf32>
    %30 = vector.shape_cast %29 : vector<6x16xf32> to vector<6x16x1xf32>
    %31 = vector.broadcast %30 : vector<6x16x1xf32> to vector<6x16x16xf32>
    %32 = arith.subf %28, %31 : vector<6x16x16xf32>
    %33 = math.exp %32 : vector<6x16x16xf32>
    %cst_12 = arith.constant dense<0.000000e+00> : vector<6x16xf32>
    %34 = vector.multi_reduction <add>, %33, %cst_12 [2] : vector<6x16x16xf32> to vector<6x16xf32>
    %35 = vector.shape_cast %34 : vector<6x16xf32> to vector<6x16x1xf32>
    %36 = tpu.reciprocal %35 {approx = true} : vector<6x16x1xf32> -> vector<6x16x1xf32>
    %37 = vector.broadcast %36 : vector<6x16x1xf32> to vector<6x16x16xf32>
    %38 = arith.mulf %33, %37 : vector<6x16x16xf32>
    %39 = arith.truncf %38 : vector<6x16x16xf32> to vector<6x16x16xbf16>
    %c0_13 = arith.constant 0 : index
    %c0_14 = arith.constant 0 : index
    %c0_15 = arith.constant 0 : index
    %40 = vector.load %arg10[%c0_13, %c0_14, %c0_15] : memref<6x16x64xbf16, #tpu.memory_space<vmem>>, vector<6x16x64xbf16>
    "tpu.trace_start"() <{level = 10 : i32, message = "hqk,hkd->hqd"}> : () -> ()
    %cst_16 = arith.constant dense<0.000000e+00> : vector<6x16x64xf32>
    %41 = tpu.matmul %39, %40, %cst_16 {dimension_numbers = #tpu.dot_dimension_numbers<[2], [1], [1], [2], [0, 0, 0, 1, 1, 2], [0], [0]>} : vector<6x16x16xbf16>, vector<6x16x64xbf16>, vector<6x16x64xf32> -> vector<6x16x64xf32>
    "tpu.trace_stop"() : () -> ()
    %42 = arith.truncf %41 : vector<6x16x64xf32> to vector<6x16x64xbf16>
    %43 = tpu.transpose %42, [1, 0, 2] : vector<6x16x64xbf16> -> vector<16x6x64xbf16>
    %44 = vector.shape_cast %43 : vector<16x6x64xbf16> to vector<16x384xbf16>
    %c0_17 = arith.constant 0 : index
    %c0_18 = arith.constant 0 : index
    %45 = vector.load %arg6[%c0_17, %c0_18] : memref<384x384xbf16, #tpu.memory_space<vmem>>, vector<384x384xbf16>
    %cst_19 = arith.constant dense<0.000000e+00> : vector<16x384xf32>
    %46 = tpu.matmul %44, %45, %cst_19 {dimension_numbers = #tpu.dot_dimension_numbers<[1], [0], [0], [1], [0, 0, 1, 1], [], []>} : vector<16x384xbf16>, vector<384x384xbf16>, vector<16x384xf32> -> vector<16x384xf32>
    %c0_20 = arith.constant 0 : index
    %c0_21 = arith.constant 0 : index
    %47 = vector.load %arg7[%c0_20, %c0_21] : memref<1x384xf32, #tpu.memory_space<vmem>>, vector<1x384xf32>
    %48 = vector.broadcast %47 : vector<1x384xf32> to vector<16x384xf32>
    %49 = arith.addf %46, %48 : vector<16x384xf32>
    %c0_22 = arith.constant 0 : index
    %c0_23 = arith.constant 0 : index
    %c0_24 = arith.constant 0 : index
    %50 = vector.load %arg8[%c0_22, %c0_23, %c0_24] : memref<1x16x384xf32, #tpu.memory_space<vmem>>, vector<1x16x384xf32>
    %51 = vector.shape_cast %50 : vector<1x16x384xf32> to vector<16x384xf32>
    %52 = vector.shape_cast %49 : vector<16x384xf32> to vector<1x16x384xf32>
    tpu.vector_store %arg8[%c0_22, %c0_23, %c0_24], %52 {strides = array<i32>} : memref<1x16x384xf32, #tpu.memory_space<vmem>>, vector<1x16x384xf32>,
    return
  }
  func.func @transform_0(%arg0: i32, %arg1: i32) -> (i32, i32, i32) {
    %c0_i32 = arith.constant 0 : i32
    %c0_i32_0 = arith.constant 0 : i32
    %c0_i32_1 = arith.constant 0 : i32
    return %arg0, %c0_i32, %c0_i32_0 : i32, i32, i32
  }
  func.func @transform_1(%arg0: i32, %arg1: i32) -> (i32, i32) {
    %c0_i32 = arith.constant 0 : i32
    %c0_i32_0 = arith.constant 0 : i32
    %c0_i32_1 = arith.constant 0 : i32
    return %c0_i32, %c0_i32_0 : i32, i32
  }
  func.func @transform_2(%arg0: i32, %arg1: i32) -> (i32, i32) {
    %c0_i32 = arith.constant 0 : i32
    %c0_i32_0 = arith.constant 0 : i32
    %c0_i32_1 = arith.constant 0 : i32
    return %c0_i32, %c0_i32_0 : i32, i32
  }
  func.func @transform_3(%arg0: i32, %arg1: i32) -> (i32, i32) {
    %c0_i32 = arith.constant 0 : i32
    %c0_i32_0 = arith.constant 0 : i32
    %c0_i32_1 = arith.constant 0 : i32
    return %c0_i32, %c0_i32_0 : i32, i32
  }
  func.func @transform_4(%arg0: i32, %arg1: i32) -> (i32, i32) {
    %c0_i32 = arith.constant 0 : i32
    %c0_i32_0 = arith.constant 0 : i32
    %c0_i32_1 = arith.constant 0 : i32
    return %c0_i32, %c0_i32_0 : i32, i32
  }
  func.func @transform_5(%arg0: i32, %arg1: i32) -> (i32, i32) {
    %c0_i32 = arith.constant 0 : i32
    %c0_i32_0 = arith.constant 0 : i32
    %c0_i32_1 = arith.constant 0 : i32
    return %c0_i32, %c0_i32_0 : i32, i32
  }
  func.func @transform_6(%arg0: i32, %arg1: i32) -> (i32, i32, i32) {
    %c0_i32 = arith.constant 0 : i32
    %c0_i32_0 = arith.constant 0 : i32
    return %arg0, %arg1, %c0_i32 : i32, i32, i32
  }
}

</mosaic_0001>

<bundles_post_ra>
// kernel: tpu_custom_call.1
= control target key start
LH: loop header
LB: loop body
LE: loop exit
PB: predicated region body
PF: predicated region fallthrough
CT: control target
= control target key end

     0   :  { %s7665_s0 = inlined_call_operand.hbm [shape: f32[2,16,384], index: 0, kind: input, shape index: {}]   ;;  %s7666_s1 = inlined_call_operand.hbm [shape: bf16[384,384], index: 1, kind: input, shape index: {}]   ;;  %s7667_s2 = inlined_call_operand.hbm [shape: bf16[384,384], index: 2, kind: input, shape index: {}]   ;;  %s7668_s3 = inlined_call_operand.hbm [shape: bf16[384,384], index: 3, kind: input, shape index: {}]   ;;  %s7669_s4 = inlined_call_operand.hbm [shape: bf16[384,384], index: 4, kind: input, shape index: {}]   ;;  %s7670_s5 = inlined_call_operand.vmem [shape: f32[1,384], index: 5, kind: input, shape index: {}]   ;;  %s7671_s6 = inlined_call_operand.hbm [shape: f32[2,16,384], index: 6, kind: output, shape index: {}]  }
   0x1   :  { %7672 = sst [smem:[#allocation18_spill]] %s7666_s1 }
   0x2   :  { %7673 = sst [smem:[#allocation19_spill]] %s7667_s2 }
   0x3   :  { %7674 = sst [smem:[#allocation20_spill]] %s7668_s3 }
   0x4   :  { %11 = vsyncpa [#allocation5], 0 }
   0x5   :  { %13 = vsyncpa [#allocation5 + $0x1], 0 }
   0x6   :  { %14 = vsyncpa [#allocation8], 0 }
   0x7   :  { %15 = vsyncpa [#allocation11], 0 }
   0x8   :  { %16 = vsyncpa [#allocation6], 0 }
   0x9   :  { %18 = vsyncpa [#allocation6 + $0x1], 0  ;;  %s6783_s21 = smov 0   ;;  %s6785_s22 = smov 0  }
   0xa   :  { %s6787_s23 = smov 0   ;;  %s6789_s24 = smov 0  }
   0xb   :  { %s6791_s25 = smov 0   ;;  %s6793_s26 = smov 0  }
   0xc LB: > { %s4798_s27 = sadd.s32 4294967295, %s6732_s26   ;;  %s4799_s28 = sadd.s32 4294967294, %s6732_s26   ;;  %s6732_s26 = sphi %s6793_s26, %s24_s26   ;;  %s6728_s25 = sphi %s6791_s25, %s7689_s25   ;;  %s6724_s24 = sphi %s6789_s24, %s7688_s24   ;;  %s6720_s23 = sphi %s6787_s23, %s7687_s23   ;;  %s6716_s22 = sphi %s6785_s22, %s7686_s22   ;;  %s6712_s21 = sphi %s6783_s21, %s7685_s21  }
   0xd   : > { %p56_p0 = scmp.ne.s32.totalorder %s6716_s22, %s6712_s21  ;;  %p6817_p1 = scmp.eq.s32.totalorder %s4798_s27, 0 }
   0xe   : > { %p6821_p2 = scmp.eq.s32.totalorder %s4798_s27, 1  ;;  %p193_p3 = scmp.eq.s32.totalorder %s4799_s28, 1 }
   0xf   : > { %p6827_p4 = por %p6817_p1, %p56_p0  ;;  %p4800_p5 = scmp.ge.s32.totalorder %s6732_s26, 1 }
  0x10   : > { %p6832_p6 = por %p193_p3, %p56_p0  ;;  %p200_p7 = scmp.lt.s32.totalorder %s6732_s26, 3 }
  0x11   : > { %s7679_s1 = sld [smem:[#allocation18_spill]]  ;;  %s6734_s13 = smov [#allocation7]  }
  0x12   : > { %p6840_p8 = pnand %p4800_p5, %p200_p7  ;;  %s213_s14 = sshll.u32 %s6734_s13, 4  ;;  %s214_s14 = int_to_ptr.vmem [resolvable:$true] %s213_s14 }
  0x13   : > { %p4805_p11 = scmp.ge.s32.totalorder %s6732_s26, 2  ;;  %s7682_s3 = sld [smem:[#allocation20_spill]] }
  0x14   : > { %p6351_p9 = pneg %p6840_p8  ;;  %s6735_s19 = smov 192  }
  0x15   : > { %s6736_s20 = smov 12   ;;  %s6737_s27 = smov [#allocation10]  }
  0x16   : > { %p6848_p10 = pnand %p6351_p9, %p6817_p1  ;;  %s241_s28 = sshll.u32 %s6737_s27, 4  ;;  %s242_s28 = int_to_ptr.vmem [resolvable:$true] %s241_s28 }
  0x17   : > { %s211_s11 = sshll.u32 %s7679_s1, 4  ;;  %s7683_s2 = sld [smem:[#allocation19_spill]]  ;;  %s212_s11 = int_to_ptr.hbm [resolvable:$true] %s211_s11 }
  0x18   : > { %6354 = dma.hbm_to_vmem [thread:$0]  (!%p6848_p10), %s212_s11, 9216, %s214_s14, [#allocation8], %s6735_s19, %s6735_s19, %s6736_s20  }
  0x19   : > { %s239_s18 = sshll.u32 %s7682_s3, 4  ;;  %s253_s11 = sshll.u32 %s7669_s4, 4  ;;  %s240_s18 = int_to_ptr.hbm [resolvable:$true] %s239_s18  ;;  %s254_s11 = int_to_ptr.hbm [resolvable:$true] %s253_s11 }
  0x1a   : > { %6360 = dma.hbm_to_vmem [thread:$0]  (!%p6848_p10), %s240_s18, 9216, %s242_s28, [#allocation11], %s6735_s19, %s6735_s19, %s6736_s20  }
  0x1b   : > { %s6738_s14 = smov [#allocation9]   ;;  %s6739_s27 = smov [#allocation12]  }
  0x1c   : > { %s227_s1 = sshll.u32 %s6738_s14, 4  ;;  %s255_s9 = sshll.u32 %s6739_s27, 4  ;;  %s228_s1 = int_to_ptr.vmem [resolvable:$true] %s227_s1  ;;  %s256_s9 = int_to_ptr.vmem [resolvable:$true] %s255_s9 }
  0x1d   : > { %s225_s13 = sshll.u32 %s7683_s2, 4  ;;  %s36_s18 = sadd.s32 1, %s6728_s25  ;;  %s226_s13 = int_to_ptr.hbm [resolvable:$true] %s225_s13 }
  0x1e   : > { %6357 = dma.hbm_to_vmem [thread:$0]  (!%p6848_p10), %s226_s13, 9216, %s228_s1, [#allocation8], %s6735_s19, %s6735_s19, %s6736_s20  }
  0x1f   : > { %6363 = dma.hbm_to_vmem [thread:$0]  (!%p6848_p10), %s254_s11, 9216, %s256_s9, [#allocation11], %s6735_s19, %s6735_s19, %s6736_s20  }
  0x20   : > { %s43_s28 = sadd.s32 1, %s6720_s23  ;;  %p38_p12 = scmp.ge.s32.totalorder %s36_s18, 2 }
  0x21   : > { %p50_p13 = scmp.ne.s32.totalorder %s6720_s23, %s6716_s22  ;;  %p51_p0 = scmp.eq.s32.totalorder %s6732_s26, 0 }
  0x22   : > { %p6376_p3 = scmp.lt.s32.totalorder %s6732_s26, 2  ;;  %s7691_s18 = smov (%p38_p12, %s36_s18), 0 }
  0x23   : > { %p52_p5 = por %p51_p0, %p50_p13  ;;  %p6880_p7 = por %p6821_p2, %p50_p13 }
  0x24   : > { %s40_s10 = ssub.s32 %s6728_s25, %s7691_s18  ;;  %s272_s15 = sand.u32 1, %s6720_s23  }
  0x25   : > { %p41_p9 = scmp.eq.s32.totalorder %s40_s10, 0  ;;  %s6327_s19 = smul.u32 48, %s272_s15 }
  0x26   : > { %p6365_p10 = pnand %p6376_p3, %p52_p5  ;;  %s6328_s13 = smul.u32 48, %s6728_s25 }
  0x27   : > { %s6888_s20 = scalar_select %p41_p9, %s6720_s23, %s43_s28  }
  0x28   : > { %s276_s16 = scalar_lea.vmem [#allocation4], %s6327_s19  ;;  %s281_s27 = scalar_lea.hbm %s7665_s0, %s6328_s13 }
  0x29   : > { %s284_s17 = sshll.u32 %s276_s16, 4  ;;  %s282_s30 = sshll.u32 %s281_s27, 4  ;;  %s285_s17 = int_to_ptr.vmem [resolvable:$true] %s284_s17  ;;  %s283_s30 = int_to_ptr.hbm [resolvable:$true] %s282_s30 }
  0x2a   : > { %s273_s9 = scalar_lea.sflag [#allocation5], %s272_s15  ;;  %s6740_s2 = smov 384  }
  0x2b   : > { %s6741_s3 = smov 24   ;;  %296 = sbr.rel (%p6840_p8) target bundleno = 1473 (0x5c1), region = 44 }
  0x2c   : > { %6367 = dma.hbm_to_vmem [thread:$0]  (!%p6365_p10), %s283_s30, 768, %s285_s17, %s273_s9, %s6740_s2, %s6740_s2, %s6741_s3  }
  0x2d   : > { %s6897_s28 = sand.u32 (!%p6840_p8), 1, %s6716_s22  }
  0x2e   : > { %s6329_s10 = smul.u32 (!%p6840_p8), 48, %s6897_s28  ;;  %s299_s19 = scalar_lea.sflag (!%p6840_p8), [#allocation5], %s6897_s28 }
  0x30   : > { %s6903_s13 = scalar_lea.vmem [#allocation4], %s6329_s10 }
  0x31   : > { %6695 = dma.done.wait (%p6827_p4), %s299_s19, 768  }
  0x32   : > { %6697 = vsyncadd (%p6827_p4), %s299_s19, 4294966528 }
  0x33   : > { %6699 = dma.done.wait (%p6817_p1), [#allocation8], 18432  }
  0x34   : > { %6701 = vsyncadd (%p6817_p1), [#allocation8], 4294948864 }
  0x35   : > { %6703 = dma.done.wait (%p6817_p1), [#allocation11], 18432  }
  0x36   : > { %6705 = vsyncadd (%p6817_p1), [#allocation11], 4294948864  ;;  %v4898_v0 = vld [vmem:[#allocation9 + $0xa8] sm:$0xf]  ;;  %v6049_v1 = vld [vmem:[#allocation9 + $0xb0] sm:$0xf0] }
  0x37   : > { %v4994_v2 = vld [vmem:[#allocation9 + $0x168] sm:$0xf]  ;;  %v4899_v3 = vor.u32 %v6049_v1, %v4898_v0  ;;  %v6073_v4 = vld [vmem:[#allocation9 + $0x170] sm:$0xf0]  ;;  %v6048_v9 = vld [vmem:[#allocation9 + $0xac] sm:$0xf] }
  0x38   : > { %v5090_v5 = vld [vmem:[#allocation9 + $0x228] sm:$0xf]  ;;  %v6097_v6 = vld [vmem:[#allocation9 + $0x230] sm:$0xf0]  ;;  %v4995_v7 = vor.u32 %v6073_v4, %v4994_v2  ;;  %v4900_v10 = vld [vmem:[#allocation9 + $0xb4] sm:$0xf0] }
  0x39   : > { %v5091_v8 = vor.u32 %v6097_v6, %v5090_v5  ;;  %v4886_v11 = vld [vmem:[#allocation9 + $0x90] sm:$0xf]  ;;  %847 = vmatpush.bf16.msra.mxu0 %v4899_v3  ;;  %v4903_v12 = vor.u32 %v6048_v9, %v4900_v10  ;;  %v6046_v13 = vld [vmem:[#allocation9 + $0x98] sm:$0xf0]  ;;  %v6045_v20 = vld [vmem:[#allocation9 + $0x94] sm:$0xf] }
  0x3a   : > { %v4982_v14 = vld [vmem:[#allocation9 + $0x150] sm:$0xf]  ;;  %v6070_v15 = vld [vmem:[#allocation9 + $0x158] sm:$0xf0]  ;;  %861 = vmatpush.bf16.msra.mxu1 %v4995_v7  ;;  %v4887_v16 = vor.u32 %v6046_v13, %v4886_v11  ;;  %v4888_v22 = vld [vmem:[#allocation9 + $0x9c] sm:$0xf0] }
  0x3b   : > { %875 = vmatpush.bf16.msra.mxu2 %v5091_v8  ;;  %v4983_v17 = vor.u32 %v6070_v15, %v4982_v14  ;;  %v5078_v18 = vld [vmem:[#allocation9 + $0x210] sm:$0xf]  ;;  %v6094_v19 = vld [vmem:[#allocation9 + $0x218] sm:$0xf0]  ;;  %889 = vmatpush.bf16.msra.mxu3 %v4903_v12  ;;  %v4874_v23 = vld [vmem:[#allocation9 + $0x78] sm:$0xf]  ;;  %v4891_v25 = vor.u32 %v6045_v20, %v4888_v22 }
  0x3c   : > { %v5079_v21 = vor.u32 %v6094_v19, %v5078_v18  ;;  %v6043_v24 = vld [vmem:[#allocation9 + $0x80] sm:$0xf0]  ;;  %v4970_v26 = vld [vmem:[#allocation9 + $0x138] sm:$0xf]  ;;  %v6042_v31 = vld [vmem:[#allocation9 + $0x7c] sm:$0xf] }
  0x3d   : > { %v6067_v27 = vld [vmem:[#allocation9 + $0x140] sm:$0xf0]  ;;  %v5066_v28 = vld [vmem:[#allocation9 + $0x1f8] sm:$0xf]  ;;  %848 = vmatpush.bf16.msra.mxu0 %v4887_v16  ;;  %v4875_v29 = vor.u32 %v6043_v24, %v4874_v23  ;;  %v4876_v32 = vld [vmem:[#allocation9 + $0x84] sm:$0xf0] }
  0x3e   : > { %v6091_v30 = vld [vmem:[#allocation9 + $0x200] sm:$0xf0]  ;;  %862 = vmatpush.bf16.msra.mxu1 %v4983_v17  ;;  %v4971_v33 = vor.u32 %v6067_v27, %v4970_v26  ;;  %v4862_v35 = vld [vmem:[#allocation9 + $0x60] sm:$0xf]  ;;  %v6040_v36 = vld [vmem:[#allocation9 + $0x68] sm:$0xf0]  ;;  %v4879_v38 = vor.u32 %v6042_v31, %v4876_v32 }
  0x3f   : > { %876 = vmatpush.bf16.msra.mxu2 %v5079_v21  ;;  %v5067_v34 = vor.u32 %v6091_v30, %v5066_v28  ;;  %v4958_v37 = vld [vmem:[#allocation9 + $0x120] sm:$0xf]  ;;  %890 = vmatpush.bf16.msra.mxu3 %v4891_v25  ;;  %v6064_v39 = vld [vmem:[#allocation9 + $0x128] sm:$0xf0]  ;;  %v6039_v42 = vld [vmem:[#allocation9 + $0x64] sm:$0xf]  ;;  %v4863_v44 = vor.u32 %v6040_v36, %v4862_v35 }
  0x40   : > { %v5054_v40 = vld [vmem:[#allocation9 + $0x1e0] sm:$0xf]  ;;  %v6088_v41 = vld [vmem:[#allocation9 + $0x1e8] sm:$0xf0]  ;;  %v4864_v43 = vld [vmem:[#allocation9 + $0x6c] sm:$0xf0]  ;;  %v4959_v45 = vor.u32 %v6064_v39, %v4958_v37 }
  0x41   : > { %849 = vmatpush.bf16.msra.mxu0 %v4875_v29  ;;  %v5055_v46 = vor.u32 %v6088_v41, %v5054_v40  ;;  %v4850_v47 = vld [vmem:[#allocation9 + $0x48] sm:$0xf]  ;;  %v6037_v48 = vld [vmem:[#allocation9 + $0x50] sm:$0xf0]  ;;  %v4867_v50 = vor.u32 %v6039_v42, %v4864_v43  ;;  %v6036_v54 = vld [vmem:[#allocation9 + $0x4c] sm:$0xf] }
  0x42   : > { %863 = vmatpush.bf16.msra.mxu1 %v4971_v33  ;;  %v4946_v49 = vld [vmem:[#allocation9 + $0x108] sm:$0xf]  ;;  %v6061_v51 = vld [vmem:[#allocation9 + $0x110] sm:$0xf0]  ;;  %v4852_v55 = vld [vmem:[#allocation9 + $0x54] sm:$0xf0]  ;;  %v4851_v56 = vor.u32 %v6037_v48, %v4850_v47 }
  0x43   : > { %877 = vmatpush.bf16.msra.mxu2 %v5067_v34  ;;  %891 = vmatpush.bf16.msra.mxu3 %v4879_v38  ;;  %v5042_v52 = vld [vmem:[#allocation9 + $0x1c8] sm:$0xf]  ;;  %v6085_v53 = vld [vmem:[#allocation9 + $0x1d0] sm:$0xf0]  ;;  %v4947_v57 = vor.u32 %v6061_v51, %v4946_v49  ;;  %v4838_v59 = vld [vmem:[#allocation9 + $0x30] sm:$0xf]  ;;  %v4855_v62 = vor.u32 %v6036_v54, %v4852_v55 }
  0x44   : > { %v5043_v58 = vor.u32 %v6085_v53, %v5042_v52  ;;  %v6034_v60 = vld [vmem:[#allocation9 + $0x38] sm:$0xf0]  ;;  %v4934_v61 = vld [vmem:[#allocation9 + $0xf0] sm:$0xf]  ;;  %v6033_v2 = vld [vmem:[#allocation9 + $0x34] sm:$0xf] }
  0x45   : > { %850 = vmatpush.bf16.msra.mxu0 %v4863_v44  ;;  %v6058_v63 = vld [vmem:[#allocation9 + $0xf8] sm:$0xf0]  ;;  %v5030_v0 = vld [vmem:[#allocation9 + $0x1b0] sm:$0xf]  ;;  %v4840_v3 = vld [vmem:[#allocation9 + $0x3c] sm:$0xf0]  ;;  %v4839_v4 = vor.u32 %v6034_v60, %v4838_v59 }
  0x46   : > { %864 = vmatpush.bf16.msra.mxu1 %v4959_v45  ;;  %v6082_v1 = vld [vmem:[#allocation9 + $0x1b8] sm:$0xf0]  ;;  %v4935_v5 = vor.u32 %v6058_v63, %v4934_v61  ;;  %v4826_v7 = vld [vmem:[#allocation9 + $0x18] sm:$0xf]  ;;  %v6031_v8 = vld [vmem:[#allocation9 + $0x20] sm:$0xf0]  ;;  %v4843_v10 = vor.u32 %v6033_v2, %v4840_v3 }
  0x47   : > { %878 = vmatpush.bf16.msra.mxu2 %v5055_v46  ;;  %892 = vmatpush.bf16.msra.mxu3 %v4867_v50  ;;  %v5031_v6 = vor.u32 %v6082_v1, %v5030_v0  ;;  %v4922_v9 = vld [vmem:[#allocation9 + $0xd8] sm:$0xf]  ;;  %v6055_v11 = vld [vmem:[#allocation9 + $0xe0] sm:$0xf0]  ;;  %v6030_v14 = vld [vmem:[#allocation9 + $0x1c] sm:$0xf]  ;;  %v4827_v16 = vor.u32 %v6031_v8, %v4826_v7 }
  0x48   : > { %v5018_v12 = vld [vmem:[#allocation9 + $0x198] sm:$0xf]  ;;  %v6079_v13 = vld [vmem:[#allocation9 + $0x1a0] sm:$0xf0]  ;;  %v4828_v15 = vld [vmem:[#allocation9 + $0x24] sm:$0xf0]  ;;  %v4923_v19 = vor.u32 %v6055_v11, %v4922_v9 }
  0x49   : > { %851 = vmatpush.bf16.msra.mxu0 %v4851_v56  ;;  %v4814_v17 = vld [vmem:[#allocation9] sm:$0xf]  ;;  %v6028_v18 = vld [vmem:[#allocation9 + $0x8] sm:$0xf0]  ;;  %v5019_v20 = vor.u32 %v6079_v13, %v5018_v12  ;;  %v4831_v24 = vor.u32 %v6030_v14, %v4828_v15  ;;  %v6027_v26 = vld [vmem:[#allocation9 + $0x4] sm:$0xf] }
  0x4a   : > { %865 = vmatpush.bf16.msra.mxu1 %v4947_v57  ;;  %v4910_v21 = vld [vmem:[#allocation9 + $0xc0] sm:$0xf]  ;;  %v6052_v22 = vld [vmem:[#allocation9 + $0xc8] sm:$0xf0]  ;;  %v4816_v27 = vld [vmem:[#allocation9 + $0xc] sm:$0xf0]  ;;  %v4815_v31 = vor.u32 %v6028_v18, %v4814_v17 }
  0x4b   : > { %879 = vmatpush.bf16.msra.mxu2 %v5043_v58  ;;  %893 = vmatpush.bf16.msra.mxu3 %v4855_v62  ;;  %v5006_v23 = vld [vmem:[#allocation9 + $0x180] sm:$0xf]  ;;  %v6076_v25 = vld [vmem:[#allocation9 + $0x188] sm:$0xf0]  ;;  %v4996_v29 = vld [vmem:[#allocation9 + $0x174] sm:$0xf0]  ;;  %v4911_v35 = vor.u32 %v6052_v22, %v4910_v21  ;;  %v4819_v39 = vor.u32 %v6027_v26, %v4816_v27 }
  0x4c   : > { %v6072_v28 = vld [vmem:[#allocation9 + $0x16c] sm:$0xf]  ;;  %v5092_v32 = vld [vmem:[#allocation9 + $0x234] sm:$0xf0]  ;;  %v4906_v33 = vld [vmem:[#allocation9 + $0xb0] sm:$0xf]  ;;  %v5007_v36 = vor.u32 %v6076_v25, %v5006_v23 }
  0x4d   : > { %852 = vmatpush.bf16.msra.mxu0 %v4839_v4  ;;  %v6096_v30 = vld [vmem:[#allocation9 + $0x22c] sm:$0xf]  ;;  %v6050_v34 = vld [vmem:[#allocation9 + $0xb8] sm:$0xf0]  ;;  %v5002_v37 = vld [vmem:[#allocation9 + $0x170] sm:$0xf]  ;;  %v4999_v40 = vor.u32 %v6072_v28, %v4996_v29 }
  0x4e   : > { %866 = vmatpush.bf16.msra.mxu1 %v4935_v5  ;;  %v6074_v38 = vld [vmem:[#allocation9 + $0x178] sm:$0xf0]  ;;  %v6069_v41 = vld [vmem:[#allocation9 + $0x154] sm:$0xf]  ;;  %v5095_v42 = vor.u32 %v6096_v30, %v5092_v32  ;;  %v4907_v43 = vor.u32 %v6050_v34, %v4906_v33  ;;  %v4984_v44 = vld [vmem:[#allocation9 + $0x15c] sm:$0xf0] }
  0x4f   : > { %880 = vmatpush.bf16.msra.mxu2 %v5031_v6  ;;  %894 = vmatpush.bf16.msra.mxu3 %v4843_v10  ;;  %v6093_v45 = vld [vmem:[#allocation9 + $0x214] sm:$0xf]  ;;  %v5080_v46 = vld [vmem:[#allocation9 + $0x21c] sm:$0xf0]  ;;  %v5003_v47 = vor.u32 %v6074_v38, %v5002_v37  ;;  %v4894_v48 = vld [vmem:[#allocation9 + $0x98] sm:$0xf]  ;;  %v4987_v54 = vor.u32 %v6069_v41, %v4984_v44 }
  0x50   : > { %v6047_v49 = vld [vmem:[#allocation9 + $0xa0] sm:$0xf0]  ;;  %v4990_v50 = vld [vmem:[#allocation9 + $0x158] sm:$0xf]  ;;  %v6066_v55 = vld [vmem:[#allocation9 + $0x13c] sm:$0xf]  ;;  %v5083_v58 = vor.u32 %v6093_v45, %v5080_v46 }
  0x51   : > { %853 = vmatpush.bf16.msra.mxu0 %v4827_v16  ;;  %v6071_v51 = vld [vmem:[#allocation9 + $0x160] sm:$0xf0]  ;;  %v361_v53 = vld [vmem:[%s6903_s13 + $0x18] sm:$0xff]  ;;  %v4895_v59 = vor.u32 %v6047_v49, %v4894_v48  ;;  %v4882_v62 = vld [vmem:[#allocation9 + $0x80] sm:$0xf]  ;;  %s6742_s2 = smov 64  }
  0x52   : > { %867 = vmatpush.bf16.msra.mxu1 %v4923_v19  ;;  %v358_v52 = vld [vmem:[%s6903_s13] sm:$0xff]  ;;  %v4972_v56 = vld [vmem:[#allocation9 + $0x144] sm:$0xf0]  ;;  %v6090_v60 = vld [vmem:[#allocation9 + $0x1fc] sm:$0xf]  ;;  %v4991_v63 = vor.u32 %v6071_v51, %v4990_v50  ;;  %vm1644_vm0 = vcmask 1047556  }
  0x53   : > { %881 = vmatpush.bf16.msra.mxu2 %v5019_v20  ;;  %895 = vmatpush.bf16.msra.mxu3 %v4831_v24  ;;  %v6919_v57 = vpack.c.bf16 %v361_v53, %v358_v52  ;;  %v5068_v61 = vld [vmem:[#allocation9 + $0x204] sm:$0xf0]  ;;  %v6044_v0 = vld [vmem:[#allocation9 + $0x88] sm:$0xf0]  ;;  %v362_v2 = vld [vmem:[%s6903_s13 + $0x20] sm:$0xff]  ;;  %v4975_v6 = vor.u32 %v6066_v55, %v4972_v56  ;;  %vm1900_vm1 = vcmask 519168  }
  0x54   : > { %v359_v1 = vld [vmem:[%s6903_s13 + $0x8] sm:$0xff]  ;;  %v4978_v3 = vld [vmem:[#allocation9 + $0x140] sm:$0xf]  ;;  %v6063_v7 = vld [vmem:[#allocation9 + $0x124] sm:$0xf]  ;;  %v5071_v9 = vor.u32 %v6090_v60, %v5068_v61  ;;  %v4883_v10 = vor.u32 %v6044_v0, %v4882_v62  ;;  %vm3213_vm2 = vcmask 523264  }
  0x55   : > { %854 = vmatpush.bf16.msra.mxu0 %v4815_v31  ;;  %v6068_v4 = vld [vmem:[#allocation9 + $0x148] sm:$0xf0]  ;;  %v6924_v5 = vpack.c.bf16 %v362_v2, %v359_v1  ;;  %v4960_v8 = vld [vmem:[#allocation9 + $0x12c] sm:$0xf0]  ;;  %v6087_v11 = vld [vmem:[#allocation9 + $0x1e4] sm:$0xf] }
  0x56   : > { %868 = vmatpush.bf16.msra.mxu1 %v4911_v35  ;;  %v5056_v12 = vld [vmem:[#allocation9 + $0x1ec] sm:$0xf0]  ;;  %v4979_v14 = vor.u32 %v6068_v4, %v4978_v3  ;;  %v4870_v15 = vld [vmem:[#allocation9 + $0x68] sm:$0xf]  ;;  %v6041_v16 = vld [vmem:[#allocation9 + $0x70] sm:$0xf0]  ;;  %v4963_v21 = vor.u32 %v6063_v7, %v4960_v8 }
  0x57   : > { %882 = vmatpush.bf16.msra.mxu2 %v5007_v36  ;;  %896 = vmatpush.bf16.msra.mxu3 %v4819_v39  ;;  %v360_v13 = vld [vmem:[%s6903_s13 + $0x10] sm:$0xff]  ;;  %v363_v17 = vld [vmem:[%s6903_s13 + $0x28] sm:$0xff]  ;;  %v5059_v22 = vor.u32 %v6087_v11, %v5056_v12  ;;  %v4871_v23 = vor.u32 %v6041_v16, %v4870_v15  ;;  %vm3374_vm4 = vcmask 130048   ;;  %s7618_s7 = scalar_lea.vmem [#allocation13], %s6329_s10  ;;  %s6330_s12 = smul.u32 48, %s6724_s24 }
  0x58   : > { %855 = vmatmul.bf16.vlgmr.msra.gmra.mxu0 %v6919_v57  ;;  %v4966_v18 = vld [vmem:[#allocation9 + $0x128] sm:$0xf]  ;;  %v6065_v19 = vld [vmem:[#allocation9 + $0x130] sm:$0xf0]  ;;  %v6930_v20 = vpack.c.bf16 %v363_v17, %v360_v13  ;;  %v6060_v24 = vld [vmem:[#allocation9 + $0x10c] sm:$0xf] }
  0x59   : > { %903 = vmatpush.bf16.msrb.mxu0 %v4999_v40  ;;  %869 = vmatmul.bf16.vlgmr.msra.gmra.mxu1 %v6924_v5  ;;  %v4948_v25 = vld [vmem:[#allocation9 + $0x114] sm:$0xf0]  ;;  %v6084_v26 = vld [vmem:[#allocation9 + $0x1cc] sm:$0xf]  ;;  %v4967_v27 = vor.u32 %v6065_v19, %v4966_v18  ;;  %v4858_v29 = vld [vmem:[#allocation9 + $0x50] sm:$0xf]  ;;  %s4670_s17 = scalar_lea.hbm %s7671_s6, %s6330_s12 }
  0x5a   : > { %917 = vmatpush.bf16.msrb.mxu1 %v5095_v42  ;;  %897 = vmatmul.bf16.vlgmr.msra.gmra.mxu3 %v6919_v57  ;;  %v5044_v28 = vld [vmem:[#allocation9 + $0x1d4] sm:$0xf0]  ;;  %v6038_v30 = vld [vmem:[#allocation9 + $0x58] sm:$0xf0]  ;;  %v4954_v31 = vld [vmem:[#allocation9 + $0x110] sm:$0xf]  ;;  %v4951_v33 = vor.u32 %v6060_v24, %v4948_v25 }
  0x5b   : > { %931 = vmatpush.bf16.msrb.mxu2 %v4907_v43  ;;  %945 = vmatpush.bf16.msrb.mxu3 %v5003_v47  ;;  %v6062_v32 = vld [vmem:[#allocation9 + $0x118] sm:$0xf0]  ;;  %v5047_v34 = vor.u32 %v6084_v26, %v5044_v28  ;;  %v4859_v35 = vor.u32 %v6038_v30, %v4858_v29  ;;  %v6057_v36 = vld [vmem:[#allocation9 + $0xf4] sm:$0xf]  ;;  %v4936_v37 = vld [vmem:[#allocation9 + $0xfc] sm:$0xf0] }
  0x5c   : > { %883 = vmatmul.bf16.vlgmr.msra.gmra.mxu2 %v6930_v20  ;;  %v6081_v38 = vld [vmem:[#allocation9 + $0x1b4] sm:$0xf]  ;;  %v4955_v39 = vor.u32 %v6062_v32, %v4954_v31  ;;  %v5032_v40 = vld [vmem:[#allocation9 + $0x1bc] sm:$0xf0]  ;;  %v4846_v41 = vld [vmem:[#allocation9 + $0x38] sm:$0xf]  ;;  %v4939_v45 = vor.u32 %v6057_v36, %v4936_v37 }
  0x5d   : > { %904 = vmatpush.bf16.msrb.mxu0 %v4987_v54  ;;  %v6035_v42 = vld [vmem:[#allocation9 + $0x40] sm:$0xf0]  ;;  %v4942_v43 = vld [vmem:[#allocation9 + $0xf8] sm:$0xf]  ;;  %v5035_v46 = vor.u32 %v6081_v38, %v5032_v40  ;;  %v6054_v48 = vld [vmem:[#allocation9 + $0xdc] sm:$0xf] }
  0x5e   : > { %918 = vmatpush.bf16.msrb.mxu1 %v5083_v58  ;;  %v6059_v44 = vld [vmem:[#allocation9 + $0x100] sm:$0xf0]  ;;  %v4847_v47 = vor.u32 %v6035_v42, %v4846_v41  ;;  %v4924_v49 = vld [vmem:[#allocation9 + $0xe4] sm:$0xf0]  ;;  %v6078_v50 = vld [vmem:[#allocation9 + $0x19c] sm:$0xf] }
  0x5f   : > { %932 = vmatpush.bf16.msrb.mxu2 %v4895_v59  ;;  %946 = vmatpush.bf16.msrb.mxu3 %v4991_v63  ;;  %v4943_v51 = vor.u32 %v6059_v44, %v4942_v43  ;;  %v5020_v52 = vld [vmem:[#allocation9 + $0x1a4] sm:$0xf0]  ;;  %v4834_v53 = vld [vmem:[#allocation9 + $0x20] sm:$0xf]  ;;  %v6032_v54 = vld [vmem:[#allocation9 + $0x28] sm:$0xf0]  ;;  %v4927_v58 = vor.u32 %v6054_v48, %v4924_v49 }
  0x60   : > { %v4930_v55 = vld [vmem:[#allocation9 + $0xe0] sm:$0xf]  ;;  %v6056_v56 = vld [vmem:[#allocation9 + $0xe8] sm:$0xf0]  ;;  %v6051_v59 = vld [vmem:[#allocation9 + $0xc4] sm:$0xf]  ;;  %v5023_v61 = vor.u32 %v6078_v50, %v5020_v52  ;;  %v4835_v62 = vor.u32 %v6032_v54, %v4834_v53 }
  0x61   : > { %905 = vmatpush.bf16.msrb.mxu0 %v4975_v6  ;;  %v4912_v60 = vld [vmem:[#allocation9 + $0xcc] sm:$0xf0]  ;;  %v6075_v63 = vld [vmem:[#allocation9 + $0x184] sm:$0xf]  ;;  %v4822_v1 = vld [vmem:[#allocation9 + $0x8] sm:$0xf]  ;;  %v4931_v2 = vor.u32 %v6056_v56, %v4930_v55 }
  0x62   : > { %919 = vmatpush.bf16.msrb.mxu1 %v5071_v9  ;;  %v5008_v0 = vld [vmem:[#allocation9 + $0x18c] sm:$0xf0]  ;;  %v6029_v3 = vld [vmem:[#allocation9 + $0x10] sm:$0xf0]  ;;  %v4918_v4 = vld [vmem:[#allocation9 + $0xc8] sm:$0xf] }
  0x63   : > { %933 = vmatpush.bf16.msrb.mxu2 %v4883_v10  ;;  %947 = vmatpush.bf16.msrb.mxu3 %v4979_v14  ;;  %v6053_v6 = vld [vmem:[#allocation9 + $0xd0] sm:$0xf0]  ;;  %v5098_v7 = vld [vmem:[#allocation9 + $0x230] sm:$0xf]  ;;  %v6098_v8 = vld [vmem:[#allocation9 + $0x238] sm:$0xf0]  ;;  %v4915_v10 = vor.u32 %v6051_v59, %v4912_v60  ;;  %v5011_v14 = vor.u32 %v6075_v63, %v5008_v0  ;;  %v4823_v15 = vor.u32 %v6029_v3, %v4822_v1 }
  0x64   : > { %v5186_v9 = vld [vmem:[#allocation10 + $0xa8] sm:$0xf]  ;;  %v6121_v11 = vld [vmem:[#allocation10 + $0xb0] sm:$0xf0]  ;;  %v4919_v18 = vor.u32 %v6053_v6, %v4918_v4  ;;  %v5099_v19 = vor.u32 %v6098_v8, %v5098_v7  ;;  %v6095_v24 = vld [vmem:[#allocation9 + $0x220] sm:$0xf0] }
  0x65   : > { %906 = vmatpush.bf16.msrb.mxu0 %v4963_v21  ;;  %v5282_v12 = vld [vmem:[#allocation10 + $0x168] sm:$0xf]  ;;  %v6145_v13 = vld [vmem:[#allocation10 + $0x170] sm:$0xf0]  ;;  %v5187_v21 = vor.u32 %v6121_v11, %v5186_v9  ;;  %v5174_v25 = vld [vmem:[#allocation10 + $0x90] sm:$0xf] }
  0x66   : > { %920 = vmatpush.bf16.msrb.mxu1 %v5059_v22  ;;  %v5378_v16 = vld [vmem:[#allocation10 + $0x228] sm:$0xf]  ;;  %v6169_v17 = vld [vmem:[#allocation10 + $0x230] sm:$0xf0]  ;;  %v5283_v22 = vor.u32 %v6145_v13, %v5282_v12  ;;  %v5270_v28 = vld [vmem:[#allocation10 + $0x150] sm:$0xf] }
  0x67   : > { %934 = vmatpush.bf16.msrb.mxu2 %v4871_v23  ;;  %948 = vmatpush.bf16.msrb.mxu3 %v4967_v27  ;;  %v5086_v23 = vld [vmem:[#allocation9 + $0x218] sm:$0xf]  ;;  %v5379_v26 = vor.u32 %v6169_v17, %v5378_v16  ;;  %v6118_v27 = vld [vmem:[#allocation10 + $0x98] sm:$0xf0]  ;;  %v5366_v30 = vld [vmem:[#allocation10 + $0x210] sm:$0xf] }
  0x68   : > { %v6142_v29 = vld [vmem:[#allocation10 + $0x158] sm:$0xf0]  ;;  %v5087_v32 = vor.u32 %v6095_v24, %v5086_v23  ;;  %v6092_v36 = vld [vmem:[#allocation9 + $0x208] sm:$0xf0]  ;;  %v5162_v37 = vld [vmem:[#allocation10 + $0x78] sm:$0xf] }
  0x69   : > { %907 = vmatpush.bf16.msrb.mxu0 %v4951_v33  ;;  %v6166_v31 = vld [vmem:[#allocation10 + $0x218] sm:$0xf0]  ;;  %v5175_v33 = vor.u32 %v6118_v27, %v5174_v25  ;;  %v5258_v40 = vld [vmem:[#allocation10 + $0x138] sm:$0xf]  ;;  %v6139_v41 = vld [vmem:[#allocation10 + $0x140] sm:$0xf0] }
  0x6a   : > { %921 = vmatpush.bf16.msrb.mxu1 %v5047_v34  ;;  %v5271_v34 = vor.u32 %v6142_v29, %v5270_v28  ;;  %v5367_v38 = vor.u32 %v6166_v31, %v5366_v30  ;;  %v5354_v42 = vld [vmem:[#allocation10 + $0x1f8] sm:$0xf]  ;;  %v6163_v43 = vld [vmem:[#allocation10 + $0x200] sm:$0xf0]  ;;  %v6089_v48 = vld [vmem:[#allocation9 + $0x1f0] sm:$0xf0] }
  0x6b   : > { %935 = vmatpush.bf16.msrb.mxu2 %v4859_v35  ;;  %949 = vmatpush.bf16.msrb.mxu3 %v4955_v39  ;;  %v5074_v35 = vld [vmem:[#allocation9 + $0x200] sm:$0xf]  ;;  %v6115_v39 = vld [vmem:[#allocation10 + $0x80] sm:$0xf0]  ;;  %v5355_v50 = vor.u32 %v6163_v43, %v5354_v42  ;;  %v6136_v53 = vld [vmem:[#allocation10 + $0x128] sm:$0xf0] }
  0x6c   : > { %v5075_v44 = vor.u32 %v6092_v36, %v5074_v35  ;;  %v5150_v49 = vld [vmem:[#allocation10 + $0x60] sm:$0xf]  ;;  %v6160_v55 = vld [vmem:[#allocation10 + $0x1e8] sm:$0xf0]  ;;  %v5050_v60 = vld [vmem:[#allocation9 + $0x1d0] sm:$0xf] }
  0x6d   : > { %908 = vmatpush.bf16.msrb.mxu0 %v4939_v45  ;;  %v5163_v45 = vor.u32 %v6115_v39, %v5162_v37  ;;  %v5246_v52 = vld [vmem:[#allocation10 + $0x120] sm:$0xf]  ;;  %v6109_v0 = vld [vmem:[#allocation10 + $0x50] sm:$0xf0]  ;;  %v5234_v1 = vld [vmem:[#allocation10 + $0x108] sm:$0xf] }
  0x6e   : > { %922 = vmatpush.bf16.msrb.mxu1 %v5035_v46  ;;  %v5259_v46 = vor.u32 %v6139_v41, %v5258_v40  ;;  %v5342_v54 = vld [vmem:[#allocation10 + $0x1e0] sm:$0xf]  ;;  %v5247_v59 = vor.u32 %v6136_v53, %v5246_v52  ;;  %v5330_v3 = vld [vmem:[#allocation10 + $0x1c8] sm:$0xf]  ;;  %v6157_v4 = vld [vmem:[#allocation10 + $0x1d0] sm:$0xf0] }
  0x6f   : > { %936 = vmatpush.bf16.msrb.mxu2 %v4847_v47  ;;  %950 = vmatpush.bf16.msrb.mxu3 %v4943_v51  ;;  %v5062_v47 = vld [vmem:[#allocation9 + $0x1e8] sm:$0xf]  ;;  %v6112_v51 = vld [vmem:[#allocation10 + $0x68] sm:$0xf0]  ;;  %v5343_v63 = vor.u32 %v6160_v55, %v5342_v54  ;;  %v5038_v9 = vld [vmem:[#allocation9 + $0x1b8] sm:$0xf]  ;;  %v5331_v12 = vor.u32 %v6157_v4, %v5330_v3 }
  0x70   : > { %v5063_v56 = vor.u32 %v6089_v48, %v5062_v47  ;;  %v5126_v11 = vld [vmem:[#allocation10 + $0x30] sm:$0xf]  ;;  %v6106_v13 = vld [vmem:[#allocation10 + $0x38] sm:$0xf0]  ;;  %v6080_v23 = vld [vmem:[#allocation9 + $0x1a8] sm:$0xf0] }
  0x71   : > { %909 = vmatpush.bf16.msrb.mxu0 %v4927_v58  ;;  %v5151_v58 = vor.u32 %v6112_v51, %v5150_v49  ;;  %v5318_v16 = vld [vmem:[#allocation10 + $0x1b0] sm:$0xf]  ;;  %v6154_v17 = vld [vmem:[#allocation10 + $0x1b8] sm:$0xf0]  ;;  %v5114_v24 = vld [vmem:[#allocation10 + $0x18] sm:$0xf] }
  0x72   : > { %923 = vmatpush.bf16.msrb.mxu1 %v5023_v61  ;;  %v6086_v61 = vld [vmem:[#allocation9 + $0x1d8] sm:$0xf0]  ;;  %v5319_v25 = vor.u32 %v6154_v17, %v5318_v16  ;;  %v5210_v27 = vld [vmem:[#allocation10 + $0xd8] sm:$0xf]  ;;  %v6127_v28 = vld [vmem:[#allocation10 + $0xe0] sm:$0xf0] }
  0x73   : > { %937 = vmatpush.bf16.msrb.mxu2 %v4835_v62  ;;  %951 = vmatpush.bf16.msrb.mxu3 %v4931_v2  ;;  %v5138_v62 = vld [vmem:[#allocation10 + $0x48] sm:$0xf]  ;;  %v6133_v2 = vld [vmem:[#allocation10 + $0x110] sm:$0xf0]  ;;  %v5051_v6 = vor.u32 %v6086_v61, %v5050_v60  ;;  %v5306_v29 = vld [vmem:[#allocation10 + $0x198] sm:$0xf]  ;;  %v5211_v35 = vor.u32 %v6127_v28, %v5210_v27 }
  0x74   : > { %v5139_v7 = vor.u32 %v6109_v0, %v5138_v62  ;;  %v5235_v8 = vor.u32 %v6133_v2, %v5234_v1  ;;  %v6151_v30 = vld [vmem:[#allocation10 + $0x1a0] sm:$0xf0]  ;;  %v5102_v36 = vld [vmem:[#allocation10] sm:$0xf]  ;;  %v6100_v37 = vld [vmem:[#allocation10 + $0x8] sm:$0xf0] }
  0x75   : > { %910 = vmatpush.bf16.msrb.mxu0 %v4915_v10  ;;  %v6083_v10 = vld [vmem:[#allocation9 + $0x1c0] sm:$0xf0]  ;;  %v5307_v39 = vor.u32 %v6151_v30, %v5306_v29  ;;  %v6124_v40 = vld [vmem:[#allocation10 + $0xc8] sm:$0xf0]  ;;  %v5294_v41 = vld [vmem:[#allocation10 + $0x180] sm:$0xf] }
  0x76   : > { %924 = vmatpush.bf16.msrb.mxu1 %v5011_v14  ;;  %v5222_v14 = vld [vmem:[#allocation10 + $0xf0] sm:$0xf]  ;;  %v6148_v42 = vld [vmem:[#allocation10 + $0x188] sm:$0xf0]  ;;  %v5284_v47 = vld [vmem:[#allocation10 + $0x174] sm:$0xf0] }
  0x77   : > { %938 = vmatpush.bf16.msrb.mxu2 %v4823_v15  ;;  %952 = vmatpush.bf16.msrb.mxu3 %v4919_v18  ;;  %v6130_v15 = vld [vmem:[#allocation10 + $0xf8] sm:$0xf0]  ;;  %v5039_v18 = vor.u32 %v6083_v10, %v5038_v9  ;;  %v6120_v43 = vld [vmem:[#allocation10 + $0xac] sm:$0xf]  ;;  %v5380_v49 = vld [vmem:[#allocation10 + $0x234] sm:$0xf0]  ;;  %v5295_v54 = vor.u32 %v6148_v42, %v5294_v41 }
  0x78   : > { %911 = vmatmul.bf16.vlgmr.msrb.gmra.mxu0 %v6924_v5  ;;  %v6168_v48 = vld [vmem:[#allocation10 + $0x22c] sm:$0xf]  ;;  %v5194_v52 = vld [vmem:[#allocation10 + $0xb0] sm:$0xf]  ;;  %v6122_v53 = vld [vmem:[#allocation10 + $0xb8] sm:$0xf0] }
  0x79   : > { %959 = vmatpush.bf16.msra.mxu0 %v5099_v19  ;;  %925 = vmatmul.bf16.vlgmr.msrb.gmra.mxu1 %v6930_v20  ;;  %v5127_v19 = vor.u32 %v6106_v13, %v5126_v11  ;;  %v5176_v60 = vld [vmem:[#allocation10 + $0x9c] sm:$0xf0]  ;;  %v6141_v61 = vld [vmem:[#allocation10 + $0x154] sm:$0xf]  ;;  %v5195_v62 = vor.u32 %v6122_v53, %v5194_v52  ;;  %v5182_v2 = vld [vmem:[#allocation10 + $0x98] sm:$0xf] }
  0x7a   : > { %1453 = vmatpush.bf16.msra.mxu1 %v5187_v21  ;;  %939 = vmatmul.bf16.vlgmr.msrb.gmra.mxu2 %v6919_v57  ;;  %v5223_v21 = vor.u32 %v6130_v15, %v5222_v14  ;;  %v6165_v0 = vld [vmem:[#allocation10 + $0x214] sm:$0xf]  ;;  %v5368_v1 = vld [vmem:[#allocation10 + $0x21c] sm:$0xf0]  ;;  %v6119_v3 = vld [vmem:[#allocation10 + $0xa0] sm:$0xf0] }
  0x7b   : > { %1467 = vmatpush.bf16.msra.mxu2 %v5283_v22  ;;  %1481 = vmatpush.bf16.msra.mxu3 %v5379_v26  ;;  %v5026_v22 = vld [vmem:[#allocation9 + $0x1a0] sm:$0xf]  ;;  %v6103_v26 = vld [vmem:[#allocation10 + $0x20] sm:$0xf0]  ;;  %v5164_v9 = vld [vmem:[#allocation10 + $0x84] sm:$0xf0]  ;;  %v5183_v11 = vor.u32 %v6119_v3, %v5182_v2 }
  0x7c   : > { %953 = vmatmul.bf16.vlgmr.msrb.gmra.mxu3 %v6924_v5  ;;  %v5027_v31 = vor.u32 %v6080_v23, %v5026_v22  ;;  %v6138_v10 = vld [vmem:[#allocation10 + $0x13c] sm:$0xf]  ;;  %v5356_v14 = vld [vmem:[#allocation10 + $0x204] sm:$0xf0]  ;;  %v5170_v15 = vld [vmem:[#allocation10 + $0x80] sm:$0xf] }
  0x7d   : > { %960 = vmatpush.bf16.msra.mxu0 %v5087_v32  ;;  %v5014_v32 = vld [vmem:[#allocation9 + $0x188] sm:$0xf]  ;;  %v6162_v13 = vld [vmem:[#allocation10 + $0x1fc] sm:$0xf]  ;;  %v6116_v16 = vld [vmem:[#allocation10 + $0x88] sm:$0xf0] }
  0x7e   : > { %1454 = vmatpush.bf16.msra.mxu1 %v5175_v33  ;;  %v6077_v33 = vld [vmem:[#allocation9 + $0x190] sm:$0xf0]  ;;  %v5152_v22 = vld [vmem:[#allocation10 + $0x6c] sm:$0xf0]  ;;  %v6135_v23 = vld [vmem:[#allocation10 + $0x124] sm:$0xf] }
  0x7f   : > { %1468 = vmatpush.bf16.msra.mxu2 %v5271_v34  ;;  %1482 = vmatpush.bf16.msra.mxu3 %v5367_v38  ;;  %v5115_v34 = vor.u32 %v6103_v26, %v5114_v24  ;;  %v5198_v38 = vld [vmem:[#allocation10 + $0xc0] sm:$0xf]  ;;  %v5171_v24 = vor.u32 %v6116_v16, %v5170_v15  ;;  %v6159_v26 = vld [vmem:[#allocation10 + $0x1e4] sm:$0xf]  ;;  %v5344_v27 = vld [vmem:[#allocation10 + $0x1ec] sm:$0xf0] }
  0x80   : > { %v5199_v51 = vor.u32 %v6124_v40, %v5198_v38  ;;  %v5158_v28 = vld [vmem:[#allocation10 + $0x68] sm:$0xf]  ;;  %v6113_v29 = vld [vmem:[#allocation10 + $0x70] sm:$0xf0]  ;;  %v6156_v38 = vld [vmem:[#allocation10 + $0x1cc] sm:$0xf] }
  0x81   : > { %961 = vmatpush.bf16.msra.mxu0 %v5075_v44  ;;  %v5188_v44 = vld [vmem:[#allocation10 + $0xb4] sm:$0xf0]  ;;  %v5146_v40 = vld [vmem:[#allocation10 + $0x50] sm:$0xf]  ;;  %v6110_v41 = vld [vmem:[#allocation10 + $0x58] sm:$0xf0] }
  0x82   : > { %1455 = vmatpush.bf16.msra.mxu1 %v5163_v45  ;;  %v6144_v45 = vld [vmem:[#allocation10 + $0x16c] sm:$0xf]  ;;  %v5191_v55 = vor.u32 %v6120_v43, %v5188_v44  ;;  %v5134_v52 = vld [vmem:[#allocation10 + $0x38] sm:$0xf]  ;;  %v6107_v53 = vld [vmem:[#allocation10 + $0x40] sm:$0xf0] }
  0x83   : > { %1469 = vmatpush.bf16.msra.mxu2 %v5259_v46  ;;  %1483 = vmatpush.bf16.msra.mxu3 %v5355_v50  ;;  %v5015_v46 = vor.u32 %v6077_v33, %v5014_v32  ;;  %v5103_v50 = vor.u32 %v6100_v37, %v5102_v36  ;;  %v5347_v32 = vor.u32 %v6159_v26, %v5344_v27  ;;  %v6108_v33 = vld [vmem:[#allocation10 + $0x4c] sm:$0xf]  ;;  %v5236_v37 = vld [vmem:[#allocation10 + $0x114] sm:$0xf0]  ;;  %v6101_v15 = vld [vmem:[#allocation10 + $0x10] sm:$0xf0] }
  0x84   : > { %v5159_v36 = vor.u32 %v6113_v29, %v5158_v28  ;;  %v6104_v2 = vld [vmem:[#allocation10 + $0x28] sm:$0xf0]  ;;  %v5290_v16 = vld [vmem:[#allocation10 + $0x170] sm:$0xf]  ;;  %v5570_v26 = vld [vmem:[#allocation7 + $0x168] sm:$0xf] }
  0x85   : > { %962 = vmatpush.bf16.msra.mxu0 %v5063_v56  ;;  %v5287_v56 = vor.u32 %v6144_v45, %v5284_v47  ;;  %v6105_v45 = vld [vmem:[#allocation10 + $0x34] sm:$0xf]  ;;  %s4671_s11 = sshll.u32 %s7618_s7, 4  ;;  %s4673_s14 = sshll.u32 %s4670_s17, 4  ;;  %s4672_s11 = int_to_ptr.vmem [resolvable:$true] %s4671_s11  ;;  %s4674_s14 = int_to_ptr.hbm [resolvable:$true] %s4673_s14 }
  0x86   : > { %1456 = vmatpush.bf16.msra.mxu1 %v5151_v58  ;;  %v5383_v58 = vor.u32 %v6168_v48, %v5380_v49  ;;  %v6129_v47 = vld [vmem:[#allocation10 + $0xf4] sm:$0xf]  ;;  %v5147_v48 = vor.u32 %v6110_v41, %v5146_v40  ;;  %v5224_v49 = vld [vmem:[#allocation10 + $0xfc] sm:$0xf0]  ;;  %v6214_v40 = vld [vmem:[#allocation7 + $0x158] sm:$0xf0] }
  0x87   : > { %1470 = vmatpush.bf16.msra.mxu2 %v5247_v59  ;;  %1484 = vmatpush.bf16.msra.mxu3 %v5343_v63  ;;  %v6117_v59 = vld [vmem:[#allocation10 + $0x94] sm:$0xf]  ;;  %v5272_v63 = vld [vmem:[#allocation10 + $0x15c] sm:$0xf0]  ;;  %s4656_s24 = scalar_lea.sflag [#allocation6], %s6897_s28  ;;  %s6656_s27 = sshra.s32 %s4674_s14, 4  ;;  %s6657_s27 = int_to_ptr.hbm [resolvable:$true] %s6656_s27 }
  0x88   : > { %v5179_v4 = vor.u32 %v6117_v59, %v5176_v60  ;;  %v5116_v59 = vld [vmem:[#allocation10 + $0x24] sm:$0xf0]  ;;  %v6126_v60 = vld [vmem:[#allocation10 + $0xdc] sm:$0xf]  ;;  %v6217_v27 = vld [vmem:[#allocation7 + $0x170] sm:$0xf0]  ;;  %p6663_p8 = scmp.lt.s32.totalorder %s6657_s27, %s7671_s6 }
  0x89   : > { %963 = vmatpush.bf16.msra.mxu0 %v5051_v6  ;;  %v5275_v6 = vor.u32 %v6141_v61, %v5272_v63  ;;  %v5135_v61 = vor.u32 %v6107_v53, %v5134_v52  ;;  %v6150_v63 = vld [vmem:[#allocation10 + $0x19c] sm:$0xf]  ;;  %v6211_v52 = vld [vmem:[#allocation7 + $0x140] sm:$0xf0]  ;;  %s6658_s30 = scalar_lea.hbm %s6657_s27, 48  ;;  %s6662_s19 = scalar_lea.hbm %s7671_s6, 96 }
  0x8a   : > { %1457 = vmatpush.bf16.msra.mxu1 %v5139_v7  ;;  %v5371_v7 = vor.u32 %v6165_v0, %v5368_v1  ;;  %v5308_v0 = vld [vmem:[#allocation10 + $0x1a4] sm:$0xf0]  ;;  %v5122_v1 = vld [vmem:[#allocation10 + $0x20] sm:$0xf]  ;;  %p6659_p1 = scmp.ne.s32.totalorder %s6657_s27, %s6658_s30  ;;  %p6664_p12 = scmp.lt.s32.totalorder %s6662_s19, %s6658_s30 }
  0x8b   : > { %1471 = vmatpush.bf16.msra.mxu2 %v5235_v8  ;;  %1485 = vmatpush.bf16.msra.mxu3 %v5331_v12  ;;  %v6114_v8 = vld [vmem:[#allocation10 + $0x7c] sm:$0xf]  ;;  %v5260_v12 = vld [vmem:[#allocation10 + $0x144] sm:$0xf0] }
  0x8c   : > { %v5167_v17 = vor.u32 %v6114_v8, %v5164_v9  ;;  %v5311_v8 = vor.u32 %v6150_v63, %v5308_v0  ;;  %v6123_v9 = vld [vmem:[#allocation10 + $0xc4] sm:$0xf]  ;;  %v6184_v63 = vld [vmem:[#allocation7 + $0x68] sm:$0xf0]  ;;  %v5534_v0 = vld [vmem:[#allocation7 + $0x120] sm:$0xf]  ;;  %p6660_p2 = pnand %p6659_p1, %p6880_p7  ;;  %p6665_p13 = por %p6664_p12, %p6663_p8 }
  0x8d   : > { %964 = vmatpush.bf16.msra.mxu0 %v5039_v18  ;;  %v5263_v18 = vor.u32 %v6138_v10, %v5260_v12  ;;  %v5200_v10 = vld [vmem:[#allocation10 + $0xcc] sm:$0xf0]  ;;  %v5123_v12 = vor.u32 %v6104_v2, %v5122_v1  ;;  %v6208_v1 = vld [vmem:[#allocation7 + $0x128] sm:$0xf0] }
  0x8e   : > { %1458 = vmatpush.bf16.msra.mxu1 %v5127_v19  ;;  %v5359_v19 = vor.u32 %v6162_v13, %v5356_v14  ;;  %v5296_v13 = vld [vmem:[#allocation10 + $0x18c] sm:$0xf0]  ;;  %v5110_v14 = vld [vmem:[#allocation10 + $0x8] sm:$0xf]  ;;  %p6661_p4 = pneg %p6660_p2 }
  0x8f   : > { %1472 = vmatpush.bf16.msra.mxu2 %v5223_v21  ;;  %1486 = vmatpush.bf16.msra.mxu3 %v5319_v25  ;;  %v6111_v21 = vld [vmem:[#allocation10 + $0x64] sm:$0xf]  ;;  %v5248_v25 = vld [vmem:[#allocation10 + $0x12c] sm:$0xf0]  ;;  %v5111_v28 = vor.u32 %v6101_v15, %v5110_v14 }
  0x90   : > { %v5155_v30 = vor.u32 %v6111_v21, %v5152_v22  ;;  %v6170_v21 = vld [vmem:[#allocation10 + $0x238] sm:$0xf0]  ;;  %v5474_v22 = vld [vmem:[#allocation7 + $0xa8] sm:$0xf]  ;;  %p6666_p0 = pnand %p6665_p13, %p6661_p4 }
  0x91   : > { %965 = vmatpush.bf16.msra.mxu0 %v5027_v31  ;;  %v5251_v31 = vor.u32 %v6135_v23, %v5248_v25  ;;  %v6193_v23 = vld [vmem:[#allocation7 + $0xb0] sm:$0xf0] }
  0x92   : > { %1459 = vmatpush.bf16.msra.mxu1 %v5115_v34  ;;  %v5140_v34 = vld [vmem:[#allocation10 + $0x54] sm:$0xf0] }
  0x93   : > { %1473 = vmatpush.bf16.msra.mxu2 %v5211_v35  ;;  %1487 = vmatpush.bf16.msra.mxu3 %v5307_v39  ;;  %v6132_v35 = vld [vmem:[#allocation10 + $0x10c] sm:$0xf]  ;;  %v5332_v39 = vld [vmem:[#allocation10 + $0x1d4] sm:$0xf0]  ;;  %v5143_v42 = vor.u32 %v6108_v33, %v5140_v34  ;;  %v6143_v33 = vld [vmem:[#allocation10 + $0x160] sm:$0xf0] }
  0x94   : > { %v5239_v43 = vor.u32 %v6132_v35, %v5236_v37  ;;  %v5335_v44 = vor.u32 %v6156_v38, %v5332_v39  ;;  %v5374_v34 = vld [vmem:[#allocation10 + $0x218] sm:$0xf]  ;;  %v5571_v35 = vor.u32 %v6217_v27, %v5570_v26  ;;  %v5462_v37 = vld [vmem:[#allocation7 + $0x90] sm:$0xf]  ;;  %v6190_v38 = vld [vmem:[#allocation7 + $0x98] sm:$0xf0] }
  0x95   : > { %966 = vmatpush.bf16.msra.mxu0 %v5015_v46  ;;  %v5128_v46 = vld [vmem:[#allocation10 + $0x3c] sm:$0xf0]  ;;  %v5558_v39 = vld [vmem:[#allocation7 + $0x150] sm:$0xf]  ;;  %v6202_v26 = vld [vmem:[#allocation7 + $0xf8] sm:$0xf0] }
  0x96   : > { %1460 = vmatpush.bf16.msra.mxu1 %v5103_v50  ;;  %v6153_v50 = vld [vmem:[#allocation10 + $0x1b4] sm:$0xf] }
  0x97   : > { %1474 = vmatpush.bf16.msra.mxu2 %v5199_v51  ;;  %1488 = vmatpush.bf16.msra.mxu3 %v5295_v54  ;;  %v5320_v51 = vld [vmem:[#allocation10 + $0x1bc] sm:$0xf0]  ;;  %v5131_v54 = vor.u32 %v6105_v45, %v5128_v46  ;;  %v6140_v45 = vld [vmem:[#allocation10 + $0x148] sm:$0xf0] }
  0x98   : > { %967 = vmatmul.bf16.vlgmr.msra.gmra.mxu0 %v6930_v20  ;;  %v5362_v46 = vld [vmem:[#allocation10 + $0x200] sm:$0xf] }
  0x99   : > { %1495 = vmatpush.bf16.msrb.mxu0 %v5191_v55  ;;  %1461 = vmatmul.bf16.vlgmr.msra.gmra.mxu1 %v6919_v57  ;;  %v5227_v55 = vor.u32 %v6129_v47, %v5224_v49  ;;  %v5559_v47 = vor.u32 %v6214_v40, %v5558_v39  ;;  %v5450_v49 = vld [vmem:[#allocation7 + $0x78] sm:$0xf]  ;;  %v5206_v40 = vld [vmem:[#allocation10 + $0xc8] sm:$0xf] }
  0x9a   : > { %1509 = vmatpush.bf16.msrb.mxu1 %v5287_v56  ;;  %1475 = vmatmul.bf16.vlgmr.msra.gmra.mxu2 %v6924_v5  ;;  %v5323_v56 = vor.u32 %v6153_v50, %v5320_v51  ;;  %v6187_v50 = vld [vmem:[#allocation7 + $0x80] sm:$0xf0]  ;;  %v5546_v51 = vld [vmem:[#allocation7 + $0x138] sm:$0xf] }
  0x9b   : > { %1523 = vmatpush.bf16.msrb.mxu2 %v5383_v58  ;;  %1537 = vmatpush.bf16.msrb.mxu3 %v5195_v62  ;;  %v6102_v58 = vld [vmem:[#allocation10 + $0x1c] sm:$0xf]  ;;  %v5212_v62 = vld [vmem:[#allocation10 + $0xe4] sm:$0xf0] }
  0x9c   : > { %1489 = vmatmul.bf16.vlgmr.msra.gmra.mxu3 %v6930_v20  ;;  %v5119_v3 = vor.u32 %v6102_v58, %v5116_v59  ;;  %v6137_v58 = vld [vmem:[#allocation10 + $0x130] sm:$0xf0]  ;;  %v5350_v59 = vld [vmem:[#allocation10 + $0x1e8] sm:$0xf] }
  0x9d   : > { %1496 = vmatpush.bf16.msrb.mxu0 %v5179_v4  ;;  %v6099_v4 = vld [vmem:[#allocation10 + $0x4] sm:$0xf] }
  0x9e   : > { %1510 = vmatpush.bf16.msrb.mxu1 %v5275_v6  ;;  %v5104_v6 = vld [vmem:[#allocation10 + $0xc] sm:$0xf0] }
  0x9f   : > { %1524 = vmatpush.bf16.msrb.mxu2 %v5371_v7  ;;  %1538 = vmatpush.bf16.msrb.mxu3 %v5183_v11  ;;  %v5215_v7 = vor.u32 %v6126_v60, %v5212_v62  ;;  %v6147_v11 = vld [vmem:[#allocation10 + $0x184] sm:$0xf]  ;;  %v5547_v60 = vor.u32 %v6211_v52, %v5546_v51  ;;  %v5438_v62 = vld [vmem:[#allocation7 + $0x60] sm:$0xf]  ;;  %v5666_v51 = vld [vmem:[#allocation7 + $0x228] sm:$0xf] }
  0xa0   : > { %v5299_v25 = vor.u32 %v6147_v11, %v5296_v13  ;;  %v6181_v11 = vld [vmem:[#allocation7 + $0x50] sm:$0xf0] }
  0xa1   : > { %1497 = vmatpush.bf16.msrb.mxu0 %v5167_v17  ;;  %v6146_v17 = vld [vmem:[#allocation10 + $0x178] sm:$0xf0]  ;;  %v6205_v13 = vld [vmem:[#allocation7 + $0x110] sm:$0xf0] }
  0xa2   : > { %1511 = vmatpush.bf16.msrb.mxu1 %v5263_v18  ;;  %v5386_v18 = vld [vmem:[#allocation10 + $0x230] sm:$0xf]  ;;  %v5291_v29 = vor.u32 %v6146_v17, %v5290_v16  ;;  %v5230_v17 = vld [vmem:[#allocation10 + $0xf8] sm:$0xf]  ;;  %v6241_v52 = vld [vmem:[#allocation7 + $0x230] sm:$0xf0] }
  0xa3   : > { %1525 = vmatpush.bf16.msrb.mxu2 %v5359_v19  ;;  %1539 = vmatpush.bf16.msrb.mxu3 %v5171_v24  ;;  %v5107_v19 = vor.u32 %v6099_v4, %v5104_v6  ;;  %v5203_v24 = vor.u32 %v6123_v9, %v5200_v10  ;;  %v5242_v4 = vld [vmem:[#allocation10 + $0x110] sm:$0xf]  ;;  %v6134_v6 = vld [vmem:[#allocation10 + $0x118] sm:$0xf0]  ;;  %v5426_v10 = vld [vmem:[#allocation7 + $0x48] sm:$0xf] }
  0xa4   : > { %v6158_v9 = vld [vmem:[#allocation10 + $0x1d8] sm:$0xf0]  ;;  %v5243_v14 = vor.u32 %v6134_v6, %v5242_v4  ;;  %v5427_v16 = vor.u32 %v6181_v11, %v5426_v10  ;;  %v5654_v4 = vld [vmem:[#allocation7 + $0x210] sm:$0xf]  ;;  %v6213_v10 = vld [vmem:[#allocation7 + $0x154] sm:$0xf] }
  0xa5   : > { %1498 = vmatpush.bf16.msrb.mxu0 %v5155_v30  ;;  %v5387_v30 = vor.u32 %v6170_v21, %v5386_v18  ;;  %v6131_v18 = vld [vmem:[#allocation10 + $0x100] sm:$0xf0]  ;;  %v6238_v6 = vld [vmem:[#allocation7 + $0x218] sm:$0xf0]  ;;  %v5560_v11 = vld [vmem:[#allocation7 + $0x15c] sm:$0xf0] }
  0xa6   : > { %1512 = vmatpush.bf16.msrb.mxu1 %v5251_v31  ;;  %v5475_v31 = vor.u32 %v6193_v23, %v5474_v22  ;;  %v6155_v22 = vld [vmem:[#allocation10 + $0x1c0] sm:$0xf0]  ;;  %v5414_v23 = vld [vmem:[#allocation7 + $0x30] sm:$0xf]  ;;  %v5231_v27 = vor.u32 %v6131_v18, %v5230_v17  ;;  %v5563_v17 = vor.u32 %v6213_v10, %v5560_v11  ;;  %v5642_v18 = vld [vmem:[#allocation7 + $0x1f8] sm:$0xf] }
  0xa7   : > { %1526 = vmatpush.bf16.msrb.mxu2 %v5347_v32  ;;  %1540 = vmatpush.bf16.msrb.mxu3 %v5159_v36  ;;  %v5278_v32 = vld [vmem:[#allocation10 + $0x158] sm:$0xf]  ;;  %v6167_v36 = vld [vmem:[#allocation10 + $0x220] sm:$0xf0]  ;;  %v5500_v10 = vld [vmem:[#allocation7 + $0xe4] sm:$0xf0] }
  0xa8   : > { %v5279_v41 = vor.u32 %v6143_v33, %v5278_v32  ;;  %v5314_v32 = vld [vmem:[#allocation10 + $0x1a0] sm:$0xf] }
  0xa9   : > { %1499 = vmatpush.bf16.msrb.mxu0 %v5143_v42  ;;  %v5375_v42 = vor.u32 %v6167_v36, %v5374_v34  ;;  %v6152_v34 = vld [vmem:[#allocation10 + $0x1a8] sm:$0xf0]  ;;  %v6175_v36 = vld [vmem:[#allocation7 + $0x20] sm:$0xf0] }
  0xaa   : > { %1513 = vmatpush.bf16.msrb.mxu1 %v5239_v43  ;;  %v5463_v43 = vor.u32 %v6190_v38, %v5462_v37  ;;  %v5498_v37 = vld [vmem:[#allocation7 + $0xd8] sm:$0xf]  ;;  %v6199_v38 = vld [vmem:[#allocation7 + $0xe0] sm:$0xf0] }
  0xab   : > { %1527 = vmatpush.bf16.msrb.mxu2 %v5335_v44  ;;  %1541 = vmatpush.bf16.msrb.mxu3 %v5147_v48  ;;  %v5266_v44 = vld [vmem:[#allocation10 + $0x140] sm:$0xf]  ;;  %v6164_v48 = vld [vmem:[#allocation10 + $0x208] sm:$0xf0] }
  0xac   : > { %v5267_v53 = vor.u32 %v6140_v45, %v5266_v44  ;;  %v5302_v44 = vld [vmem:[#allocation10 + $0x188] sm:$0xf]  ;;  %v6149_v45 = vld [vmem:[#allocation10 + $0x190] sm:$0xf0] }
  0xad   : > { %1500 = vmatpush.bf16.msrb.mxu0 %v5131_v54  ;;  %v5363_v54 = vor.u32 %v6164_v48, %v5362_v46  ;;  %v5390_v46 = vld [vmem:[#allocation7] sm:$0xf]  ;;  %v6172_v48 = vld [vmem:[#allocation7 + $0x8] sm:$0xf0] }
  0xae   : > { %1514 = vmatpush.bf16.msrb.mxu1 %v5227_v55  ;;  %v5451_v55 = vor.u32 %v6187_v50, %v5450_v49  ;;  %v5486_v49 = vld [vmem:[#allocation7 + $0xc0] sm:$0xf]  ;;  %v6196_v50 = vld [vmem:[#allocation7 + $0xc8] sm:$0xf0] }
  0xaf   : > { %1528 = vmatpush.bf16.msrb.mxu2 %v5323_v56  ;;  %1542 = vmatpush.bf16.msrb.mxu3 %v5135_v61  ;;  %v5254_v56 = vld [vmem:[#allocation10 + $0x128] sm:$0xf]  ;;  %v6161_v61 = vld [vmem:[#allocation10 + $0x1f0] sm:$0xf0] }
  0xb0   : > { %v5255_v2 = vor.u32 %v6137_v58, %v5254_v56  ;;  %v6216_v56 = vld [vmem:[#allocation7 + $0x16c] sm:$0xf]  ;;  %v5572_v58 = vld [vmem:[#allocation7 + $0x174] sm:$0xf0] }
  0xb1   : > { %1501 = vmatpush.bf16.msrb.mxu0 %v5119_v3  ;;  %v5351_v3 = vor.u32 %v6161_v61, %v5350_v59  ;;  %v5303_v59 = vor.u32 %v6149_v45, %v5302_v44  ;;  %v6240_v61 = vld [vmem:[#allocation7 + $0x22c] sm:$0xf] }
  0xb2   : > { %1515 = vmatpush.bf16.msrb.mxu1 %v5215_v7  ;;  %v5338_v7 = vld [vmem:[#allocation10 + $0x1d0] sm:$0xf]  ;;  %v6180_v44 = vld [vmem:[#allocation7 + $0x4c] sm:$0xf] }
  0xb3   : > { %1529 = vmatpush.bf16.msrb.mxu2 %v5311_v8  ;;  %1543 = vmatpush.bf16.msrb.mxu3 %v5123_v12  ;;  %v5535_v8 = vor.u32 %v6208_v1, %v5534_v0  ;;  %v5522_v12 = vld [vmem:[#allocation7 + $0x108] sm:$0xf]  ;;  %v5339_v15 = vor.u32 %v6158_v9, %v5338_v7  ;;  %v5667_v0 = vor.u32 %v6241_v52, %v5666_v51  ;;  %v2251_v1 = vld [vmem:[%s6903_s13] sm:$0xff] }
  0xb4   : > { %v5523_v21 = vor.u32 %v6205_v13, %v5522_v12  ;;  %v6189_v7 = vld [vmem:[#allocation7 + $0x94] sm:$0xf]  ;;  %v5464_v9 = vld [vmem:[#allocation7 + $0x9c] sm:$0xf0] }
  0xb5   : > { %1502 = vmatpush.bf16.msrb.mxu0 %v5107_v19  ;;  %v5326_v19 = vld [vmem:[#allocation10 + $0x1b8] sm:$0xf]  ;;  %v6237_v12 = vld [vmem:[#allocation7 + $0x214] sm:$0xf]  ;;  %v5656_v13 = vld [vmem:[#allocation7 + $0x21c] sm:$0xf0] }
  0xb6   : > { %1516 = vmatpush.bf16.msrb.mxu1 %v5203_v24  ;;  %v6178_v24 = vld [vmem:[#allocation7 + $0x38] sm:$0xf0] }
  0xb7   : > { %1530 = vmatpush.bf16.msrb.mxu2 %v5299_v25  ;;  %1544 = vmatpush.bf16.msrb.mxu3 %v5111_v28  ;;  %v5510_v25 = vld [vmem:[#allocation7 + $0xf0] sm:$0xf]  ;;  %v5327_v28 = vor.u32 %v6155_v22, %v5326_v19  ;;  %v6235_v19 = vld [vmem:[#allocation7 + $0x200] sm:$0xf0]  ;;  %v5659_v22 = vor.u32 %v6237_v12, %v5656_v13  ;;  %v6222_v12 = vld [vmem:[#allocation7 + $0x19c] sm:$0xf] }
  0xb8   : > { %1503 = vmatmul.bf16.vlgmr.msrb.gmra.mxu0 %v6919_v57  ;;  %v5511_v33 = vor.u32 %v6202_v26, %v5510_v25  ;;  %v5548_v25 = vld [vmem:[#allocation7 + $0x144] sm:$0xf0]  ;;  %v6234_v26 = vld [vmem:[#allocation7 + $0x1fc] sm:$0xf] }
  0xb9   : > { %1551 = vmatpush.bf16.msra.mxu0 %v5291_v29  ;;  %1517 = vmatmul.bf16.vlgmr.msrb.gmra.mxu1 %v6924_v5  ;;  %v5415_v29 = vor.u32 %v6178_v24, %v5414_v23  ;;  %v5452_v23 = vld [vmem:[#allocation7 + $0x84] sm:$0xf0]  ;;  %v6210_v24 = vld [vmem:[#allocation7 + $0x13c] sm:$0xf] }
  0xba   : > { %1565 = vmatpush.bf16.msra.mxu1 %v5387_v30  ;;  %1531 = vmatmul.bf16.vlgmr.msrb.gmra.mxu2 %v6930_v20  ;;  %v5218_v30 = vld [vmem:[#allocation10 + $0xe0] sm:$0xf]  ;;  %v5596_v13 = vld [vmem:[#allocation7 + $0x1a4] sm:$0xf0] }
  0xbb   : > { %2740 = vmatpush.bf16.msra.mxu2 %v5475_v31  ;;  %2754 = vmatpush.bf16.msra.mxu3 %v5571_v35  ;;  %v6128_v31 = vld [vmem:[#allocation10 + $0xe8] sm:$0xf0]  ;;  %v5402_v35 = vld [vmem:[#allocation7 + $0x18] sm:$0xf] }
  0xbc   : > { %1545 = vmatmul.bf16.vlgmr.msrb.gmra.mxu3 %v6919_v57  ;;  %v5439_v57 = vor.u32 %v6184_v63, %v5438_v62  ;;  %v5219_v39 = vor.u32 %v6128_v31, %v5218_v30  ;;  %v5668_v62 = vld [vmem:[#allocation7 + $0x234] sm:$0xf0]  ;;  %v5487_v63 = vor.u32 %v6196_v50, %v5486_v49  ;;  %v5551_v30 = vor.u32 %v6210_v24, %v5548_v25  ;;  %v5630_v31 = vld [vmem:[#allocation7 + $0x1e0] sm:$0xf]  ;;  %v6228_v49 = vld [vmem:[#allocation7 + $0x1cc] sm:$0xf] }
  0xbd   : > { %1552 = vmatpush.bf16.msra.mxu0 %v5279_v41  ;;  %v6125_v41 = vld [vmem:[#allocation10 + $0xd0] sm:$0xf0]  ;;  %v5620_v50 = vld [vmem:[#allocation7 + $0x1d4] sm:$0xf0]  ;;  %v5599_v24 = vor.u32 %v6222_v12, %v5596_v13  ;;  %v5488_v25 = vld [vmem:[#allocation7 + $0xcc] sm:$0xf0] }
  0xbe   : > { %1566 = vmatpush.bf16.msra.mxu1 %v5375_v42  ;;  %v5315_v42 = vor.u32 %v6152_v34, %v5314_v32  ;;  %v6232_v32 = vld [vmem:[#allocation7 + $0x1e8] sm:$0xf0] }
  0xbf   : > { %2741 = vmatpush.bf16.msra.mxu2 %v5463_v43  ;;  %2755 = vmatpush.bf16.msra.mxu3 %v5559_v47  ;;  %v5403_v43 = vor.u32 %v6175_v36, %v5402_v35  ;;  %v5499_v47 = vor.u32 %v6199_v38, %v5498_v37  ;;  %v5440_v35 = vld [vmem:[#allocation7 + $0x6c] sm:$0xf0]  ;;  %v6207_v36 = vld [vmem:[#allocation7 + $0x124] sm:$0xf] }
  0xc0   : > { %v6231_v37 = vld [vmem:[#allocation7 + $0x1e4] sm:$0xf]  ;;  %v5632_v38 = vld [vmem:[#allocation7 + $0x1ec] sm:$0xf0] }
  0xc1   : > { %1553 = vmatpush.bf16.msra.mxu0 %v5267_v53  ;;  %v6192_v53 = vld [vmem:[#allocation7 + $0xac] sm:$0xf]  ;;  %v5635_v45 = vor.u32 %v6231_v37, %v5632_v38 }
  0xc2   : > { %1567 = vmatpush.bf16.msra.mxu1 %v5363_v54  ;;  %v5207_v54 = vor.u32 %v6125_v41, %v5206_v40  ;;  %v2256_v37 = vld [vmem:[%s6903_s13 + $0x28] sm:$0xff] }
  0xc3   : > { %2742 = vmatpush.bf16.msra.mxu2 %v5451_v55  ;;  %2756 = vmatpush.bf16.msra.mxu3 %v5547_v60  ;;  %v5476_v55 = vld [vmem:[#allocation7 + $0xb4] sm:$0xf0]  ;;  %v5391_v60 = vor.u32 %v6172_v48, %v5390_v46 }
  0xc4   : > { %v5428_v46 = vld [vmem:[#allocation7 + $0x54] sm:$0xf0] }
  0xc5   : > { %1554 = vmatpush.bf16.msra.mxu0 %v5255_v2  ;;  %v2254_v2 = vld [vmem:[%s6903_s13 + $0x18] sm:$0xff]  ;;  %v5431_v52 = vor.u32 %v6180_v44, %v5428_v46  ;;  %v6191_v44 = vld [vmem:[#allocation7 + $0xa0] sm:$0xf0] }
  0xc6   : > { %1568 = vmatpush.bf16.msra.mxu1 %v5351_v3  ;;  %v5479_v3 = vor.u32 %v6192_v53, %v5476_v55  ;;  %v5524_v48 = vld [vmem:[#allocation7 + $0x114] sm:$0xf0]  ;;  %v6226_v55 = vld [vmem:[#allocation7 + $0x1b8] sm:$0xf0] }
  0xc7   : > { %2743 = vmatpush.bf16.msra.mxu2 %v5439_v57  ;;  %2757 = vmatpush.bf16.msra.mxu3 %v5535_v8  ;;  %v5575_v57 = vor.u32 %v6216_v56, %v5572_v58  ;;  %v5671_v8 = vor.u32 %v6240_v61, %v5668_v62  ;;  %v6177_v56 = vld [vmem:[#allocation7 + $0x34] sm:$0xf]  ;;  %v5623_v58 = vor.u32 %v6228_v49, %v5620_v50  ;;  %v5512_v61 = vld [vmem:[#allocation7 + $0xfc] sm:$0xf0]  ;;  %v6239_v49 = vld [vmem:[#allocation7 + $0x220] sm:$0xf0] }
  0xc8   : > { %v6225_v62 = vld [vmem:[#allocation7 + $0x1b4] sm:$0xf] }
  0xc9   : > { %1555 = vmatpush.bf16.msra.mxu0 %v5243_v14  ;;  %v6947_v14 = vpack.c.bf16 %v2254_v2, %v2251_v1 }
  0xca   : > { %1569 = vmatpush.bf16.msra.mxu1 %v5339_v15  ;;  %v5655_v15 = vor.u32 %v6238_v6, %v5654_v4  ;;  %v6223_v4 = vld [vmem:[#allocation7 + $0x1a0] sm:$0xf0]  ;;  %v6174_v6 = vld [vmem:[#allocation7 + $0x1c] sm:$0xf] }
  0xcb   : > { %2744 = vmatpush.bf16.msra.mxu2 %v5427_v16  ;;  %2758 = vmatpush.bf16.msra.mxu3 %v5523_v21  ;;  %v5467_v16 = vor.u32 %v6189_v7, %v5464_v9  ;;  %v6186_v21 = vld [vmem:[#allocation7 + $0x7c] sm:$0xf] }
  0xcc   : > { %v6198_v9 = vld [vmem:[#allocation7 + $0xdc] sm:$0xf] }
  0xcd   : > { %1556 = vmatpush.bf16.msra.mxu0 %v5231_v27  ;;  %v5644_v27 = vld [vmem:[#allocation7 + $0x204] sm:$0xf0] }
  0xce   : > { %1570 = vmatpush.bf16.msra.mxu1 %v5327_v28  ;;  %v5643_v28 = vor.u32 %v6235_v19, %v5642_v18  ;;  %v5647_v34 = vor.u32 %v6234_v26, %v5644_v27  ;;  %v5503_v19 = vor.u32 %v6198_v9, %v5500_v10  ;;  %v6219_v26 = vld [vmem:[#allocation7 + $0x184] sm:$0xf]  ;;  %v5584_v27 = vld [vmem:[#allocation7 + $0x18c] sm:$0xf0]  ;;  %v6233_v9 = vld [vmem:[#allocation7 + $0x1f0] sm:$0xf0] }
  0xcf   : > { %2745 = vmatpush.bf16.msra.mxu2 %v5415_v29  ;;  %2759 = vmatpush.bf16.msra.mxu3 %v5511_v33  ;;  %v5455_v29 = vor.u32 %v6186_v21, %v5452_v23  ;;  %v6183_v33 = vld [vmem:[#allocation7 + $0x64] sm:$0xf]  ;;  %v5587_v38 = vor.u32 %v6219_v26, %v5584_v27 }
  0xd0   : > { %v5443_v40 = vor.u32 %v6183_v33, %v5440_v35  ;;  %v6171_v21 = vld [vmem:[#allocation7 + $0x4] sm:$0xf]  ;;  %v5674_v33 = vld [vmem:[#allocation7 + $0x230] sm:$0xf] }
  0xd1   : > { %1557 = vmatpush.bf16.msra.mxu0 %v5219_v39  ;;  %v5631_v39 = vor.u32 %v6232_v32, %v5630_v31  ;;  %v6195_v23 = vld [vmem:[#allocation7 + $0xc4] sm:$0xf]  ;;  %v6218_v32 = vld [vmem:[#allocation7 + $0x178] sm:$0xf0] }
  0xd2   : > { %1571 = vmatpush.bf16.msra.mxu1 %v5315_v42  ;;  %v5618_v42 = vld [vmem:[#allocation7 + $0x1c8] sm:$0xf] }
  0xd3   : > { %2746 = vmatpush.bf16.msra.mxu2 %v5403_v43  ;;  %2760 = vmatpush.bf16.msra.mxu3 %v5499_v47  ;;  %v6229_v43 = vld [vmem:[#allocation7 + $0x1d0] sm:$0xf0]  ;;  %v6204_v47 = vld [vmem:[#allocation7 + $0x10c] sm:$0xf] }
  0xd4   : > { %v5619_v51 = vor.u32 %v6229_v43, %v5618_v42  ;;  %v5527_v53 = vor.u32 %v6204_v47, %v5524_v48  ;;  %v5470_v43 = vld [vmem:[#allocation7 + $0x98] sm:$0xf]  ;;  %v6215_v47 = vld [vmem:[#allocation7 + $0x160] sm:$0xf0] }
  0xd5   : > { %1558 = vmatpush.bf16.msra.mxu0 %v5207_v54  ;;  %v5606_v54 = vld [vmem:[#allocation7 + $0x1b0] sm:$0xf]  ;;  %v5662_v48 = vld [vmem:[#allocation7 + $0x218] sm:$0xf] }
  0xd6   : > { %1572 = vmatpush.bf16.msra.mxu1 %v5303_v59  ;;  %v5416_v59 = vld [vmem:[#allocation7 + $0x3c] sm:$0xf0]  ;;  %v6955_v11 = vpop.f32.mrf.mxu1 }
  0xd7   : > { %2747 = vmatpush.bf16.msra.mxu2 %v5391_v60  ;;  %2761 = vmatpush.bf16.msra.mxu3 %v5487_v63  ;;  %v6201_v60 = vld [vmem:[#allocation7 + $0xf4] sm:$0xf]  ;;  %v5608_v63 = vld [vmem:[#allocation7 + $0x1bc] sm:$0xf0]  ;;  %v5419_v1 = vor.u32 %v6177_v56, %v5416_v59 }
  0xd8   : > { %1559 = vmatmul.bf16.vlgmr.msra.gmra.mxu0 %v6924_v5  ;;  %v5515_v2 = vor.u32 %v6201_v60, %v5512_v61  ;;  %v5611_v7 = vor.u32 %v6225_v62, %v5608_v63  ;;  %v5554_v56 = vld [vmem:[#allocation7 + $0x140] sm:$0xf]  ;;  %v6236_v60 = vld [vmem:[#allocation7 + $0x208] sm:$0xf0] }
  0xd9   : > { %2768 = vmatpush.bf16.msrb.mxu0 %v5667_v0  ;;  %1573 = vmatmul.bf16.vlgmr.msra.gmra.mxu1 %v6930_v20  ;;  %v5536_v20 = vld [vmem:[#allocation7 + $0x12c] sm:$0xf0]  ;;  %v5607_v0 = vor.u32 %v6226_v55, %v5606_v54  ;;  %v5458_v54 = vld [vmem:[#allocation7 + $0x80] sm:$0xf]  ;;  %v6188_v55 = vld [vmem:[#allocation7 + $0x88] sm:$0xf0] }
  0xda   : > { %2782 = vmatpush.bf16.msrb.mxu1 %v5479_v3  ;;  %2748 = vmatmul.bf16.vlgmr.msra.gmra.mxu2 %v6947_v14  ;;  %v5539_v41 = vor.u32 %v6207_v36, %v5536_v20  ;;  %v6953_v3 = vpop.f32.mrf.mxu0  ;;  %v5491_v36 = vor.u32 %v6195_v23, %v5488_v25  ;;  %v2253_v20 = vld [vmem:[%s6903_s13 + $0x10] sm:$0xff]  ;;  %v5459_v63 = vor.u32 %v6188_v55, %v5458_v54 }
  0xdb   : > { %2796 = vmatpush.bf16.msrb.mxu2 %v5575_v57  ;;  %2810 = vmatpush.bf16.msrb.mxu3 %v5671_v8  ;;  %v5594_v57 = vld [vmem:[#allocation7 + $0x198] sm:$0xf]  ;;  %v5404_v8 = vld [vmem:[#allocation7 + $0x24] sm:$0xf0]  ;;  %v6961_v46 = vpack.c.bf16 %v2256_v37, %v2253_v20  ;;  %v5650_v59 = vld [vmem:[#allocation7 + $0x200] sm:$0xf]  ;;  %v871_v62 = vadd.f32 %v6955_v11, %v6953_v3 }
  0xdc   : > { %2762 = vmatmul.bf16.vlgmr.msra.gmra.mxu3 %v6924_v5  ;;  %v5407_v18 = vor.u32 %v6174_v6, %v5404_v8  ;;  %v5542_v6 = vld [vmem:[#allocation7 + $0x128] sm:$0xf]  ;;  %v5626_v23 = vld [vmem:[#allocation7 + $0x1d0] sm:$0xf] }
  0xdd   : > { %2769 = vmatpush.bf16.msrb.mxu0 %v5655_v15  ;;  %v5595_v15 = vor.u32 %v6223_v4, %v5594_v57  ;;  %v898_v61 = vpop.f32.mrf.mxu3  ;;  %v5446_v57 = vld [vmem:[#allocation7 + $0x68] sm:$0xf]  ;;  %v6185_v4 = vld [vmem:[#allocation7 + $0x70] sm:$0xf0] }
  0xde   : > { %2783 = vmatpush.bf16.msrb.mxu1 %v5467_v16  ;;  %v5582_v16 = vld [vmem:[#allocation7 + $0x180] sm:$0xf]  ;;  %v6963_v50 = vpop.f32.mrf.mxu1  ;;  %v5638_v8 = vld [vmem:[#allocation7 + $0x1e8] sm:$0xf] }
  0xdf   : > { %2797 = vmatpush.bf16.msrb.mxu2 %v5563_v17  ;;  %2811 = vmatpush.bf16.msrb.mxu3 %v5659_v22  ;;  %v6220_v17 = vld [vmem:[#allocation7 + $0x188] sm:$0xf0]  ;;  %v5392_v22 = vld [vmem:[#allocation7 + $0xc] sm:$0xf0]  ;;  %v5639_v11 = vor.u32 %v6233_v9, %v5638_v8 }
  0xe0   : > { %v5583_v31 = vor.u32 %v6220_v17, %v5582_v16  ;;  %v5395_v35 = vor.u32 %v6171_v21, %v5392_v22  ;;  %v5434_v17 = vld [vmem:[#allocation7 + $0x50] sm:$0xf]  ;;  %v6206_v22 = vld [vmem:[#allocation7 + $0x118] sm:$0xf0] }
  0xe1   : > { %2770 = vmatpush.bf16.msrb.mxu0 %v5643_v28  ;;  %v5482_v28 = vld [vmem:[#allocation7 + $0xb0] sm:$0xf] }
  0xe2   : > { %2784 = vmatpush.bf16.msrb.mxu1 %v5455_v29  ;;  %v6194_v29 = vld [vmem:[#allocation7 + $0xb8] sm:$0xf0]  ;;  %v6959_v42 = vpop.f32.mrf.mxu0 }
  0xe3   : > { %2798 = vmatpush.bf16.msrb.mxu2 %v5551_v30  ;;  %2812 = vmatpush.bf16.msrb.mxu3 %v5647_v34  ;;  %v5578_v30 = vld [vmem:[#allocation7 + $0x170] sm:$0xf]  ;;  %v6242_v34 = vld [vmem:[#allocation7 + $0x238] sm:$0xf0] }
  0xe5   : > { %2771 = vmatpush.bf16.msrb.mxu0 %v5631_v39  ;;  %v5483_v39 = vor.u32 %v6194_v29, %v5482_v28  ;;  %v900_v29 = vpop.f32.mrf.mxu3 }
  0xe6   : > { %2785 = vmatpush.bf16.msrb.mxu1 %v5443_v40  ;;  %v5579_v40 = vor.u32 %v6218_v32, %v5578_v30  ;;  %v5422_v30 = vld [vmem:[#allocation7 + $0x38] sm:$0xf] }
  0xe7   : > { %2799 = vmatpush.bf16.msrb.mxu2 %v5539_v41  ;;  %2813 = vmatpush.bf16.msrb.mxu3 %v5635_v45  ;;  %v5675_v41 = vor.u32 %v6242_v34, %v5674_v33  ;;  %v5566_v45 = vld [vmem:[#allocation7 + $0x158] sm:$0xf]  ;;  %v873_v33 = vadd.f32 %v6963_v50, %v6959_v42  ;;  %v6203_v34 = vld [vmem:[#allocation7 + $0x100] sm:$0xf0]  ;;  %v5506_v42 = vld [vmem:[#allocation7 + $0xe0] sm:$0xf] }
  0xe8   : > { %v5518_v32 = vld [vmem:[#allocation7 + $0xf8] sm:$0xf]  ;;  %v5602_v50 = vld [vmem:[#allocation7 + $0x1a0] sm:$0xf] }
  0xe9   : > { %2772 = vmatpush.bf16.msrb.mxu0 %v5619_v51  ;;  %v5471_v51 = vor.u32 %v6191_v44, %v5470_v43  ;;  %v5410_v44 = vld [vmem:[#allocation7 + $0x20] sm:$0xf] }
  0xea   : > { %2786 = vmatpush.bf16.msrb.mxu1 %v5431_v52  ;;  %v5567_v52 = vor.u32 %v6215_v47, %v5566_v45  ;;  %v6176_v45 = vld [vmem:[#allocation7 + $0x28] sm:$0xf0] }
  0xeb   : > { %2800 = vmatpush.bf16.msrb.mxu2 %v5527_v53  ;;  %2814 = vmatpush.bf16.msrb.mxu3 %v5623_v58  ;;  %v5663_v53 = vor.u32 %v6239_v49, %v5662_v48  ;;  %v6212_v58 = vld [vmem:[#allocation7 + $0x148] sm:$0xf0] }
  0xec   : > { %v6200_v49 = vld [vmem:[#allocation7 + $0xe8] sm:$0xf0] }
  0xed   : > { %2773 = vmatpush.bf16.msrb.mxu0 %v5607_v0  ;;  %v884_v0 = vpop.f32.mrf.mxu2  ;;  %v5507_v54 = vor.u32 %v6200_v49, %v5506_v42 }
  0xee   : > { %2787 = vmatpush.bf16.msrb.mxu1 %v5419_v1  ;;  %v5555_v1 = vor.u32 %v6212_v58, %v5554_v56  ;;  %v885_v12 = vadd.f32 %v884_v0, %v871_v62  ;;  %v5398_v56 = vld [vmem:[#allocation7 + $0x8] sm:$0xf]  ;;  %v6173_v58 = vld [vmem:[#allocation7 + $0x10] sm:$0xf0] }
  0xef   : > { %2801 = vmatpush.bf16.msrb.mxu2 %v5515_v2  ;;  %2815 = vmatpush.bf16.msrb.mxu3 %v5611_v7  ;;  %v5651_v2 = vor.u32 %v6236_v60, %v5650_v59  ;;  %v6209_v7 = vld [vmem:[#allocation7 + $0x130] sm:$0xf0]  ;;  %v5494_v59 = vld [vmem:[#allocation7 + $0xc8] sm:$0xf] }
  0xf0   : > { %v5543_v3 = vor.u32 %v6209_v7, %v5542_v6  ;;  %v6197_v60 = vld [vmem:[#allocation7 + $0xd0] sm:$0xf0] }
  0xf1   : > { %2774 = vmatpush.bf16.msrb.mxu0 %v5595_v15  ;;  %v5447_v15 = vor.u32 %v6185_v4, %v5446_v57  ;;  %v6221_v62 = vld [vmem:[#allocation7 + $0x190] sm:$0xf0]  ;;  %v5495_v0 = vor.u32 %v6197_v60, %v5494_v59 }
  0xf2   : > { %2788 = vmatpush.bf16.msrb.mxu1 %v5407_v18  ;;  %v6182_v18 = vld [vmem:[#allocation7 + $0x58] sm:$0xf0] }
  0xf3   : > { %2802 = vmatpush.bf16.msrb.mxu2 %v5503_v19  ;;  %2816 = vmatpush.bf16.msrb.mxu3 %v5599_v24  ;;  %v5530_v19 = vld [vmem:[#allocation7 + $0x110] sm:$0xf]  ;;  %v6230_v24 = vld [vmem:[#allocation7 + $0x1d8] sm:$0xf0]  ;;  %v5435_v26 = vor.u32 %v6182_v18, %v5434_v17 }
  0xf4   : > { %v5531_v27 = vor.u32 %v6206_v22, %v5530_v19  ;;  %v5627_v28 = vor.u32 %v6230_v24, %v5626_v23 }
  0xf5   : > { %2775 = vmatpush.bf16.msrb.mxu0 %v5583_v31  ;;  %v912_v10 = vpop.f32.mrf.mxu0  ;;  %v6179_v31 = vld [vmem:[#allocation7 + $0x40] sm:$0xf0]  ;;  %v886_v20 = vpop.f32.mrf.mxu2 }
  0xf6   : > { %2789 = vmatpush.bf16.msrb.mxu1 %v5395_v35  ;;  %v913_v13 = vadd.f32 %v912_v10, %v898_v61  ;;  %v926_v16 = vpop.f32.mrf.mxu1  ;;  %v5614_v35 = vld [vmem:[#allocation7 + $0x1b8] sm:$0xf]  ;;  %v887_v47 = vadd.f32 %v886_v20, %v873_v33  ;;  %v5590_v61 = vld [vmem:[#allocation7 + $0x188] sm:$0xf] }
  0xf7   : > { %2803 = vmatpush.bf16.msrb.mxu2 %v5491_v36  ;;  %2817 = vmatpush.bf16.msrb.mxu3 %v5587_v38  ;;  %v6227_v36 = vld [vmem:[#allocation7 + $0x1c0] sm:$0xf0] }
  0xf8   : > { %2776 = vmatmul.bf16.vlgmr.msrb.gmra.mxu0 %v6961_v46  ;;  %v927_v21 = vadd.f32 %v926_v16, %v913_v13  ;;  %v5615_v43 = vor.u32 %v6227_v36, %v5614_v35 }
  0xf9   : > { %2824 = vmatpush.bf16.msra.mxu0 %v5483_v39  ;;  %2790 = vmatmul.bf16.vlgmr.msrb.gmra.mxu1 %v6947_v14  ;;  %v5423_v39 = vor.u32 %v6179_v31, %v5422_v30 }
  0xfa   : > { %2838 = vmatpush.bf16.msra.mxu1 %v5579_v40  ;;  %2804 = vmatmul.bf16.vlgmr.msrb.gmra.mxu2 %v6924_v5  ;;  %v6971_v25 = vpack.c.bf16 %v927_v21, %v885_v12 }
  0xfb   : > { %2852 = vmatpush.bf16.msra.mxu2 %v5675_v41  ;;  %2818 = vmatmul.bf16.vlgmr.msrb.gmra.mxu3 %v6961_v46  ;;  %v5519_v41 = vor.u32 %v6203_v34, %v5518_v32 }
  0xfc   : > { %1587 = vrot.lane.b32.xlu1 %v6971_v25, %s6742_s2 }
  0xfd   : > { %2825 = vmatpush.bf16.msra.mxu0 %v5471_v51  ;;  %v914_v37 = vpop.f32.mrf.mxu0  ;;  %v6224_v51 = vld [vmem:[#allocation7 + $0x1a8] sm:$0xf0] }
  0xfe   : > { %2839 = vmatpush.bf16.msra.mxu1 %v5567_v52  ;;  %v915_v38 = vadd.f32 %v914_v37, %v900_v29  ;;  %v928_v40 = vpop.f32.mrf.mxu1  ;;  %v5603_v55 = vor.u32 %v6224_v51, %v5602_v50 }
  0xff   : > { %2853 = vmatpush.bf16.msra.mxu2 %v5663_v53  ;;  %v5411_v53 = vor.u32 %v6176_v45, %v5410_v44  ;;  %v954_v57 = vpop.f32.mrf.mxu3 }
 0x100   : > { %v929_v48 = vadd.f32 %v928_v40, %v915_v38 }
 0x101   : > { %2826 = vmatpush.bf16.msra.mxu0 %v5459_v63  ;;  %v5399_v63 = vor.u32 %v6173_v58, %v5398_v56 }
 0x102   : > { %2840 = vmatpush.bf16.msra.mxu1 %v5555_v1  ;;  %v6977_v52 = vpack.c.bf16 %v929_v48, %v887_v47  ;;  %v5591_v1 = vor.u32 %v6221_v62, %v5590_v61 }
 0x103   : > { %2854 = vmatpush.bf16.msra.mxu2 %v5651_v2  ;;  %v940_v2 = vpop.f32.mrf.mxu2 }
 0x104   : > { %1589 = vrot.lane.b32.xlu1 %v6977_v52, %s6742_s2  ;;  %v955_v4 = vadd.f32 %v954_v57, %v940_v2 }
 0x105   : > { %2827 = vmatpush.bf16.msra.mxu0 %v5447_v15 }
 0x106   : > { %2841 = vmatpush.bf16.msra.mxu1 %v5543_v3 }
 0x107   : > { %2855 = vmatpush.bf16.msra.mxu2 %v5639_v11  ;;  %v956_v8 = vpop.f32.mrf.mxu3 }
 0x109   : > { %2828 = vmatpush.bf16.msra.mxu0 %v5435_v26 }
 0x10a   : > { %2842 = vmatpush.bf16.msra.mxu1 %v5531_v27 }
 0x10b   : > { %2856 = vmatpush.bf16.msra.mxu2 %v5627_v28  ;;  %v942_v6 = vpop.f32.mrf.mxu2 }
 0x10c   : > { %v957_v13 = vadd.f32 %v956_v8, %v942_v6 }
 0x10d   : > { %2829 = vmatpush.bf16.msra.mxu0 %v5423_v39 }
 0x10e   : > { %2843 = vmatpush.bf16.msra.mxu1 %v5519_v41 }
 0x10f   : > { %2857 = vmatpush.bf16.msra.mxu2 %v5615_v43 }
 0x111   : > { %2830 = vmatpush.bf16.msra.mxu0 %v5411_v53 }
 0x112   : > { %2844 = vmatpush.bf16.msra.mxu1 %v5507_v54 }
 0x113   : > { %2858 = vmatpush.bf16.msra.mxu2 %v5603_v55 }
 0x115   : > { %2831 = vmatpush.bf16.msra.mxu0 %v5399_v63  ;;  %v968_v7 = vpop.f32.mrf.mxu0 }
 0x116   : > { %2845 = vmatpush.bf16.msra.mxu1 %v5495_v0  ;;  %v969_v9 = vadd.f32 %v968_v7, %v955_v4  ;;  %v1462_v12 = vpop.f32.mrf.mxu1 }
 0x117   : > { %2859 = vmatpush.bf16.msra.mxu2 %v5591_v1 }
 0x118   : > { %2832 = vmatmul.bf16.vlgmr.msra.gmra.mxu0 %v6947_v14  ;;  %v6984_v10 = vpack.c.bf16 %v969_v9, %v969_v9 }
 0x119   : > { %2846 = vmatmul.bf16.vlgmr.msra.gmra.mxu1 %v6924_v5 }
 0x11a   : > { %2860 = vmatmul.bf16.vlgmr.msra.gmra.mxu2 %v6961_v46  ;;  %1595 = vrot.lane.b32.xlu0 %v6984_v10, %s6742_s2 }
 0x11d   : > { %v1476_v15 = vpop.f32.mrf.mxu2  ;;  %v970_v16 = vpop.f32.mrf.mxu0 }
 0x11e   : > { %v1477_v3 = vadd.f32 %v1476_v15, %v1462_v12  ;;  %v971_v11 = vadd.f32 %v970_v16, %v957_v13  ;;  %v1464_v46 = vpop.f32.mrf.mxu1  ;;  %v1585_v13 = vrot.slane %v6971_v25, 4  ;;  %v6743_v16 = vmov 1983009808  }
 0x11f   : > { %v1490_v14 = vpop.f32.mrf.mxu3 }
 0x120   : > { %v1491_v5 = vadd.f32 %v1490_v14, %v1477_v3  ;;  %v6988_v17 = vpack.c.bf16 %v971_v11, %v971_v11  ;;  %v1647_v3 = vunpack.c.l.s4 %v6743_v16 }
 0x122   : > { %1597 = vrot.lane.b32.xlu0 %v6988_v17, %s6742_s2 }
 0x125   : > { %v1478_v18 = vpop.f32.mrf.mxu2 }
 0x126   : > { %v1479_v19 = vadd.f32 %v1478_v18, %v1464_v46  ;;  %v1610_v46 = vshrl.u32 %v1585_v13, 16  ;;  %v1586_v18 = vrot.slane %v6977_v52, 4 }
 0x127   : > { %v1492_v21 = vpop.f32.mrf.mxu3 }
 0x128   : > { %v1493_v22 = vadd.f32 %v1492_v21, %v1479_v19  ;;  %v7011_v21 = vunpack.c.0.s8 %v1647_v3 }
 0x135   : > { %v1504_v23 = vpop.f32.mrf.mxu0 }
 0x136   : > { %v1518_v24 = vpop.f32.mrf.mxu1 }
 0x137   : > { %v1519_v26 = vadd.f32 %v1518_v24, %v1504_v23  ;;  %v1603_v24 = vshrl.u32 %v6971_v25, 16 }
 0x13d   : > { %v1532_v27 = vpop.f32.mrf.mxu2  ;;  %v1506_v30 = vpop.f32.mrf.mxu0 }
 0x13e   : > { %v1533_v28 = vadd.f32 %v1532_v27, %v1519_v26  ;;  %v1520_v31 = vpop.f32.mrf.mxu1  ;;  %v1617_v26 = vshrl.u32 %v6984_v10, 16 }
 0x13f   : > { %v1521_v32 = vadd.f32 %v1520_v31, %v1506_v30  ;;  %v1546_v36 = vpop.f32.mrf.mxu3  ;;  %v6744_v30 = vmov 1934713408  }
 0x140   : > { %v6992_v29 = vpack.c.bf16 %v1533_v28, %v1491_v5  ;;  %v1632_v28 = vshrl.u32 %v1586_v18, 16  ;;  %v1660_v31 = vunpack.c.l.s4 %v6744_v30 }
 0x145   : > { %v1534_v33 = vpop.f32.mrf.mxu2 }
 0x146   : > { %v1535_v34 = vadd.f32 %v1534_v33, %v1521_v32 }
 0x147   : > { %v1548_v38 = vpop.f32.mrf.mxu3 }
 0x148   : > { %v6994_v35 = vpack.c.bf16 %v1535_v34, %v1493_v22 }
 0x155   : > { %v1560_v20 = vpop.f32.mrf.mxu0 }
 0x156   : > { %v1574_v37 = vpop.f32.mrf.mxu1  ;;  %v1561_v12 = vadd.f32 %v1560_v20, %v1546_v36 }
 0x158   : > { %v1575_v5 = vadd.f32 %v1574_v37, %v1561_v12 }
 0x15a   : > { %v7015_v27 = vpack.c.bf16 %v1575_v5, %v1575_v5 }
 0x15d   : > { %v1562_v39 = vpop.f32.mrf.mxu0  ;;  %v2749_v44 = vpop.f32.mrf.mxu2 }
 0x15e   : > { %v1563_v40 = vadd.f32 %v1562_v39, %v1548_v38  ;;  %v1576_v41 = vpop.f32.mrf.mxu1 }
 0x15f   : > { %v2763_v45 = vpop.f32.mrf.mxu3 }
 0x160   : > { %v6996_v43 = vadd.f32 %v1576_v41, %v1563_v40  ;;  %v2764_v50 = vadd.f32 %v2763_v45, %v2749_v44 }
 0x165   : > { %v2751_v42 = vpop.f32.mrf.mxu2 }
 0x167   : > { %v2765_v47 = vpop.f32.mrf.mxu3 }
 0x168   : > { %v2766_v61 = vadd.f32 %v2765_v47, %v2751_v42 }
 0x16e   : > { %v1588_v62 = vpop.permute.xlu1 %1587 }
 0x16f   : > { %v1591_v7 = vrot.slane %v1588_v62, 4  ;;  %v1604_v33 = vshrl.u32 %v1588_v62, 16  ;;  %v1601_v39 = vpack.i.b16 %v1588_v62, %v6971_v25 }
 0x171   : > { %v1611_v14 = vshrl.u32 %v1591_v7, 16  ;;  %v1609_v22 = vpack.i.b16 %v1591_v7, %v1585_v13 }
 0x173   : > { %v1612_v23 = vpack.i.b16 %v1611_v14, %v1610_v46  ;;  %v1654_v40 = vperm.slane %v1609_v22, %v7011_v21 }
 0x175   : > { %v2777_v48 = vpop.f32.mrf.mxu0  ;;  %v1681_v41 = vperm.slane %v1612_v23, %v7011_v21 }
 0x176   : > { %v2791_v49 = vpop.f32.mrf.mxu1  ;;  %v2778_v53 = vadd.f32 %v2777_v48, %v2764_v50  ;;  %v7005_v11 = vpop.permute.xlu1 %1589  ;;  %v1625_v48 = vshrl.u32 %v6977_v52, 16  ;;  %v1605_v50 = vpack.i.b16 %v1604_v33, %v1603_v24 }
 0x177   : > { %v1592_v19 = vrot.slane %v7005_v11, 4  ;;  %v1626_v44 = vshrl.u32 %v7005_v11, 16 }
 0x178   : > { %v2866_v58 = vmul.f32 0.05103104, %v2778_v53 }
 0x179   : > { %v1633_v34 = vshrl.u32 %v1592_v19, 16  ;;  %v1631_v45 = vpack.i.b16 %v1592_v19, %v1586_v18 }
 0x17b   : > { %v1634_v25 = vpack.i.b16 %v1633_v34, %v1632_v28 }
 0x17d   : > { %v2805_v51 = vpop.f32.mrf.mxu2  ;;  %v2779_v60 = vpop.f32.mrf.mxu0  ;;  %v1735_v7 = vperm.slane %v1634_v25, %v7011_v21 }
 0x17e   : > { %v2806_v54 = vadd.f32 %v2805_v51, %v2791_v49  ;;  %v2819_v55 = vpop.f32.mrf.mxu3  ;;  %v2793_v0 = vpop.f32.mrf.mxu1  ;;  %v2780_v2 = vadd.f32 %v2779_v60, %v2766_v61  ;;  %v1627_v60 = vpack.i.b16 %v1626_v44, %v1625_v48  ;;  %v7033_v61 = vperm.slane %v1631_v45, %v7011_v21 }
 0x180   : > { %v2820_v56 = vadd.f32 %v2819_v55, %v2806_v54  ;;  %v2869_v8 = vmul.f32 0.05103104, %v2780_v2  ;;  %v1639_v54 = vshrl.u32 %v6988_v17, 16  ;;  %v1655_v55 = vrot.slane %v1654_v40, 4 }
 0x181   : > { %v1709_v14 = vrot.slane %v7033_v61, 4 }
 0x182   : > { %v2867_v59 = vmul.f32 0.05103104, %v2820_v56  ;;  %v1682_v56 = vrot.slane %v1681_v41, 4 }
 0x184   : > { %v6998_v63 = vpack.c.bf16 %v2867_v59, %v2866_v58  ;;  %v1623_v59 = vpack.i.b16 %v7005_v11, %v6977_v52 }
 0x185   : > { %v2807_v1 = vpop.f32.mrf.mxu2 }
 0x186   : > { %v2808_v57 = vadd.f32 %v2807_v1, %v2793_v0  ;;  %2880 = vrot.lane.b32.xlu0 %v6998_v63, %s6742_s2  ;;  %v2821_v4 = vpop.f32.mrf.mxu3 }
 0x188   : > { %v2822_v6 = vadd.f32 %v2821_v4, %v2808_v57 }
 0x18a   : > { %v2870_v9 = vmul.f32 0.05103104, %v2822_v6 }
 0x18c   : > { %v7003_v15 = vpack.c.bf16 %v2870_v9, %v2869_v8  ;;  %v1596_v32 = vpop.permute.xlu0 %1595 }
 0x18d   : > { %v1615_v37 = vpack.i.b16 %v1596_v32, %v6984_v10  ;;  %v1618_v38 = vshrl.u32 %v1596_v32, 16  ;;  %v7025_v10 = vunpack.c.0.s8 %v1660_v31 }
 0x18e   : > { %2882 = vrot.lane.b32.xlu1 %v7003_v15, %s6742_s2 }
 0x18f   : > { %v1619_v42 = vpack.i.b16 %v1618_v38, %v1617_v26  ;;  %v1643_v47 = vrot.slane %v1615_v37, 4  ;;  %v1736_v26 = vrot.slane %v1735_v7, 4 }
 0x191   : > { %v1645_v51 = vsel %vm1644_vm0, %v1643_v47, %v1601_v39  ;;  %v1671_v53 = vrot.slane %v1619_v42, 4 }
 0x192   : > { %v1649_v58 = vperm.slane %v1645_v51, %v7011_v21 }
 0x193   : > { %v1672_v62 = vsel %vm1644_vm0, %v1671_v53, %v1605_v50 }
 0x194   : > { %v1656_v1 = vsel %vm1644_vm0, %v1655_v55, %v1649_v58  ;;  %v1657_v2 = vrot.slane %v1649_v58, 4  ;;  %v1676_v57 = vperm.slane %v1672_v62, %v7011_v21  ;;  %v1598_v6 = vpop.permute.xlu0 %1597 }
 0x195   : > { %v2833_v36 = vpop.f32.mrf.mxu0  ;;  %v1662_v8 = vperm.slane %v1656_v1, %v7025_v10  ;;  %v1637_v52 = vpack.i.b16 %v1598_v6, %v6988_v17  ;;  %v1640_v9 = vshrl.u32 %v1598_v6, 16 }
 0x196   : > { %v2847_v20 = vpop.f32.mrf.mxu1  ;;  %1929 = vrot.lane.b32.xlu1 %v7015_v27, %s6742_s2  ;;  %v1658_v12 = vsel %vm1644_vm0, %v1654_v40, %v1657_v2  ;;  %v1683_v13 = vsel %vm1644_vm0, %v1682_v56, %v1676_v57  ;;  %v1684_v16 = vrot.slane %v1676_v57, 4 }
 0x197   : > { %v2848_v49 = vadd.f32 %v2847_v20, %v2833_v36  ;;  %v1666_v11 = vperm.slane %v1658_v12, %v7025_v10  ;;  %v1667_v5 = vrot.slane %v1662_v8, 4  ;;  %v1689_v46 = vperm.slane %v1683_v13, %v7025_v10 }
 0x198   : > { %v1685_v22 = vsel %vm1644_vm0, %v1681_v41, %v1684_v16  ;;  %v1641_v17 = vpack.i.b16 %v1640_v9, %v1639_v54  ;;  %v1698_v24 = vrot.slane %v1637_v52, 4 }
 0x199   : > { %v1669_v28 = vrot.slane %v1666_v11, 4  ;;  %v1693_v30 = vperm.slane %v1685_v22, %v7025_v10  ;;  %v1694_v31 = vrot.slane %v1689_v46, 4  ;;  %v1668_v32 = vsel %vm1644_vm0, 0, %v1667_v5 }
 0x19a   : > { %v1699_v34 = vsel %vm1644_vm0, %v1698_v24, %v1623_v59  ;;  %v1725_v36 = vrot.slane %v1641_v17, 4 }
 0x19b   : > { %v1670_v20 = vsel %vm1644_vm0, 0, %v1669_v28  ;;  %v1695_v37 = vsel %vm1644_vm0, 0, %v1694_v31  ;;  %v1696_v38 = vrot.slane %v1693_v30, 4  ;;  %v1752_v39 = vsel %vm1644_vm0, %v1669_v28, %v1662_v8 }
 0x19c   : > { %v1756_v41 = vperm.slane %v1752_v39, %v7011_v21  ;;  %v1757_v44 = vrot.slane %v1670_v20, 4  ;;  %v1703_v45 = vperm.slane %v1699_v34, %v7011_v21  ;;  %v1726_v42 = vsel %vm1644_vm0, %v1725_v36, %v1627_v60 }
 0x19d   : > { %v2861_v0 = vpop.f32.mrf.mxu2  ;;  %v2835_v18 = vpop.f32.mrf.mxu0  ;;  %v1697_v47 = vsel %vm1644_vm0, 0, %v1696_v38  ;;  %v1777_v48 = vsel %vm1644_vm0, %v1696_v38, %v1689_v46 }
 0x19e   : > { %v2862_v4 = vadd.f32 %v2861_v0, %v2848_v49  ;;  %v2849_v19 = vpop.f32.mrf.mxu1  ;;  %v1730_v49 = vperm.slane %v1726_v42, %v7011_v21  ;;  %v1758_v25 = vsel %vm1644_vm0, %v1757_v44, %v1668_v32  ;;  %v1765_v51 = vrot.slane %v1756_v41, 4 }
 0x19f   : > { %v2850_v33 = vadd.f32 %v2849_v19, %v2835_v18  ;;  %v1781_v53 = vperm.slane %v1777_v48, %v7011_v21  ;;  %v1782_v54 = vrot.slane %v1697_v47, 4  ;;  %v1762_v55 = vperm.slane %v1758_v25, %v7011_v21 }
 0x1a0   : > { %v2868_v3 = vmul.f32 0.05103104, %v2862_v4  ;;  %v1710_v56 = vsel %vm1644_vm0, %v1709_v14, %v1703_v45  ;;  %v1711_v58 = vrot.slane %v1703_v45, 4  ;;  %v1737_v59 = vsel %vm1644_vm0, %v1736_v26, %v1730_v49 }
 0x1a1   : > { %v1783_v60 = vsel %vm1644_vm0, %v1782_v54, %v1695_v37  ;;  %v1790_v62 = vrot.slane %v1781_v53, 4  ;;  %v1716_v0 = vperm.slane %v1710_v56, %v7025_v10  ;;  %v1738_v1 = vrot.slane %v1730_v49, 4 }
 0x1a2   : > { %v7047_v23 = vpack.c.bf16 %v2868_v3, %v2868_v3  ;;  %v1763_v2 = vrot.slane %v1762_v55, 4  ;;  %v1766_v57 = vsel %vm1644_vm0, %v1762_v55, %v1765_v51  ;;  %v1787_v4 = vperm.slane %v1783_v60, %v7011_v21 }
 0x1a3   : > { %v1712_v6 = vsel %vm1644_vm0, %v7033_v61, %v1711_v58  ;;  %v1776_v8 = vperm.slane %v1766_v57, %v7025_v10  ;;  %v1721_v9 = vrot.slane %v1716_v0, 4  ;;  %v1739_v12 = vsel %vm1644_vm0, %v1735_v7, %v1738_v1 }
 0x1a4   : > { %2888 = vrot.lane.b32.xlu2 %v7047_v23, %s6742_s2  ;;  %v1720_v52 = vperm.slane %v1712_v6, %v7025_v10  ;;  %v1764_v13 = vsel %vm1644_vm0, %v1763_v2, %v1756_v41  ;;  %v1788_v16 = vrot.slane %v1787_v4, 4  ;;  %v1791_v3 = vsel %vm1644_vm0, %v1787_v4, %v1790_v62 }
 0x1a5   : > { %v2863_v40 = vpop.f32.mrf.mxu2  ;;  %v1743_v14 = vperm.slane %v1737_v59, %v7025_v10  ;;  %v1770_v11 = vperm.slane %v1764_v13, %v7025_v10  ;;  %v1801_v5 = vperm.slane %v1791_v3, %v7025_v10  ;;  %v1872_v46 = vshrl.u32 %v1776_v8, 16 }
 0x1a6   : > { %v7063_v50 = vadd.f32 %v2863_v40, %v2850_v33  ;;  %v1722_v61 = vsel %vm1644_vm0, 0, %v1721_v9  ;;  %v1789_v18 = vsel %vm1644_vm0, %v1788_v16, %v1781_v53  ;;  %v1723_v19 = vrot.slane %v1720_v52, 4 }
 0x1a7   : > { %v1747_v22 = vperm.slane %v1739_v12, %v7025_v10  ;;  %v1748_v7 = vrot.slane %v1743_v14, 4  ;;  %v1771_v17 = vrot.slane %v1770_v11, 4  ;;  %v1795_v24 = vperm.slane %v1789_v18, %v7025_v10 }
 0x1a8   : > { %v1856_v26 = vshrl.u32 %v1770_v11, 16  ;;  %v1870_v28 = vpack.i.b16 %v1801_v5, %v1776_v8  ;;  %v1873_v30 = vshrl.u32 %v1801_v5, 16  ;;  %v1724_v31 = vsel %vm1644_vm0, 0, %v1723_v19 }
 0x1a9   : > { %v1749_v32 = vsel %vm1644_vm0, 0, %v1748_v7  ;;  %v1750_v33 = vrot.slane %v1747_v22, 4  ;;  %v1772_v34 = vsel %vm1644_vm0, 0, %v1771_v17  ;;  %v1796_v36 = vrot.slane %v1795_v24, 4 }
 0x1aa   : > { %v1854_v20 = vpack.i.b16 %v1795_v24, %v1770_v11  ;;  %v1857_v37 = vshrl.u32 %v1795_v24, 16  ;;  %1909 = vst.msk [vmem:[#allocation2 + $0x20] sm:$0xf] %vm1900_vm1, %v1870_v28  ;;  %v1864_v38 = vshrl.u32 %v1772_v34, 16  ;;  %v1874_v39 = vpack.i.b16 %v1873_v30, %v1872_v46 }
 0x1ab   : > { %v1751_v40 = vsel %vm1644_vm0, 0, %v1750_v33  ;;  %v1802_v41 = vsel %vm1644_vm0, %v1723_v19, %v1716_v0  ;;  %v1797_v44 = vsel %vm1644_vm0, 0, %v1796_v36  ;;  %v1807_v47 = vrot.slane %v1724_v31, 4 }
 0x1ac   : > { %v1858_v45 = vpack.i.b16 %v1857_v37, %v1856_v26  ;;  %1901 = vst.msk [vmem:[#allocation2] sm:$0xf] %vm1900_vm1, %v1854_v20  ;;  %v1806_v42 = vperm.slane %v1802_v41, %v7011_v21  ;;  %v1862_v48 = vpack.i.b16 %v1797_v44, %v1772_v34  ;;  %v1865_v49 = vshrl.u32 %v1797_v44, 16 }
 0x1ad   : > { %1911 = vst.msk [vmem:[#allocation2 + $0x28] sm:$0xf] %vm1900_vm1, %v1874_v39  ;;  %v1827_v25 = vsel %vm1644_vm0, %v1750_v33, %v1743_v14  ;;  %v1832_v51 = vrot.slane %v1751_v40, 4  ;;  %v1808_v53 = vsel %vm1644_vm0, %v1807_v47, %v1722_v61  ;;  %v2871_v56 = vmul.f32 0.05103104, %v7063_v50 }
 0x1ae   : > { %1903 = vst.msk [vmem:[#allocation2 + $0x8] sm:$0xf] %vm1900_vm1, %v1858_v45  ;;  %v1815_v54 = vrot.slane %v1806_v42, 4  ;;  %v1831_v55 = vperm.slane %v1827_v25, %v7011_v21  ;;  %v1866_v58 = vpack.i.b16 %v1865_v49, %v1864_v38  ;;  %v1812_v59 = vperm.slane %v1808_v53, %v7011_v21 }
 0x1af   : > { %1905 = vst.msk [vmem:[#allocation2 + $0x10] sm:$0xf] %vm1900_vm1, %v1862_v48  ;;  %v1833_v60 = vsel %vm1644_vm0, %v1832_v51, %v1749_v32  ;;  %v7107_v1 = vpack.c.bf16 %v2871_v56, %v2871_v56  ;;  %v2878_v39 = vrot.slane %v6998_v63, 4  ;;  %v2910_v49 = vshrl.u32 %v7047_v23, 16 }
 0x1b0   : > { %v1837_v62 = vperm.slane %v1833_v60, %v7011_v21  ;;  %v1840_v0 = vrot.slane %v1831_v55, 4  ;;  %1907 = vst.msk [vmem:[#allocation2 + $0x18] sm:$0xf] %vm1900_vm1, %v1866_v58  ;;  %v1813_v2 = vrot.slane %v1812_v59, 4  ;;  %v1816_v57 = vsel %vm1644_vm0, %v1812_v59, %v1815_v54 }
 0x1b1   : > { %v1826_v4 = vperm.slane %v1816_v57, %v7025_v10  ;;  %2890 = vrot.lane.b32.xlu2 %v7107_v1, %s6742_s2  ;;  %v2903_v45 = vshrl.u32 %v2878_v39, 16  ;;  %v2896_v53 = vshrl.u32 %v6998_v63, 16 }
 0x1b2   : > { %v1838_v50 = vrot.slane %v1837_v62, 4  ;;  %v1841_v6 = vsel %vm1644_vm0, %v1837_v62, %v1840_v0  ;;  %v1814_v8 = vsel %vm1644_vm0, %v1813_v2, %v1806_v42 }
 0x1b3   : > { %v1851_v52 = vperm.slane %v1841_v6, %v7025_v10  ;;  %v1820_v9 = vperm.slane %v1814_v8, %v7025_v10  ;;  %v1896_v3 = vshrl.u32 %v1826_v4, 16 }
 0x1b4   : > { %v1839_v12 = vsel %vm1644_vm0, %v1838_v50, %v1831_v55 }
 0x1b5   : > { %v1845_v13 = vperm.slane %v1839_v12, %v7025_v10  ;;  %v1894_v16 = vpack.i.b16 %v1851_v52, %v1826_v4  ;;  %v1897_v14 = vshrl.u32 %v1851_v52, 16  ;;  %v1821_v11 = vrot.slane %v1820_v9, 4 }
 0x1b6   : > { %v1880_v5 = vshrl.u32 %v1820_v9, 16 }
 0x1b7   : > { %v1846_v46 = vrot.slane %v1845_v13, 4  ;;  %v1878_v61 = vpack.i.b16 %v1845_v13, %v1820_v9  ;;  %v1881_v18 = vshrl.u32 %v1845_v13, 16  ;;  %v1898_v19 = vpack.i.b16 %v1897_v14, %v1896_v3  ;;  %1910 = vst.msk [vmem:[#allocation2 + $0x24] sm:$0xf] %vm1900_vm1, %v1894_v16 }
 0x1b8   : > { %v1822_v22 = vsel %vm1644_vm0, 0, %v1821_v11 }
 0x1b9   : > { %v1847_v7 = vsel %vm1644_vm0, 0, %v1846_v46  ;;  %v1882_v17 = vpack.i.b16 %v1881_v18, %v1880_v5  ;;  %1902 = vst.msk [vmem:[#allocation2 + $0x4] sm:$0xf] %vm1900_vm1, %v1878_v61  ;;  %v1888_v26 = vshrl.u32 %v1822_v22, 16  ;;  %v2879_v18 = vrot.slane %v7003_v15, 4 }
 0x1ba   : > { %v1886_v24 = vpack.i.b16 %v1847_v7, %v1822_v22  ;;  %v1889_v28 = vshrl.u32 %v1847_v7, 16  ;;  %1912 = vst.msk [vmem:[#allocation2 + $0x2c] sm:$0xf] %vm1900_vm1, %v1898_v19 }
 0x1bb   : > { %1904 = vst.msk [vmem:[#allocation2 + $0xc] sm:$0xf] %vm1900_vm1, %v1882_v17 }
 0x1bc   : > { %v1890_v30 = vpack.i.b16 %v1889_v28, %v1888_v26  ;;  %1906 = vst.msk [vmem:[#allocation2 + $0x14] sm:$0xf] %vm1900_vm1, %v1886_v24  ;;  %v2925_v26 = vshrl.u32 %v2879_v18, 16 }
 0x1be   : > { %1908 = vst.msk [vmem:[#allocation2 + $0x1c] sm:$0xf] %vm1900_vm1, %v1890_v30 }
 0x1c0   : > { %v6243_v31 = vld [vmem:[#allocation2] sm:$0xff] }
 0x1c1   : > { %v3218_v32 = vsel %vm3213_vm2, %v6243_v31, 0 }
 0x1c2   : > { %v6244_v33 = vld [vmem:[#allocation2 + $0x8] sm:$0xff]  ;;  %3227 = vmatpush.bf16.xpose.msra.mxu3 %v3218_v32 }
 0x1c3   : > { %v6245_v34 = vld [vmem:[#allocation2 + $0x10] sm:$0xff]  ;;  %v3246_v36 = vsel %vm3213_vm2, %v6244_v33, 0 }
 0x1c4   : > { %v3274_v20 = vsel %vm3213_vm2, %v6245_v34, 0 }
 0x1c5   : > { %v6246_v37 = vld [vmem:[#allocation2 + $0x18] sm:$0xff]  ;;  %3283 = vmatpush.bf16.xpose.msrb.mxu0 %v3274_v20 }
 0x1c6   : > { %v3302_v38 = vsel %vm3213_vm2, %v6246_v37, 0 }
 0x1c7   : > { %3311 = vmatpush.bf16.xpose.msrb.mxu1 %v3302_v38 }
 0x1ca   : > { %3255 = vmatpush.bf16.xpose.msrb.mxu3 %v3246_v36  ;;  %v2932_v36 = vshrl.u32 %v7107_v1, 16 }
 0x1f8   : > { %v2881_v40 = vpop.permute.xlu0 %2880 }
 0x1f9   : > { %v2884_v41 = vrot.slane %v2881_v40, 4  ;;  %v2897_v47 = vshrl.u32 %v2881_v40, 16  ;;  %v2894_v54 = vpack.i.b16 %v2881_v40, %v6998_v63 }
 0x1fb   : > { %v2904_v44 = vshrl.u32 %v2884_v41, 16  ;;  %v2902_v58 = vpack.i.b16 %v2884_v41, %v2878_v39  ;;  %v2898_v59 = vpack.i.b16 %v2897_v47, %v2896_v53  ;;  %v2918_v41 = vshrl.u32 %v7003_v15, 16 }
 0x1fd   : > { %v2905_v51 = vpack.i.b16 %v2904_v44, %v2903_v45 }
 0x1fe   : > { %v2889_v42 = vpop.permute.xlu2 %2888 }
 0x1ff   : > { %v2908_v48 = vpack.i.b16 %v2889_v42, %v7047_v23  ;;  %v2911_v25 = vshrl.u32 %v2889_v42, 16  ;;  %v2974_v0 = vperm.slane %v2905_v51, %v7011_v21  ;;  %v2947_v23 = vperm.slane %v2902_v58, %v7011_v21 }
 0x200   : > { %v2883_v52 = vpop.permute.xlu1 %2882 }
 0x201   : > { %v2912_v55 = vpack.i.b16 %v2911_v25, %v2910_v49  ;;  %v2936_v56 = vrot.slane %v2908_v48, 4  ;;  %v2975_v6 = vrot.slane %v2974_v0, 4  ;;  %v2948_v12 = vrot.slane %v2947_v23, 4 }
 0x202   : > { %v2885_v14 = vrot.slane %v2883_v52, 4  ;;  %v2919_v37 = vshrl.u32 %v2883_v52, 16  ;;  %v2916_v44 = vpack.i.b16 %v2883_v52, %v7003_v15 }
 0x203   : > { %v2938_v60 = vsel %vm1644_vm0, %v2936_v56, %v2894_v54  ;;  %v2964_v62 = vrot.slane %v2912_v55, 4 }
 0x204   : > { %v2942_v2 = vperm.slane %v2938_v60, %v7011_v21  ;;  %v2926_v7 = vshrl.u32 %v2885_v14, 16  ;;  %v2924_v30 = vpack.i.b16 %v2885_v14, %v2879_v18 }
 0x205   : > { %v2965_v57 = vsel %vm1644_vm0, %v2964_v62, %v2898_v59 }
 0x206   : > { %v2950_v4 = vrot.slane %v2942_v2, 4  ;;  %v2969_v50 = vperm.slane %v2965_v57, %v7011_v21  ;;  %v2949_v11 = vsel %vm1644_vm0, %v2948_v12, %v2942_v2  ;;  %v2927_v32 = vpack.i.b16 %v2926_v7, %v2925_v26 }
 0x207   : > { %v2955_v19 = vperm.slane %v2949_v11, %v7025_v10  ;;  %v3001_v45 = vperm.slane %v2924_v30, %v7011_v21 }
 0x208   : > { %v2951_v63 = vsel %vm1644_vm0, %v2947_v23, %v2950_v4  ;;  %v2977_v8 = vrot.slane %v2969_v50, 4  ;;  %v2976_v13 = vsel %vm1644_vm0, %v2975_v6, %v2969_v50  ;;  %v3028_v47 = vperm.slane %v2927_v32, %v7011_v21 }
 0x209   : > { %v2959_v9 = vperm.slane %v2951_v63, %v7025_v10  ;;  %v2982_v46 = vperm.slane %v2976_v13, %v7025_v10  ;;  %v2960_v31 = vrot.slane %v2955_v19, 4  ;;  %v3002_v55 = vrot.slane %v3001_v45, 4 }
 0x20a   : > { %v2978_v16 = vsel %vm1644_vm0, %v2974_v0, %v2977_v8  ;;  %v3029_v58 = vrot.slane %v3028_v47, 4 }
 0x20b   : > { %v2986_v3 = vperm.slane %v2978_v16, %v7025_v10  ;;  %v2962_v5 = vrot.slane %v2959_v9, 4  ;;  %v2987_v24 = vrot.slane %v2982_v46, 4  ;;  %v2891_v34 = vpop.permute.xlu2 %2890  ;;  %v2961_v42 = vsel %vm1644_vm0, 0, %v2960_v31 }
 0x20c   : > { %v2930_v38 = vpack.i.b16 %v2891_v34, %v7107_v1  ;;  %v2933_v39 = vshrl.u32 %v2891_v34, 16  ;;  %v2920_v1 = vpack.i.b16 %v2919_v37, %v2918_v41 }
 0x20d   : > { %v2989_v61 = vrot.slane %v2986_v3, 4  ;;  %v2963_v17 = vsel %vm1644_vm0, 0, %v2962_v5  ;;  %v2988_v20 = vsel %vm1644_vm0, 0, %v2987_v24  ;;  %v3045_v57 = vsel %vm1644_vm0, %v2962_v5, %v2955_v19 }
 0x20e   : > { %v3050_v33 = vrot.slane %v2963_v17, 4  ;;  %v2934_v48 = vpack.i.b16 %v2933_v39, %v2932_v36  ;;  %v2991_v49 = vrot.slane %v2930_v38, 4  ;;  %v7188_v13 = vperm.slane %v3045_v57, %v7011_v21 }
 0x20f   : > { %v2990_v22 = vsel %vm1644_vm0, 0, %v2989_v61  ;;  %v3070_v60 = vsel %vm1644_vm0, %v2989_v61, %v2982_v46 }
 0x210   : > { %v3075_v28 = vrot.slane %v2990_v22, 4  ;;  %v3051_v25 = vsel %vm1644_vm0, %v3050_v33, %v2961_v42  ;;  %v2992_v53 = vsel %vm1644_vm0, %v2991_v49, %v2916_v44  ;;  %v3018_v54 = vrot.slane %v2934_v48, 4 }
 0x211   : > { %v2996_v15 = vperm.slane %v2992_v53, %v7011_v21  ;;  %v7170_v56 = vperm.slane %v3051_v25, %v7011_v21  ;;  %v7183_v52 = vperm.slane %v3070_v60, %v7011_v21 }
 0x212   : > { %v3076_v40 = vsel %vm1644_vm0, %v3075_v28, %v2988_v20  ;;  %v3019_v59 = vsel %vm1644_vm0, %v3018_v54, %v2920_v1 }
 0x213   : > { %v7165_v51 = vperm.slane %v3076_v40, %v7011_v21  ;;  %v3003_v62 = vsel %vm1644_vm0, %v3002_v55, %v2996_v15  ;;  %v3004_v0 = vrot.slane %v2996_v15, 4  ;;  %v3023_v2 = vperm.slane %v3019_v59, %v7011_v21 }
 0x214   : > { %v3009_v23 = vperm.slane %v3003_v62, %v7025_v10  ;;  %v3056_v8 = vrot.slane %v7170_v56, 4 }
 0x215   : > { %v3081_v4 = vrot.slane %v7165_v51, 4  ;;  %v3005_v50 = vsel %vm1644_vm0, %v3001_v45, %v3004_v0  ;;  %v3030_v6 = vsel %vm1644_vm0, %v3029_v58, %v3023_v2  ;;  %v3031_v63 = vrot.slane %v3023_v2, 4  ;;  %v6247_v2 = vld [vmem:[#allocation2 + $0x20] sm:$0xff] }
 0x216   : > { %v3013_v9 = vperm.slane %v3005_v50, %v7025_v10  ;;  %v3036_v12 = vperm.slane %v3030_v6, %v7025_v10  ;;  %v3014_v3 = vrot.slane %v3009_v23, 4  ;;  %v3057_v19 = vsel %vm1644_vm0, %v3056_v8, %v7188_v13 }
 0x217   : > { %v3032_v16 = vsel %vm1644_vm0, %v3028_v47, %v3031_v63  ;;  %v3082_v5 = vsel %vm1644_vm0, %v3081_v4, %v7183_v52  ;;  %v3063_v31 = vperm.slane %v3057_v19, %v7025_v10 }
 0x218   : > { %v3016_v14 = vrot.slane %v3013_v9, 4  ;;  %v3040_v11 = vperm.slane %v3032_v16, %v7025_v10  ;;  %v3041_v61 = vrot.slane %v3036_v12, 4  ;;  %v3088_v7 = vperm.slane %v3082_v5, %v7025_v10 }
 0x219   : > { %v3015_v17 = vsel %vm1644_vm0, 0, %v3014_v3  ;;  %v3064_v40 = vrot.slane %v3063_v31, 4  ;;  %v3330_v16 = vsel %vm3213_vm2, %v6247_v2, 0  ;;  %v3148_v19 = vshrl.u32 %v3063_v31, 16 }
 0x21a   : > { %v3017_v46 = vsel %vm1644_vm0, 0, %v3016_v14  ;;  %v3043_v18 = vrot.slane %v3040_v11, 4  ;;  %v3095_v26 = vsel %vm1644_vm0, %v3016_v14, %v3009_v23  ;;  %v3042_v32 = vsel %vm1644_vm0, 0, %v3041_v61 }
 0x21b   : > { %v3100_v22 = vrot.slane %v3017_v46, 4  ;;  %v3089_v20 = vrot.slane %v3088_v7, 4  ;;  %v3099_v37 = vperm.slane %v3095_v26, %v7011_v21  ;;  %v3147_v25 = vpack.i.b16 %v3088_v7, %v3063_v31 }
 0x21c   : > { %v3044_v24 = vsel %vm1644_vm0, 0, %v3043_v18  ;;  %v3120_v34 = vsel %vm1644_vm0, %v3043_v18, %v3036_v12  ;;  %v3065_v1 = vsel %vm1644_vm0, 0, %v3064_v40  ;;  %v3149_v61 = vshrl.u32 %v3088_v7, 16 }
 0x21d   : > { %v3101_v28 = vsel %vm1644_vm0, %v3100_v22, %v3015_v17  ;;  %v3125_v30 = vrot.slane %v3044_v24, 4  ;;  %v3124_v41 = vperm.slane %v3120_v34, %v7011_v21  ;;  %v3090_v47 = vsel %vm1644_vm0, 0, %v3089_v20 }
 0x21e   : > { %v7205_v33 = vperm.slane %v3101_v28, %v7011_v21  ;;  %v3155_v54 = vshrl.u32 %v3090_v47, 16  ;;  %v3153_v59 = vpack.i.b16 %v3090_v47, %v3065_v1  ;;  %v3154_v60 = vshrl.u32 %v3065_v1, 16 }
 0x21f   : > { %v3126_v36 = vsel %vm1644_vm0, %v3125_v30, %v3042_v32  ;;  %v3205_v62 = vunpack.c.l.b16 %v3147_v25  ;;  %v3150_v17 = vpack.i.b16 %v3149_v61, %v3148_v19  ;;  %v3133_v26 = vrot.slane %v3124_v41, 4  ;;  %v6248_v30 = vld [vmem:[#allocation2 + $0x28] sm:$0xff] }
 0x220   : > { %v3106_v38 = vrot.slane %v7205_v33, 4  ;;  %v3130_v39 = vperm.slane %v3126_v36, %v7011_v21  ;;  %v3156_v4 = vpack.i.b16 %v3155_v54, %v3154_v60  ;;  %v3262_v8 = vunpack.c.l.b16 %v3153_v59 }
 0x221   : > { %v3234_v28 = vunpack.c.l.b16 %v3150_v17  ;;  %v3108_v32 = vrot.slane %v3099_v37, 4  ;;  %v3083_v34 = vrot.slane %v7183_v52, 4  ;;  %v3058_v20 = vrot.slane %v7188_v13, 4 }
 0x222   : > { %v3107_v44 = vsel %vm1644_vm0, %v3106_v38, %v3099_v37  ;;  %v3131_v45 = vrot.slane %v3130_v39, 4  ;;  %v3290_v14 = vunpack.c.l.b16 %v3156_v4  ;;  %v3134_v38 = vsel %vm1644_vm0, %v3130_v39, %v3133_v26 }
 0x223   : > { %v3113_v42 = vperm.slane %v3107_v44, %v7025_v10  ;;  %v3358_v7 = vsel %vm3213_vm2, %v6248_v30, 0  ;;  %v3084_v31 = vsel %vm1644_vm0, %v7165_v51, %v3083_v34  ;;  %v3109_v40 = vsel %vm1644_vm0, %v7205_v33, %v3108_v32 }
 0x224   : > { %v3132_v48 = vsel %vm1644_vm0, %v3131_v45, %v3124_v41  ;;  %v3144_v37 = vperm.slane %v3134_v38, %v7025_v10  ;;  %v3059_v52 = vsel %vm1644_vm0, %v7170_v56, %v3058_v20  ;;  %v3094_v13 = vperm.slane %v3084_v31, %v7025_v10 }
 0x225   : > { %v3138_v49 = vperm.slane %v3132_v48, %v7025_v10  ;;  %v3114_v53 = vrot.slane %v3113_v42, 4  ;;  %v3166_v18 = vshrl.u32 %v3113_v42, 16  ;;  %v3119_v39 = vperm.slane %v3109_v40, %v7025_v10 }
 0x226   : > { %v3069_v41 = vperm.slane %v3059_v52, %v7025_v10  ;;  %v3179_v51 = vshrl.u32 %v3144_v37, 16  ;;  %v3161_v33 = vshrl.u32 %v3094_v13, 16  ;;  %v6745_v60 = vmov 0.0  }
 0x227   : > { %v3165_v55 = vpack.i.b16 %v3138_v49, %v3113_v42  ;;  %v3115_v15 = vsel %vm1644_vm0, 0, %v3114_v53  ;;  %v3139_v58 = vrot.slane %v3138_v49, 4  ;;  %v3167_v5 = vshrl.u32 %v3138_v49, 16 }
 0x228   : > { %v3172_v50 = vshrl.u32 %v3115_v15, 16  ;;  %v3177_v44 = vpack.i.b16 %v3144_v37, %v3119_v39  ;;  %v3159_v45 = vpack.i.b16 %v3094_v13, %v3069_v41  ;;  %v3178_v49 = vshrl.u32 %v3119_v39, 16 }
 0x229   : > { %v3206_v0 = vunpack.c.l.b16 %v3165_v55  ;;  %v3140_v57 = vsel %vm1644_vm0, 0, %v3139_v58  ;;  %v3168_v22 = vpack.i.b16 %v3167_v5, %v3166_v18  ;;  %v3160_v25 = vshrl.u32 %v3069_v41, 16 }
 0x22a   : > { %v3171_v23 = vpack.i.b16 %v3140_v57, %v3115_v15  ;;  %v3173_v6 = vshrl.u32 %v3140_v57, 16  ;;  %v3319_v42 = vunpack.c.l.b16 %v3177_v44  ;;  %v3318_v47 = vunpack.c.l.b16 %v3159_v45 }
 0x22b   : > { %v3207_v63 = vpack.c.b16 %v3206_v0, %v3205_v62  ;;  %v3235_v24 = vunpack.c.l.b16 %v3168_v22  ;;  %v3180_v1 = vpack.i.b16 %v3179_v51, %v3178_v49  ;;  %v3162_v53 = vpack.i.b16 %v3161_v33, %v3160_v25 }
 0x22c   : > { %v3263_v9 = vunpack.c.l.b16 %v3171_v23  ;;  %v3174_v12 = vpack.i.b16 %v3173_v6, %v3172_v50  ;;  %v3320_v48 = vpack.c.b16 %v3319_v42, %v3318_v47  ;;  %v3193_v15 = vlaneseq  ;;  %v7285_v42 = vpop.permute.xlu1 %1929 }
 0x22d   : > { %5680 = vmatmul.msk.bf16.vlgmr.msra.gmra.mxu3 %vm3213_vm2, %v3207_v63  ;;  %v3236_v36 = vpack.c.b16 %v3235_v24, %v3234_v28  ;;  %v3347_v56 = vunpack.c.l.b16 %v3180_v1  ;;  %v3346_v54 = vunpack.c.l.b16 %v3162_v53  ;;  %v7279_v41 = vpack.c.bf16 %v6996_v43, %v6996_v43 }
 0x22e   : > { %3339 = vmatpush.bf16.xpose.msra.mxu3 %v3330_v16  ;;  %v3264_v3 = vpack.c.b16 %v3263_v9, %v3262_v8  ;;  %v3291_v11 = vunpack.c.l.b16 %v3174_v12  ;;  %v3194_v58 = vshrl.u32 %v3193_v15, 7  ;;  %v3200_v59 = vand.u32 127, %v3193_v15 }
 0x22f   : > { %v3348_v55 = vpack.c.b16 %v3347_v56, %v3346_v54 }
 0x230   : > { %5690 = vmatmul.msk.bf16.vlgmr.msrb.gmra.mxu0 %vm3213_vm2, %v3264_v3  ;;  %v3292_v46 = vpack.c.b16 %v3291_v11, %v3290_v14  ;;  %vm3201_vm3 = vcmp.gt.s32.totalorder %v3200_v59, %v3194_v58  ;;  %v3195_v0 = vadd.s32 8, %v3194_v58 }
 0x231   : > { %v3203_v62 = vsel %vm3201_vm3, -1e+30, %v6745_v60 }
 0x232   : > { %5695 = vmatmul.msk.bf16.vlgmr.msrb.gmra.mxu1 %vm3213_vm2, %v3292_v46  ;;  %vm3202_vm5 = vcmp.gt.s32.totalorder %v3200_v59, %v3195_v0 }
 0x233   : > { %v3204_v8 = vsel %vm3202_vm5, -1e+30, %v6745_v60 }
 0x23d   : > { %5685 = vmatmul.msk.bf16.vlgmr.msrb.gmra.mxu3 %vm3213_vm2, %v3236_v36 }
 0x23e   : > { %3367 = vmatpush.bf16.xpose.msrb.mxu3 %v3358_v7 }
 0x24d   : > { %5700 = vmatmul.msk.bf16.vlgmr.msra.gmra.mxu3 %vm3213_vm2, %v3320_v48 }
 0x25d   : > { %5705 = vmatmul.msk.bf16.vlgmr.msrb.gmra.mxu3 %vm3213_vm2, %v3348_v55 }
 0x2ad   : > { %v3285_v2 = vpop.f32.mrf.mxu0 }
 0x2ae   : > { %v3286_v57 = vadd.f32 %v3285_v2, %v3203_v62 }
 0x2af   : > { %v3313_v23 = vpop.f32.mrf.mxu1 }
 0x2b0   : > { %v7242_v4 = vadd.f32 %v3313_v23, %v3203_v62  ;;  %v3229_v50 = vpop.f32.mrf.mxu3  ;;  %v3387_v6 = vsel %vm3374_vm4, %v3286_v57, -inf }
 0x2b1   : > { %3388 = vmax.xlane.f32.xlu2 %v3387_v6  ;;  %v3230_v9 = vadd.f32 %v3229_v50, %v3203_v62 }
 0x2b2   : > { %v3393_v63 = vsel %vm3374_vm4, %v7242_v4, -inf }
 0x2b3   : > { %3394 = vmax.xlane.f32.xlu1 %v3393_v63  ;;  %v3375_v11 = vsel %vm3374_vm4, %v3230_v9, -inf }
 0x2b5   : > { %v3287_v12 = vpop.f32.mrf.mxu0 }
 0x2b6   : > { %v3288_v16 = vadd.f32 %v3287_v12, %v3204_v8 }
 0x2b7   : > { %v3315_v5 = vpop.f32.mrf.mxu1 }
 0x2b8   : > { %v3231_v3 = vpop.f32.mrf.mxu3  ;;  %v3390_v14 = vsel %vm3374_vm4, %v3288_v16, -inf  ;;  %v7249_v46 = vadd.f32 %v3315_v5, %v3204_v8 }
 0x2b9   : > { %3391 = vmax.xlane.f32.xlu0 %v3390_v14  ;;  %3376 = vmax.xlane.f32.xlu2 %v3375_v11  ;;  %v3232_v61 = vadd.f32 %v3231_v3, %v3204_v8 }
 0x2ba   : > { %v3396_v22 = vsel %vm3374_vm4, %v7249_v46, -inf }
 0x2bb   : > { %v3378_v19 = vsel %vm3374_vm4, %v3232_v61, -inf }
 0x2c0   : > { %v3257_v18 = vpop.f32.mrf.mxu3 }
 0x2c1   : > { %v3258_v17 = vadd.f32 %v3257_v18, %v3203_v62  ;;  %3379 = vmax.xlane.f32.xlu0 %v3378_v19  ;;  %3397 = vmax.xlane.f32.xlu2 %v3396_v22 }
 0x2c3   : > { %v3381_v24 = vsel %vm3374_vm4, %v3258_v17, -inf }
 0x2c4   : > { %3382 = vmax.xlane.f32.xlu1 %v3381_v24 }
 0x2c8   : > { %v3259_v26 = vpop.f32.mrf.mxu3 }
 0x2c9   : > { %v7255_v28 = vadd.f32 %v3259_v26, %v3204_v8 }
 0x2cb   : > { %v3384_v30 = vsel %vm3374_vm4, %v7255_v28, -inf }
 0x2cc   : > { %3385 = vmax.xlane.f32.xlu2 %v3384_v30 }
 0x2d0   : > { %v3341_v32 = vpop.f32.mrf.mxu3 }
 0x2d1   : > { %v7259_v34 = vadd.f32 %v3341_v32, %v3203_v62 }
 0x2d3   : > { %v3399_v36 = vsel %vm3374_vm4, %v7259_v34, -inf }
 0x2d4   : > { %3400 = vmax.xlane.f32.xlu0 %v3399_v36 }
 0x2d8   : > { %v3343_v20 = vpop.f32.mrf.mxu3 }
 0x2d9   : > { %v7263_v38 = vadd.f32 %v3343_v20, %v3204_v8 }
 0x2db   : > { %v3402_v7 = vsel %vm3374_vm4, %v7263_v38, -inf }
 0x2dc   : > { %3403 = vmax.xlane.f32.xlu1 %v3402_v7 }
 0x2e0   : > { %v3369_v31 = vpop.f32.mrf.mxu3 }
 0x2e1   : > { %v7267_v40 = vadd.f32 %v3369_v31, %v3203_v62 }
 0x2e3   : > { %v3405_v37 = vsel %vm3374_vm4, %v7267_v40, -inf }
 0x2e4   : > { %3406 = vmax.xlane.f32.xlu2 %v3405_v37 }
 0x2e8   : > { %v3371_v52 = vpop.f32.mrf.mxu3 }
 0x2e9   : > { %v7271_v13 = vadd.f32 %v3371_v52, %v3204_v8 }
 0x2eb   : > { %v3408_v39 = vsel %vm3374_vm4, %v7271_v13, -inf }
 0x2ec   : > { %3409 = vmax.xlane.f32.xlu0 %v3408_v39 }
 0x2f5   : > { %1923 = vrot.lane.b32.xlu1 %v6994_v35, %s6742_s2 }
 0x2fc   : > { %1931 = vrot.lane.b32.xlu2 %v7279_v41, %s6742_s2 }
 0x300   : > { %1921 = vrot.lane.b32.xlu0 %v6992_v29, %s6742_s2 }
 0x324   : > { %v3389_v44 = vpop.xlane.xlu2 %3388 }
 0x325   : > { %v3415_v45 = vsub.f32 %v3286_v57, %v3389_v44 }
 0x326   : > { %v3395_v43 = vpop.xlane.xlu1 %3394 }
 0x327   : > { %v3431_v47 = vmul.f32 1.442695, %v3415_v45  ;;  %v3417_v3 = vsub.f32 %v7242_v4, %v3395_v43  ;;  %v1920_v43 = vrot.slane %v6994_v35, 4 }
 0x329   : > { %6444 = vpow2.f32 %v3431_v47 }
 0x32c   : > { %v3392_v48 = vpop.xlane.xlu0 %3391  ;;  %v3377_v51 = vpop.xlane.xlu2 %3376 }
 0x32d   : > { %v3416_v33 = vsub.f32 %v3288_v16, %v3392_v48  ;;  %v3411_v49 = vsub.f32 %v3230_v9, %v3377_v51  ;;  %v1973_v51 = vshrl.u32 %v7279_v41, 16 }
 0x32f   : > { %v7287_v25 = vpop.eup %6444  ;;  %v3433_v1 = vmul.f32 1.442695, %v3416_v33  ;;  %v3423_v53 = vmul.f32 1.442695, %v3411_v49 }
 0x330   : > { %v3459_v56 = vsel %vm3374_vm4, %v7287_v25, 0.0 }
 0x331   : > { %6446 = vpow2.f32 %v3433_v1  ;;  %3460 = vadd.xlane.f32.xlu2 %v3459_v56  ;;  %v1959_v1 = vshrl.u32 %v6994_v35, 16 }
 0x332   : > { %6448 = vpow2.f32 %v3423_v53 }
 0x334   : > { %v3380_v54 = vpop.xlane.xlu0 %3379  ;;  %v3398_v55 = vpop.xlane.xlu2 %3397 }
 0x335   : > { %v3412_v15 = vsub.f32 %v3232_v61, %v3380_v54  ;;  %v3418_v60 = vsub.f32 %v7249_v46, %v3398_v55  ;;  %v3435_v46 = vmul.f32 1.442695, %v3417_v3  ;;  %v1949_v3 = vpack.i.b16 %v7285_v42, %v7015_v27 }
 0x337   : > { %v7291_v58 = vpop.eup %6446  ;;  %v3425_v59 = vmul.f32 1.442695, %v3412_v15  ;;  %v3383_v62 = vpop.xlane.xlu1 %3382  ;;  %v3437_v6 = vmul.f32 1.442695, %v3418_v60  ;;  %v1952_v15 = vshrl.u32 %v7285_v42, 16  ;;  %v1966_v60 = vshrl.u32 %v1920_v43, 16 }
 0x338   : > { %v7294_v0 = vpop.eup %6448  ;;  %v3413_v2 = vsub.f32 %v3258_v17, %v3383_v62  ;;  %v3462_v57 = vsel %vm3374_vm4, %v7291_v58, 0.0 }
 0x339   : > { %6450 = vpow2.f32 %v3425_v59  ;;  %3463 = vadd.xlane.f32.xlu1 %v3462_v57  ;;  %v3447_v23 = vsel %vm3374_vm4, %v7294_v0, 0.0 }
 0x33a   : > { %v3427_v50 = vmul.f32 1.442695, %v3413_v2  ;;  %3448 = vadd.xlane.f32.xlu0 %v3447_v23 }
 0x33c   : > { %6452 = vpow2.f32 %v3427_v50 }
 0x33d   : > { %6454 = vpow2.f32 %v3437_v6 }
 0x33f   : > { %v7300_v63 = vpop.eup %6450  ;;  %v3386_v8 = vpop.xlane.xlu2 %3385 }
 0x340   : > { %v3414_v9 = vsub.f32 %v7255_v28, %v3386_v8  ;;  %v3450_v12 = vsel %vm3374_vm4, %v7300_v63, 0.0  ;;  %v1951_v8 = vshrl.u32 %v7015_v27, 16  ;;  %v1977_v27 = vrot.slane %v1949_v3, 4 }
 0x341   : > { %3451 = vadd.xlane.f32.xlu2 %v3450_v12 }
 0x342   : > { %v7305_v16 = vpop.eup %6452  ;;  %v3429_v14 = vmul.f32 1.442695, %v3414_v9 }
 0x343   : > { %v3453_v11 = vsel %vm3374_vm4, %v7305_v16, 0.0  ;;  %v7310_v5 = vpop.eup %6454 }
 0x344   : > { %6456 = vpow2.f32 %v3429_v14  ;;  %3454 = vadd.xlane.f32.xlu1 %v3453_v11  ;;  %v3468_v19 = vsel %vm3374_vm4, %v7310_v5, 0.0 }
 0x345   : > { %6458 = vpow2.f32 %v3435_v46  ;;  %v1919_v46 = vrot.slane %v6992_v29, 4 }
 0x347   : > { %v3401_v61 = vpop.xlane.xlu0 %3400 }
 0x348   : > { %v3419_v18 = vsub.f32 %v7259_v34, %v3401_v61  ;;  %v1953_v61 = vpack.i.b16 %v1952_v15, %v1951_v8 }
 0x349   : > { %3469 = vadd.xlane.f32.xlu2 %v3468_v19 }
 0x34a   : > { %v7315_v22 = vpop.eup %6456  ;;  %v3439_v4 = vmul.f32 1.442695, %v3419_v18 }
 0x34b   : > { %v3456_v17 = vsel %vm3374_vm4, %v7315_v22, 0.0  ;;  %v7319_v26 = vpop.eup %6458 }
 0x34c   : > { %6460 = vpow2.f32 %v3439_v4  ;;  %3457 = vadd.xlane.f32.xlu0 %v3456_v17  ;;  %v3465_v36 = vsel %vm3374_vm4, %v7319_v26, 0.0 }
 0x34f   : > { %v3404_v24 = vpop.xlane.xlu1 %3403 }
 0x350   : > { %v3420_v28 = vsub.f32 %v7263_v38, %v3404_v24 }
 0x352   : > { %v7322_v30 = vpop.eup %6460  ;;  %v3441_v32 = vmul.f32 1.442695, %v3420_v28 }
 0x353   : > { %v3471_v34 = vsel %vm3374_vm4, %v7322_v30, 0.0 }
 0x354   : > { %6462 = vpow2.f32 %v3441_v32  ;;  %3472 = vadd.xlane.f32.xlu1 %v3471_v34  ;;  %3466 = vadd.xlane.f32.xlu0 %v3465_v36  ;;  %v1937_v34 = vshrl.u32 %v6992_v29, 16 }
 0x357   : > { %v3407_v20 = vpop.xlane.xlu2 %3406 }
 0x358   : > { %v3421_v7 = vsub.f32 %v7267_v40, %v3407_v20  ;;  %v1944_v20 = vshrl.u32 %v1919_v46, 16 }
 0x35a   : > { %v7329_v31 = vpop.eup %6462  ;;  %v3443_v37 = vmul.f32 1.442695, %v3421_v7  ;;  %v2004_v7 = vrot.slane %v1953_v61, 4 }
 0x35b   : > { %v3474_v38 = vsel %vm3374_vm4, %v7329_v31, 0.0 }
 0x35c   : > { %6464 = vpow2.f32 %v3443_v37  ;;  %3475 = vadd.xlane.f32.xlu0 %v3474_v38 }
 0x35f   : > { %v3410_v52 = vpop.xlane.xlu0 %3409  ;;  %v1932_v39 = vpop.permute.xlu2 %1931 }
 0x360   : > { %v3422_v44 = vsub.f32 %v7271_v13, %v3410_v52  ;;  %v1974_v45 = vshrl.u32 %v1932_v39, 16  ;;  %v1971_v33 = vpack.i.b16 %v1932_v39, %v7279_v41 }
 0x362   : > { %v7334_v47 = vpop.eup %6464  ;;  %v3445_v48 = vmul.f32 1.442695, %v3422_v44  ;;  %v1975_v49 = vpack.i.b16 %v1974_v45, %v1973_v51  ;;  %v2031_v13 = vrot.slane %v1971_v33, 4 }
 0x363   : > { %v3477_v40 = vsel %vm3374_vm4, %v7334_v47, 0.0 }
 0x364   : > { %6466 = vpow2.f32 %v3445_v48  ;;  %3478 = vadd.xlane.f32.xlu2 %v3477_v40  ;;  %v2058_v59 = vrot.slane %v1975_v49, 4 }
 0x367   : > { %v1924_v53 = vpop.permute.xlu1 %1923 }
 0x368   : > { %v1926_v56 = vrot.slane %v1924_v53, 4  ;;  %v1957_v54 = vpack.i.b16 %v1924_v53, %v6994_v35  ;;  %v1960_v55 = vshrl.u32 %v1924_v53, 16 }
 0x36a   : > { %v7344_v62 = vpop.eup %6466  ;;  %v1961_v2 = vpack.i.b16 %v1960_v55, %v1959_v1  ;;  %v1965_v41 = vpack.i.b16 %v1926_v56, %v1920_v43  ;;  %v1967_v57 = vshrl.u32 %v1926_v56, 16  ;;  %v2032_v23 = vsel %vm1644_vm0, %v2031_v13, %v1957_v54 }
 0x36b   : > { %v2036_v50 = vperm.slane %v2032_v23, %v7011_v21  ;;  %v3480_v6 = vsel %vm3374_vm4, %v7344_v62, 0.0 }
 0x36c   : > { %v1968_v35 = vpack.i.b16 %v1967_v57, %v1966_v60  ;;  %v2041_v9 = vperm.slane %v1965_v41, %v7011_v21  ;;  %v2059_v12 = vsel %vm1644_vm0, %v2058_v59, %v1961_v2  ;;  %3481 = vadd.xlane.f32.xlu1 %v3480_v6 }
 0x36d   : > { %v2044_v14 = vrot.slane %v2036_v50, 4  ;;  %v2063_v11 = vperm.slane %v2059_v12, %v7011_v21 }
 0x36e   : > { %v2042_v18 = vrot.slane %v2041_v9, 4  ;;  %v2068_v19 = vperm.slane %v1968_v35, %v7011_v21 }
 0x36f   : > { %v2045_v4 = vsel %vm1644_vm0, %v2041_v9, %v2044_v14  ;;  %v2071_v17 = vrot.slane %v2063_v11, 4 }
 0x370   : > { %v2043_v24 = vsel %vm1644_vm0, %v2042_v18, %v2036_v50  ;;  %v2053_v28 = vperm.slane %v2045_v4, %v7025_v10  ;;  %v2069_v32 = vrot.slane %v2068_v19, 4 }
 0x371   : > { %v2049_v42 = vperm.slane %v2043_v24, %v7025_v10  ;;  %v2072_v36 = vsel %vm1644_vm0, %v2068_v19, %v2071_v17 }
 0x372   : > { %v2056_v37 = vrot.slane %v2053_v28, 4  ;;  %v2070_v38 = vsel %vm1644_vm0, %v2069_v32, %v2063_v11  ;;  %v2080_v52 = vperm.slane %v2072_v36, %v7025_v10  ;;  %v1922_v39 = vpop.permute.xlu0 %1921 }
 0x373   : > { %v2054_v44 = vrot.slane %v2049_v42, 4  ;;  %v2076_v45 = vperm.slane %v2070_v38, %v7025_v10  ;;  %v1925_v48 = vrot.slane %v1922_v39, 4  ;;  %v1935_v51 = vpack.i.b16 %v1922_v39, %v6992_v29 }
 0x374   : > { %v2057_v40 = vsel %vm1644_vm0, 0, %v2056_v37  ;;  %v2083_v33 = vrot.slane %v2080_v52, 4  ;;  %v2135_v49 = vsel %vm1644_vm0, %v2056_v37, %v2049_v42  ;;  %v1938_v43 = vshrl.u32 %v1922_v39, 16 }
 0x375   : > { %v2055_v1 = vsel %vm1644_vm0, 0, %v2054_v44  ;;  %v2081_v53 = vrot.slane %v2076_v45, 4  ;;  %v2139_v13 = vperm.slane %v2135_v49, %v7011_v21  ;;  %v2140_v56 = vrot.slane %v2057_v40, 4 }
 0x376   : > { %v2084_v54 = vsel %vm1644_vm0, 0, %v2083_v33  ;;  %v2160_v55 = vsel %vm1644_vm0, %v2083_v33, %v2076_v45  ;;  %v1939_v15 = vpack.i.b16 %v1938_v43, %v1937_v34  ;;  %v1943_v59 = vpack.i.b16 %v1925_v48, %v1919_v46 }
 0x377   : > { %v2082_v29 = vsel %vm1644_vm0, 0, %v2081_v53  ;;  %v2141_v60 = vsel %vm1644_vm0, %v2140_v56, %v2055_v1  ;;  %v2148_v2 = vrot.slane %v2139_v13, 4  ;;  %v2164_v41 = vperm.slane %v2160_v55, %v7011_v21 }
 0x378   : > { %v2145_v57 = vperm.slane %v2141_v60, %v7011_v21  ;;  %v2165_v23 = vrot.slane %v2084_v54, 4  ;;  %v1945_v50 = vshrl.u32 %v1925_v48, 16  ;;  %v1978_v6 = vsel %vm1644_vm0, %v1977_v27, %v1935_v51 }
 0x379   : > { %v2173_v8 = vrot.slane %v2164_v41, 4  ;;  %v1982_v35 = vperm.slane %v1978_v6, %v7011_v21  ;;  %v1987_v9 = vperm.slane %v1943_v59, %v7011_v21  ;;  %v2005_v12 = vsel %vm1644_vm0, %v2004_v7, %v1939_v15 }
 0x37a   : > { %v2146_v3 = vrot.slane %v2145_v57, 4  ;;  %v2149_v14 = vsel %vm1644_vm0, %v2145_v57, %v2148_v2  ;;  %v2166_v11 = vsel %vm1644_vm0, %v2165_v23, %v2082_v29  ;;  %v1946_v46 = vpack.i.b16 %v1945_v50, %v1944_v20 }
 0x37b   : > { %v2159_v61 = vperm.slane %v2149_v14, %v7025_v10  ;;  %v2170_v18 = vperm.slane %v2166_v11, %v7011_v21  ;;  %v1988_v19 = vrot.slane %v1987_v9, 4  ;;  %v1990_v4 = vrot.slane %v1982_v35, 4 }
 0x37c   : > { %v2147_v17 = vsel %vm1644_vm0, %v2146_v3, %v2139_v13  ;;  %v2009_v24 = vperm.slane %v2005_v12, %v7011_v21  ;;  %v2014_v28 = vperm.slane %v1946_v46, %v7011_v21 }
 0x37d   : > { %v2153_v32 = vperm.slane %v2147_v17, %v7025_v10  ;;  %v2171_v34 = vrot.slane %v2170_v18, 4  ;;  %v2174_v27 = vsel %vm1644_vm0, %v2170_v18, %v2173_v8  ;;  %v2229_v42 = vshrl.u32 %v2159_v61, 16 }
 0x37e   : > { %v2184_v36 = vperm.slane %v2174_v27, %v7025_v10  ;;  %v1989_v20 = vsel %vm1644_vm0, %v1988_v19, %v1982_v35  ;;  %v1991_v7 = vsel %vm1644_vm0, %v1987_v9, %v1990_v4  ;;  %v2015_v37 = vrot.slane %v2014_v28, 4 }
 0x37f   : > { %v2154_v38 = vrot.slane %v2153_v32, 4  ;;  %v2172_v52 = vsel %vm1644_vm0, %v2171_v34, %v2164_v41  ;;  %v2213_v39 = vshrl.u32 %v2153_v32, 16  ;;  %v1995_v44 = vperm.slane %v1989_v20, %v7025_v10 }
 0x380   : > { %v2178_v45 = vperm.slane %v2172_v52, %v7025_v10  ;;  %v2227_v48 = vpack.i.b16 %v2184_v36, %v2159_v61  ;;  %v2230_v51 = vshrl.u32 %v2184_v36, 16  ;;  %v1999_v40 = vperm.slane %v1991_v7, %v7025_v10 }
 0x381   : > { %v2155_v33 = vsel %vm1644_vm0, 0, %v2154_v38  ;;  %v2000_v49 = vrot.slane %v1995_v44, 4  ;;  %v2016_v43 = vsel %vm1644_vm0, %v2015_v37, %v2009_v24  ;;  %v2017_v1 = vrot.slane %v2009_v24, 4 }
 0x382   : > { %v2179_v53 = vrot.slane %v2178_v45, 4  ;;  %v2211_v13 = vpack.i.b16 %v2178_v45, %v2153_v32  ;;  %v2214_v56 = vshrl.u32 %v2178_v45, 16  ;;  %v2221_v54 = vshrl.u32 %v2155_v33, 16  ;;  %2242 = vst.msk [vmem:[#allocation3 + $0x24] sm:$0xf] %vm1900_vm1, %v2227_v48 }
 0x383   : > { %v2231_v55 = vpack.i.b16 %v2230_v51, %v2229_v42  ;;  %v2001_v15 = vsel %vm1644_vm0, 0, %v2000_v49  ;;  %v2002_v59 = vrot.slane %v1999_v40, 4  ;;  %v2018_v29 = vsel %vm1644_vm0, %v2014_v28, %v2017_v1 }
 0x384   : > { %v2180_v60 = vsel %vm1644_vm0, 0, %v2179_v53  ;;  %v2215_v2 = vpack.i.b16 %v2214_v56, %v2213_v39  ;;  %2234 = vst.msk [vmem:[#allocation3 + $0x4] sm:$0xf] %vm1900_vm1, %v2211_v13  ;;  %v2022_v41 = vperm.slane %v2016_v43, %v7025_v10  ;;  %v2026_v57 = vperm.slane %v2018_v29, %v7025_v10 }
 0x385   : > { %v2219_v23 = vpack.i.b16 %v2180_v60, %v2155_v33  ;;  %v2222_v50 = vshrl.u32 %v2180_v60, 16  ;;  %2244 = vst.msk [vmem:[#allocation3 + $0x2c] sm:$0xf] %vm1900_vm1, %v2231_v55  ;;  %v2003_v6 = vsel %vm1644_vm0, 0, %v2002_v59  ;;  %v2085_v8 = vsel %vm1644_vm0, %v2002_v59, %v1995_v44 }
 0x386   : > { %2236 = vst.msk [vmem:[#allocation3 + $0xc] sm:$0xf] %vm1900_vm1, %v2215_v2  ;;  %v2027_v35 = vrot.slane %v2022_v41, 4  ;;  %v2029_v9 = vrot.slane %v2026_v57, 4  ;;  %v2089_v12 = vperm.slane %v2085_v8, %v7011_v21  ;;  %v2090_v3 = vrot.slane %v2003_v6, 4 }
 0x387   : > { %v2223_v14 = vpack.i.b16 %v2222_v50, %v2221_v54  ;;  %2238 = vst.msk [vmem:[#allocation3 + $0x14] sm:$0xf] %vm1900_vm1, %v2219_v23 }
 0x388   : > { %v2028_v11 = vsel %vm1644_vm0, 0, %v2027_v35  ;;  %v2030_v46 = vsel %vm1644_vm0, 0, %v2029_v9  ;;  %v2091_v61 = vsel %vm1644_vm0, %v2090_v3, %v2001_v15  ;;  %v2098_v18 = vrot.slane %v2089_v12, 4 }
 0x389   : > { %2240 = vst.msk [vmem:[#allocation3 + $0x1c] sm:$0xf] %vm1900_vm1, %v2223_v14  ;;  %v2095_v19 = vperm.slane %v2091_v61, %v7011_v21  ;;  %v2110_v4 = vsel %vm1644_vm0, %v2029_v9, %v2022_v41  ;;  %v2115_v17 = vrot.slane %v2030_v46, 4 }
 0x38a   : > { %v2114_v24 = vperm.slane %v2110_v4, %v7011_v21 }
 0x38b   : > { %v2096_v28 = vrot.slane %v2095_v19, 4  ;;  %v2099_v32 = vsel %vm1644_vm0, %v2095_v19, %v2098_v18  ;;  %v2116_v34 = vsel %vm1644_vm0, %v2115_v17, %v2028_v11 }
 0x38c   : > { %v2120_v27 = vperm.slane %v2116_v34, %v7011_v21  ;;  %v2123_v42 = vrot.slane %v2114_v24, 4  ;;  %v2109_v7 = vperm.slane %v2099_v32, %v7025_v10 }
 0x38d   : > { %v2097_v36 = vsel %vm1644_vm0, %v2096_v28, %v2089_v12 }
 0x38e   : > { %v2103_v20 = vperm.slane %v2097_v36, %v7025_v10  ;;  %v2121_v37 = vrot.slane %v2120_v27, 4  ;;  %v2124_v38 = vsel %vm1644_vm0, %v2120_v27, %v2123_v42  ;;  %v2205_v33 = vshrl.u32 %v2109_v7, 16 }
 0x38f   : > { %v2134_v52 = vperm.slane %v2124_v38, %v7025_v10 }
 0x390   : > { %v2104_v39 = vrot.slane %v2103_v20, 4  ;;  %v2122_v44 = vsel %vm1644_vm0, %v2121_v37, %v2114_v24  ;;  %v2189_v40 = vshrl.u32 %v2103_v20, 16 }
 0x391   : > { %v2128_v45 = vperm.slane %v2122_v44, %v7025_v10  ;;  %v2203_v48 = vpack.i.b16 %v2134_v52, %v2109_v7  ;;  %v2206_v51 = vshrl.u32 %v2134_v52, 16 }
 0x392   : > { %v2105_v49 = vsel %vm1644_vm0, 0, %v2104_v39 }
 0x393   : > { %v2129_v43 = vrot.slane %v2128_v45, 4  ;;  %v2187_v1 = vpack.i.b16 %v2128_v45, %v2103_v20  ;;  %v2190_v53 = vshrl.u32 %v2128_v45, 16  ;;  %2241 = vst.msk [vmem:[#allocation3 + $0x20] sm:$0xf] %vm1900_vm1, %v2203_v48  ;;  %v2207_v13 = vpack.i.b16 %v2206_v51, %v2205_v33 }
 0x394   : > { %v2197_v15 = vshrl.u32 %v2105_v49, 16 }
 0x395   : > { %v2130_v56 = vsel %vm1644_vm0, 0, %v2129_v43  ;;  %v2191_v54 = vpack.i.b16 %v2190_v53, %v2189_v40  ;;  %2233 = vst.msk [vmem:[#allocation3] sm:$0xf] %vm1900_vm1, %v2187_v1 }
 0x396   : > { %v2195_v55 = vpack.i.b16 %v2130_v56, %v2105_v49  ;;  %v2198_v59 = vshrl.u32 %v2130_v56, 16  ;;  %2243 = vst.msk [vmem:[#allocation3 + $0x28] sm:$0xf] %vm1900_vm1, %v2207_v13 }
 0x397   : > { %2235 = vst.msk [vmem:[#allocation3 + $0x8] sm:$0xf] %vm1900_vm1, %v2191_v54 }
 0x398   : > { %v2199_v29 = vpack.i.b16 %v2198_v59, %v2197_v15  ;;  %2237 = vst.msk [vmem:[#allocation3 + $0x10] sm:$0xf] %vm1900_vm1, %v2195_v55 }
 0x39a   : > { %2239 = vst.msk [vmem:[#allocation3 + $0x18] sm:$0xf] %vm1900_vm1, %v2199_v29  ;;  %v6253_v2 = vld [vmem:[#allocation3 + $0x20] sm:$0xff] }
 0x39c   : > { %v6249_v60 = vld [vmem:[#allocation3] sm:$0xff] }
 0x39d   : > { %3552 = vmatpush.bf16.msra.mxu0 %v6249_v60  ;;  %v6254_v23 = vld [vmem:[#allocation3 + $0x28] sm:$0xff] }
 0x39e   : > { %v6250_v41 = vld [vmem:[#allocation3 + $0x8] sm:$0xff] }
 0x39f   : > { %v6251_v57 = vld [vmem:[#allocation3 + $0x10] sm:$0xff]  ;;  %3580 = vmatpush.bf16.msra.mxu1 %v6250_v41 }
 0x3a0   : > { %3608 = vmatpush.bf16.msrb.mxu2 %v6251_v57 }
 0x3a1   : > { %3664 = vmatpush.bf16.msrb.mxu0 %v6253_v2  ;;  %v6252_v50 = vld [vmem:[#allocation3 + $0x18] sm:$0xff] }
 0x3a2   : > { %3636 = vmatpush.bf16.msra.mxu3 %v6252_v50 }
 0x3a3   : > { %3692 = vmatpush.bf16.msrb.mxu1 %v6254_v23 }
 0x3a4   : > { %v3461_v6 = vpop.xlane.xlu2 %3460 }
 0x3a5   : > { %6468 = vrcp.f32 %v3461_v6 }
 0x3ab   : > { %v6469_v35 = vpop.eup %6468 }
 0x3ac   : > { %v3464_v8 = vpop.xlane.xlu1 %3463  ;;  %v3499_v12 = vmul.f32 %v6469_v35, %v7287_v25 }
 0x3ad   : > { %6470 = vrcp.f32 %v3464_v8  ;;  %v3449_v9 = vpop.xlane.xlu0 %3448 }
 0x3ae   : > { %6472 = vrcp.f32 %v3449_v9  ;;  %v3511_v14 = vpack.c.bf16 %v3499_v12, %v3499_v12 }
 0x3b0   : > { %v3589_v4 = vunpack.c.l.b16 %v3511_v14 }
 0x3b3   : > { %v6471_v3 = vpop.eup %6470 }
 0x3b4   : > { %v3500_v11 = vmul.f32 %v6471_v3, %v7291_v58  ;;  %v3452_v46 = vpop.xlane.xlu2 %3451  ;;  %v6473_v61 = vpop.eup %6472 }
 0x3b5   : > { %6474 = vrcp.f32 %v3452_v46  ;;  %v3495_v24 = vmul.f32 %v6473_v61, %v7294_v0 }
 0x3b6   : > { %v3512_v18 = vpack.c.bf16 %v3500_v11, %v3500_v11 }
 0x3b7   : > { %v3455_v19 = vpop.xlane.xlu1 %3454  ;;  %v3507_v34 = vpack.c.bf16 %v3495_v24, %v3495_v24 }
 0x3b8   : > { %v3590_v17 = vunpack.c.l.b16 %v3512_v18  ;;  %6476 = vrcp.f32 %v3455_v19 }
 0x3b9   : > { %v3533_v36 = vunpack.c.l.b16 %v3507_v34 }
 0x3ba   : > { %v3591_v28 = vpack.c.b16 %v3590_v17, %v3589_v4 }
 0x3bb   : > { %v6475_v32 = vpop.eup %6474 }
 0x3bc   : > { %v3496_v27 = vmul.f32 %v6475_v32, %v7300_v63  ;;  %5720 = vmatmul.msk.bf16.vlgmr.msrb.gmra.mxu2 %vm3374_vm4, %v3591_v28  ;;  %v3470_v7 = vpop.xlane.xlu2 %3469 }
 0x3be   : > { %v3508_v25 = vpack.c.bf16 %v3496_v27, %v3496_v27  ;;  %v6477_v58 = vpop.eup %6476 }
 0x3bf   : > { %v3458_v42 = vpop.xlane.xlu0 %3457  ;;  %v3497_v38 = vmul.f32 %v6477_v58, %v7305_v16 }
 0x3c0   : > { %v3534_v20 = vunpack.c.l.b16 %v3508_v25  ;;  %6478 = vrcp.f32 %v3458_v42 }
 0x3c1   : > { %6480 = vrcp.f32 %v3470_v7  ;;  %v3509_v52 = vpack.c.bf16 %v3497_v38, %v3497_v38 }
 0x3c2   : > { %v3535_v37 = vpack.c.b16 %v3534_v20, %v3533_v36 }
 0x3c3   : > { %v3561_v51 = vunpack.c.l.b16 %v3509_v52 }
 0x3c4   : > { %5710 = vmatmul.msk.bf16.vlgmr.msra.gmra.mxu0 %vm3374_vm4, %v3535_v37 }
 0x3c6   : > { %v6479_v0 = vpop.eup %6478 }
 0x3c7   : > { %v3498_v39 = vmul.f32 %v6479_v0, %v7315_v22  ;;  %v3473_v63 = vpop.xlane.xlu1 %3472  ;;  %v3467_v44 = vpop.xlane.xlu0 %3466 }
 0x3c8   : > { %v6481_v45 = vpop.eup %6480  ;;  %6482 = vrcp.f32 %v3467_v44 }
 0x3c9   : > { %v3510_v48 = vpack.c.bf16 %v3498_v39, %v3498_v39  ;;  %6484 = vrcp.f32 %v3473_v63  ;;  %v3502_v33 = vmul.f32 %v6481_v45, %v7310_v5 }
 0x3cb   : > { %v3562_v40 = vunpack.c.l.b16 %v3510_v48  ;;  %v3514_v53 = vpack.c.bf16 %v3502_v33, %v3502_v33 }
 0x3cd   : > { %v3563_v49 = vpack.c.b16 %v3562_v40, %v3561_v51  ;;  %v3618_v54 = vunpack.c.l.b16 %v3514_v53 }
 0x3ce   : > { %v6483_v43 = vpop.eup %6482 }
 0x3cf   : > { %v3476_v16 = vpop.xlane.xlu0 %3475  ;;  %5715 = vmatmul.msk.bf16.vlgmr.msra.gmra.mxu1 %vm3374_vm4, %v3563_v49  ;;  %v6485_v1 = vpop.eup %6484  ;;  %v3501_v13 = vmul.f32 %v6483_v43, %v7319_v26 }
 0x3d0   : > { %6486 = vrcp.f32 %v3476_v16  ;;  %v3503_v56 = vmul.f32 %v6485_v1, %v7322_v30 }
 0x3d1   : > { %v3513_v22 = vpack.c.bf16 %v3501_v13, %v3501_v13 }
 0x3d2   : > { %v3515_v29 = vpack.c.bf16 %v3503_v56, %v3503_v56 }
 0x3d3   : > { %v3617_v55 = vunpack.c.l.b16 %v3513_v22 }
 0x3d4   : > { %v3645_v41 = vunpack.c.l.b16 %v3515_v29 }
 0x3d5   : > { %v3619_v59 = vpack.c.b16 %v3618_v54, %v3617_v55 }
 0x3d6   : > { %v6487_v15 = vpop.eup %6486 }
 0x3d7   : > { %v3504_v5 = vmul.f32 %v6487_v15, %v7329_v31  ;;  %v3479_v60 = vpop.xlane.xlu2 %3478  ;;  %5725 = vmatmul.msk.bf16.vlgmr.msra.gmra.mxu3 %vm3374_vm4, %v3619_v59 }
 0x3d8   : > { %6488 = vrcp.f32 %v3479_v60 }
 0x3d9   : > { %v3516_v2 = vpack.c.bf16 %v3504_v5, %v3504_v5 }
 0x3db   : > { %v3646_v57 = vunpack.c.l.b16 %v3516_v2 }
 0x3dd   : > { %v3647_v23 = vpack.c.b16 %v3646_v57, %v3645_v41 }
 0x3de   : > { %v6489_v50 = vpop.eup %6488 }
 0x3df   : > { %v3482_v26 = vpop.xlane.xlu1 %3481  ;;  %5730 = vmatmul.msk.bf16.vlgmr.msrb.gmra.mxu0 %vm3374_vm4, %v3647_v23  ;;  %v3505_v30 = vmul.f32 %v6489_v50, %v7334_v47 }
 0x3e0   : > { %6490 = vrcp.f32 %v3482_v26 }
 0x3e1   : > { %v3517_v8 = vpack.c.bf16 %v3505_v30, %v3505_v30 }
 0x3e3   : > { %v3673_v9 = vunpack.c.l.b16 %v3517_v8 }
 0x3e6   : > { %v6491_v6 = vpop.eup %6490 }
 0x3e7   : > { %v3506_v35 = vmul.f32 %v6491_v6, %v7344_v62 }
 0x3e9   : > { %v3518_v31 = vpack.c.bf16 %v3506_v35, %v3506_v35 }
 0x3eb   : > { %v3674_v12 = vunpack.c.l.b16 %v3518_v31 }
 0x3ed   : > { %v3675_v3 = vpack.c.b16 %v3674_v12, %v3673_v9 }
 0x3ef   : > { %5735 = vmatmul.msk.bf16.vlgmr.msrb.gmra.mxu1 %vm3374_vm4, %v3675_v3 }
 0x43f   : > { %v3610_v18 = vpop.f32.mrf.mxu2 }
 0x440   : > { %v3703_v24 = vpack.c.bf16 %v3610_v18, %v3610_v18 }
 0x441   : > { %v3554_v14 = vpop.f32.mrf.mxu0 }
 0x442   : > { %v3722_v32 = vshrl.u32 %v3703_v24, 16  ;;  %v3699_v25 = vpack.c.bf16 %v3554_v14, %v3554_v14 }
 0x444   : > { %v3715_v44 = vshrl.u32 %v3699_v25, 16 }
 0x447   : > { %v3612_v34 = vpop.f32.mrf.mxu2 }
 0x448   : > { %v3704_v37 = vpack.c.bf16 %v3612_v34, %v3612_v34 }
 0x449   : > { %v3556_v46 = vpop.f32.mrf.mxu0 }
 0x44a   : > { %v3744_v16 = vshrl.u32 %v3704_v37, 16  ;;  %v3700_v54 = vpack.c.bf16 %v3556_v46, %v3556_v46 }
 0x44c   : > { %v3582_v11 = vpop.f32.mrf.mxu1  ;;  %v3737_v14 = vshrl.u32 %v3700_v54, 16 }
 0x44d   : > { %v3701_v62 = vpack.c.bf16 %v3582_v11, %v3582_v11 }
 0x44f   : > { %v3716_v38 = vshrl.u32 %v3701_v62, 16  ;;  %v3713_v45 = vpack.i.b16 %v3701_v62, %v3699_v25 }
 0x451   : > { %v3717_v53 = vpack.i.b16 %v3716_v38, %v3715_v44 }
 0x454   : > { %v3584_v19 = vpop.f32.mrf.mxu1 }
 0x455   : > { %v3702_v40 = vpack.c.bf16 %v3584_v19, %v3584_v19 }
 0x457   : > { %v3738_v5 = vshrl.u32 %v3702_v40, 16  ;;  %v3735_v18 = vpack.i.b16 %v3702_v40, %v3700_v54 }
 0x45a   : > { %v3638_v61 = vpop.f32.mrf.mxu3 }
 0x45b   : > { %v3705_v4 = vpack.c.bf16 %v3638_v61, %v3638_v61 }
 0x45c   : > { %v3666_v17 = vpop.f32.mrf.mxu0 }
 0x45d   : > { %v3723_v47 = vshrl.u32 %v3705_v4, 16  ;;  %v3707_v27 = vpack.c.bf16 %v3666_v17, %v3666_v17  ;;  %v3721_v42 = vpack.i.b16 %v3705_v4, %v3703_v24  ;;  %v3739_v24 = vpack.i.b16 %v3738_v5, %v3737_v14 }
 0x45f   : > { %v3724_v20 = vpack.i.b16 %v3723_v47, %v3722_v32  ;;  %v3729_v0 = vshrl.u32 %v3707_v27, 16  ;;  %v3765_v48 = vperm.slane %v3721_v42, %v7011_v21 }
 0x461   : > { %v3792_v33 = vperm.slane %v3724_v20, %v7011_v21  ;;  %v3766_v55 = vrot.slane %v3765_v48, 4 }
 0x462   : > { %v3640_v28 = vpop.f32.mrf.mxu3 }
 0x463   : > { %v3706_v58 = vpack.c.bf16 %v3640_v28, %v3640_v28  ;;  %v3793_v60 = vrot.slane %v3792_v33, 4 }
 0x464   : > { %v3668_v52 = vpop.f32.mrf.mxu0 }
 0x465   : > { %v3745_v51 = vshrl.u32 %v3706_v58, 16  ;;  %v3708_v1 = vpack.c.bf16 %v3668_v52, %v3668_v52  ;;  %v3743_v13 = vpack.i.b16 %v3706_v58, %v3704_v37 }
 0x467   : > { %v3746_v15 = vpack.i.b16 %v3745_v51, %v3744_v16  ;;  %v3751_v57 = vshrl.u32 %v3708_v1, 16  ;;  %v3819_v30 = vperm.slane %v3743_v13, %v7011_v21 }
 0x469   : > { %v3846_v31 = vperm.slane %v3746_v15, %v7011_v21  ;;  %v3820_v47 = vrot.slane %v3819_v30, 4 }
 0x46b   : > { %v3847_v34 = vrot.slane %v3846_v31, 4 }
 0x46c   : > { %v3694_v36 = vpop.f32.mrf.mxu1 }
 0x46d   : > { %v3709_v7 = vpack.c.bf16 %v3694_v36, %v3694_v36 }
 0x46f   : > { %v3727_v39 = vpack.i.b16 %v3709_v7, %v3707_v27  ;;  %v3730_v63 = vshrl.u32 %v3709_v7, 16 }
 0x471   : > { %v3731_v49 = vpack.i.b16 %v3730_v63, %v3729_v0  ;;  %v3755_v43 = vrot.slane %v3727_v39, 4 }
 0x473   : > { %v3756_v22 = vsel %vm1644_vm0, %v3755_v43, %v3713_v45  ;;  %v3782_v56 = vrot.slane %v3731_v49, 4 }
 0x474   : > { %v3760_v59 = vperm.slane %v3756_v22, %v7011_v21  ;;  %v3696_v29 = vpop.f32.mrf.mxu1 }
 0x475   : > { %v3783_v2 = vsel %vm1644_vm0, %v3782_v56, %v3717_v53  ;;  %v3710_v41 = vpack.c.bf16 %v3696_v29, %v3696_v29 }
 0x476   : > { %v3767_v23 = vsel %vm1644_vm0, %v3766_v55, %v3760_v59  ;;  %v3768_v26 = vrot.slane %v3760_v59, 4  ;;  %v3787_v50 = vperm.slane %v3783_v2, %v7011_v21 }
 0x477   : > { %v3773_v6 = vperm.slane %v3767_v23, %v7025_v10  ;;  %v3749_v8 = vpack.i.b16 %v3710_v41, %v3708_v1  ;;  %v3752_v35 = vshrl.u32 %v3710_v41, 16 }
 0x478   : > { %v3769_v9 = vsel %vm1644_vm0, %v3765_v48, %v3768_v26  ;;  %v3794_v12 = vsel %vm1644_vm0, %v3793_v60, %v3787_v50  ;;  %v3795_v3 = vrot.slane %v3787_v50, 4  ;;  %v5918_v26 = vld [vmem:[#allocation12 + $0x168] sm:$0xf]  ;;  %v6301_v50 = vld [vmem:[#allocation12 + $0x170] sm:$0xf0] }
 0x479   : > { %v3777_v11 = vperm.slane %v3769_v9, %v7025_v10  ;;  %v3778_v46 = vrot.slane %v3773_v6, 4  ;;  %v3753_v61 = vpack.i.b16 %v3752_v35, %v3751_v57  ;;  %v3800_v4 = vperm.slane %v3794_v12, %v7025_v10 }
 0x47a   : > { %v3796_v19 = vsel %vm1644_vm0, %v3792_v33, %v3795_v3  ;;  %v3809_v17 = vrot.slane %v3749_v8, 4 }
 0x47b   : > { %v3780_v28 = vrot.slane %v3777_v11, 4  ;;  %v3804_v32 = vperm.slane %v3796_v19, %v7025_v10  ;;  %v3779_v62 = vsel %vm1644_vm0, 0, %v3778_v46  ;;  %v3836_v25 = vrot.slane %v3753_v61, 4 }
 0x47c   : > { %v3810_v27 = vsel %vm1644_vm0, %v3809_v17, %v3735_v18  ;;  %v3805_v7 = vrot.slane %v3800_v4, 4  ;;  %v5919_v61 = vor.u32 %v6301_v50, %v5918_v26 }
 0x47d   : > { %v3781_v42 = vsel %vm1644_vm0, 0, %v3780_v28  ;;  %v3807_v58 = vrot.slane %v3804_v32, 4  ;;  %v3863_v36 = vsel %vm1644_vm0, %v3780_v28, %v3773_v6  ;;  %v3814_v20 = vperm.slane %v3810_v27, %v7011_v21 }
 0x47e   : > { %v3868_v37 = vrot.slane %v3781_v42, 4  ;;  %v3837_v38 = vsel %vm1644_vm0, %v3836_v25, %v3739_v24  ;;  %v3867_v0 = vperm.slane %v3863_v36, %v7011_v21  ;;  %v3806_v60 = vsel %vm1644_vm0, 0, %v3805_v7  ;;  %4537 = vmatpush.bf16.msrb.mxu3 %v5919_v61 }
 0x47f   : > { %v3808_v52 = vsel %vm1644_vm0, 0, %v3807_v58  ;;  %v3821_v39 = vsel %vm1644_vm0, %v3820_v47, %v3814_v20  ;;  %v3822_v63 = vrot.slane %v3814_v20, 4  ;;  %v3841_v44 = vperm.slane %v3837_v38, %v7011_v21 }
 0x480   : > { %v3893_v45 = vrot.slane %v3808_v52, 4  ;;  %v3827_v48 = vperm.slane %v3821_v39, %v7025_v10  ;;  %v3869_v51 = vsel %vm1644_vm0, %v3868_v37, %v3779_v62  ;;  %v3876_v40 = vrot.slane %v3867_v0, 4 }
 0x481   : > { %v3823_v33 = vsel %vm1644_vm0, %v3819_v30, %v3822_v63  ;;  %v3848_v49 = vsel %vm1644_vm0, %v3847_v34, %v3841_v44  ;;  %v3849_v43 = vrot.slane %v3841_v44, 4  ;;  %v3873_v16 = vperm.slane %v3869_v51, %v7011_v21  ;;  %v5906_v44 = vld [vmem:[#allocation12 + $0x150] sm:$0xf] }
 0x482   : > { %v3831_v1 = vperm.slane %v3823_v33, %v7025_v10  ;;  %v3832_v53 = vrot.slane %v3827_v48, 4  ;;  %v3854_v13 = vperm.slane %v3848_v49, %v7025_v10  ;;  %v3888_v22 = vsel %vm1644_vm0, %v3807_v58, %v3800_v4  ;;  %v5822_v33 = vld [vmem:[#allocation12 + $0xa8] sm:$0xf]  ;;  %v6277_v49 = vld [vmem:[#allocation12 + $0xb0] sm:$0xf0] }
 0x483   : > { %v3850_v56 = vsel %vm1644_vm0, %v3846_v31, %v3849_v43  ;;  %v3874_v54 = vrot.slane %v3873_v16, 4  ;;  %v3877_v55 = vsel %vm1644_vm0, %v3873_v16, %v3876_v40  ;;  %v3892_v15 = vperm.slane %v3888_v22, %v7011_v21  ;;  %v6295_v22 = vld [vmem:[#allocation12 + $0x140] sm:$0xf0] }
 0x484   : > { %v3834_v59 = vrot.slane %v3831_v1, 4  ;;  %v3858_v29 = vperm.slane %v3850_v56, %v7025_v10  ;;  %v3859_v5 = vrot.slane %v3854_v13, 4  ;;  %v3833_v2 = vsel %vm1644_vm0, 0, %v3832_v53 }
 0x485   : > { %v3894_v41 = vsel %vm1644_vm0, %v3893_v45, %v3806_v60  ;;  %v3901_v57 = vrot.slane %v3892_v15, 4  ;;  %v3875_v23 = vsel %vm1644_vm0, %v3874_v54, %v3867_v0  ;;  %v7501_v35 = vperm.slane %v3877_v55, %v7025_v10 }
 0x486   : > { %v3835_v30 = vsel %vm1644_vm0, 0, %v3834_v59  ;;  %v3861_v6 = vrot.slane %v3858_v29, 4  ;;  %v3913_v8 = vsel %vm1644_vm0, %v3834_v59, %v3827_v48  ;;  %v3860_v9 = vsel %vm1644_vm0, 0, %v3859_v5  ;;  %v5810_v59 = vld [vmem:[#allocation12 + $0x90] sm:$0xf] }
 0x487   : > { %v3918_v31 = vrot.slane %v3835_v30, 4  ;;  %v3898_v12 = vperm.slane %v3894_v41, %v7011_v21  ;;  %v3917_v3 = vperm.slane %v3913_v8, %v7011_v21  ;;  %v7509_v46 = vperm.slane %v3875_v23, %v7025_v10  ;;  %v6274_v29 = vld [vmem:[#allocation12 + $0x98] sm:$0xf0]  ;;  %v6292_v23 = vld [vmem:[#allocation12 + $0x128] sm:$0xf0] }
 0x488   : > { %v3862_v14 = vsel %vm1644_vm0, 0, %v3861_v6  ;;  %v3938_v11 = vsel %vm1644_vm0, %v3861_v6, %v3854_v13  ;;  %v3978_v62 = vshrl.u32 %v7501_v35, 16  ;;  %v5894_v13 = vld [vmem:[#allocation12 + $0x138] sm:$0xf]  ;;  %v5823_v41 = vor.u32 %v6277_v49, %v5822_v33  ;;  %v6271_v8 = vld [vmem:[#allocation12 + $0x80] sm:$0xf0] }
 0x489   : > { %v3943_v18 = vrot.slane %v3862_v14, 4  ;;  %v3899_v19 = vrot.slane %v3898_v12, 4  ;;  %v3902_v4 = vsel %vm1644_vm0, %v3898_v12, %v3901_v57  ;;  %v3919_v17 = vsel %vm1644_vm0, %v3918_v31, %v3833_v2  ;;  %v5882_v57 = vld [vmem:[#allocation12 + $0x120] sm:$0xf]  ;;  %v5798_v6 = vld [vmem:[#allocation12 + $0x78] sm:$0xf] }
 0x48a   : > { %v7514_v24 = vperm.slane %v3902_v4, %v7025_v10  ;;  %v3923_v47 = vperm.slane %v3919_v17, %v7011_v21  ;;  %v3926_v28 = vrot.slane %v3917_v3, 4  ;;  %v3942_v32 = vperm.slane %v3938_v11, %v7011_v21  ;;  %4523 = vmatpush.bf16.msra.mxu2 %v5823_v41  ;;  %v6014_v14 = vld [vmem:[#allocation12 + $0x228] sm:$0xf]  ;;  %v6325_v11 = vld [vmem:[#allocation12 + $0x230] sm:$0xf0] }
 0x48b   : > { %v3944_v34 = vsel %vm1644_vm0, %v3943_v18, %v3860_v9  ;;  %v3900_v27 = vsel %vm1644_vm0, %v3899_v19, %v3892_v15  ;;  %v3882_v25 = vrot.slane %v7509_v46, 4  ;;  %v3966_v63 = vshrl.u32 %v7509_v46, 16  ;;  %v6276_v17 = vld [vmem:[#allocation12 + $0xac] sm:$0xf]  ;;  %v5774_v41 = vld [vmem:[#allocation12 + $0x48] sm:$0xf] }
 0x48c   : > { %v3927_v42 = vsel %vm1644_vm0, %v3923_v47, %v3926_v28  ;;  %v3948_v58 = vperm.slane %v3944_v34, %v7011_v21  ;;  %v3951_v36 = vrot.slane %v3942_v32, 4  ;;  %v3979_v20 = vshrl.u32 %v7514_v24, 16  ;;  %v6298_v21 = vld [vmem:[#allocation12 + $0x158] sm:$0xf0]  ;;  %v6268_v33 = vld [vmem:[#allocation12 + $0x68] sm:$0xf0] }
 0x48d   : > { %v7526_v7 = vperm.slane %v3927_v42, %v7025_v10  ;;  %v3924_v37 = vrot.slane %v3923_v47, 4  ;;  %v7529_v38 = vperm.slane %v3900_v27, %v7025_v10  ;;  %v7532_v0 = vsel %vm1644_vm0, 0, %v3882_v25  ;;  %v5824_v47 = vld [vmem:[#allocation12 + $0xb4] sm:$0xf0]  ;;  %v6002_v27 = vld [vmem:[#allocation12 + $0x210] sm:$0xf] }
 0x48e   : > { %v3949_v52 = vrot.slane %v3948_v58, 4  ;;  %v3952_v39 = vsel %vm1644_vm0, %v3948_v58, %v3951_v36  ;;  %v3980_v48 = vpack.i.b16 %v3979_v20, %v3978_v62  ;;  %v3972_v53 = vshrl.u32 %v7532_v0, 16  ;;  %v6322_v25 = vld [vmem:[#allocation12 + $0x218] sm:$0xf0] }
 0x48f   : > { %v7537_v45 = vperm.slane %v3952_v39, %v7025_v10  ;;  %v3925_v51 = vsel %vm1644_vm0, %v3924_v37, %v3917_v3  ;;  %v3967_v40 = vshrl.u32 %v7529_v38, 16  ;;  %v3907_v1 = vrot.slane %v7529_v38, 4  ;;  %v6273_v37 = vld [vmem:[#allocation12 + $0x94] sm:$0xf] }
 0x490   : > { %v7542_v43 = vperm.slane %v3925_v51, %v7025_v10  ;;  %v3950_v16 = vsel %vm1644_vm0, %v3949_v52, %v3942_v32  ;;  %v3996_v56 = vshrl.u32 %v7526_v7, 16  ;;  %v5907_v15 = vor.u32 %v6298_v21, %v5906_v44  ;;  %v5812_v52 = vld [vmem:[#allocation12 + $0x9c] sm:$0xf0]  ;;  %v5870_v44 = vld [vmem:[#allocation12 + $0x108] sm:$0xf] }
 0x491   : > { %v3997_v54 = vshrl.u32 %v7537_v45, 16  ;;  %v7550_v55 = vperm.slane %v3950_v16, %v7025_v10  ;;  %v3968_v5 = vpack.i.b16 %v3967_v40, %v3966_v63  ;;  %v7553_v60 = vsel %vm1644_vm0, 0, %v3907_v1  ;;  %v6289_v21 = vld [vmem:[#allocation12 + $0x110] sm:$0xf0]  ;;  %v5786_v40 = vld [vmem:[#allocation12 + $0x60] sm:$0xf] }
 0x492   : > { %v3932_v2 = vrot.slane %v7542_v43, 4  ;;  %v3984_v50 = vshrl.u32 %v7542_v43, 16  ;;  %4538 = vmatpush.bf16.msrb.mxu3 %v5907_v15  ;;  %v3973_v9 = vshrl.u32 %v7553_v60, 16  ;;  %v5895_v12 = vor.u32 %v6295_v22, %v5894_v13  ;;  %v5990_v13 = vld [vmem:[#allocation12 + $0x1f8] sm:$0xf] }
 0x493   : > { %v3998_v26 = vpack.i.b16 %v3997_v54, %v3996_v56  ;;  %v3985_v30 = vshrl.u32 %v7550_v55, 16  ;;  %v3957_v10 = vrot.slane %v7550_v55, 4  ;;  %v5811_v3 = vor.u32 %v6274_v29, %v5810_v59  ;;  %v6319_v22 = vld [vmem:[#allocation12 + $0x200] sm:$0xf0]  ;;  %v5858_v54 = vld [vmem:[#allocation12 + $0xf0] sm:$0xf] }
 0x494   : > { %v7560_v31 = vsel %vm1644_vm0, 0, %v3932_v2  ;;  %v4018_v61 = vunpack.c.l.b16 %v3980_v48  ;;  %v4002_v28 = vunpack.c.l.b16 %v3968_v5  ;;  %v3974_v32 = vpack.i.b16 %v3973_v9, %v3972_v53  ;;  %v6270_v15 = vld [vmem:[#allocation12 + $0x7c] sm:$0xf]  ;;  %v5800_v59 = vld [vmem:[#allocation12 + $0x84] sm:$0xf0] }
 0x495   : > { %v4019_v18 = vunpack.c.l.b16 %v3998_v26  ;;  %v3986_v19 = vpack.i.b16 %v3985_v30, %v3984_v50  ;;  %v7564_v4 = vsel %vm1644_vm0, 0, %v3957_v10  ;;  %v3990_v34 = vshrl.u32 %v7560_v31, 16  ;;  %4524 = vmatpush.bf16.msra.mxu2 %v5811_v3  ;;  %v6286_v2 = vld [vmem:[#allocation12 + $0xf8] sm:$0xf0]  ;;  %v5978_v26 = vld [vmem:[#allocation12 + $0x1e0] sm:$0xf] }
 0x496   : > { %v3991_v62 = vshrl.u32 %v7564_v4, 16  ;;  %4539 = vmatpush.bf16.msrb.mxu3 %v5895_v12  ;;  %v5883_v36 = vor.u32 %v6292_v23, %v5882_v57  ;;  %v6015_v20 = vor.u32 %v6325_v11, %v6014_v14  ;;  %v5799_v63 = vor.u32 %v6271_v8, %v5798_v6  ;;  %v6265_v57 = vld [vmem:[#allocation12 + $0x50] sm:$0xf0]  ;;  %v6316_v30 = vld [vmem:[#allocation12 + $0x1e8] sm:$0xf0] }
 0x497   : > { %v4020_v42 = vpack.c.b16 %v4019_v18, %v4018_v61  ;;  %v4003_v58 = vunpack.c.l.b16 %v3986_v19  ;;  %v5827_v48 = vor.u32 %v6276_v17, %v5824_v47  ;;  %v6003_v49 = vor.u32 %v6322_v25, %v6002_v27  ;;  %v6267_v10 = vld [vmem:[#allocation12 + $0x64] sm:$0xf]  ;;  %v5788_v6 = vld [vmem:[#allocation12 + $0x6c] sm:$0xf0]  ;;  %v5846_v12 = vld [vmem:[#allocation12 + $0xd8] sm:$0xf] }
 0x498   : > { %v3992_v39 = vpack.i.b16 %v3991_v62, %v3990_v34  ;;  %4551 = vmatpush.bf16.msra.mxu0 %v6015_v20  ;;  %v4010_v16 = vunpack.c.l.b16 %v3974_v32  ;;  %v5815_v53 = vor.u32 %v6273_v37, %v5812_v52  ;;  %v5871_v56 = vor.u32 %v6289_v21, %v5870_v44  ;;  %v6283_v3 = vld [vmem:[#allocation12 + $0xe0] sm:$0xf0]  ;;  %v5762_v19 = vld [vmem:[#allocation12 + $0x30] sm:$0xf]  ;;  %v6262_v17 = vld [vmem:[#allocation12 + $0x38] sm:$0xf0] }
 0x499   : > { %4021 = vrot.lane.b32.xlu1 %v4020_v42, %s6742_s2  ;;  %v4004_v51 = vpack.c.b16 %v4003_v58, %v4002_v28  ;;  %4565 = vmatpush.bf16.msra.mxu1 %v5827_v48  ;;  %v5787_v5 = vor.u32 %v6268_v33, %v5786_v40  ;;  %v5991_v23 = vor.u32 %v6319_v22, %v5990_v13  ;;  %v6264_v34 = vld [vmem:[#allocation12 + $0x4c] sm:$0xf]  ;;  %v5776_v62 = vld [vmem:[#allocation12 + $0x54] sm:$0xf0]  ;;  %v5954_v44 = vld [vmem:[#allocation12 + $0x1b0] sm:$0xf] }
 0x49a   : > { %v4011_v1 = vunpack.c.l.b16 %v3992_v39  ;;  %4540 = vmatpush.bf16.msrb.mxu3 %v5883_v36  ;;  %4525 = vmatpush.bf16.msra.mxu2 %v5799_v63  ;;  %v5803_v50 = vor.u32 %v6270_v15, %v5800_v59  ;;  %v5859_v8 = vor.u32 %v6286_v2, %v5858_v54  ;;  %v5775_v9 = vor.u32 %v6265_v57, %v5774_v41  ;;  %v5750_v25 = vld [vmem:[#allocation12 + $0x18] sm:$0xf]  ;;  %v6259_v36 = vld [vmem:[#allocation12 + $0x20] sm:$0xf0]  ;;  %v6324_v20 = vld [vmem:[#allocation12 + $0x22c] sm:$0xf] }
 0x49b   : > { %4005 = vrot.lane.b32.xlu0 %v4004_v51, %s6742_s2  ;;  %v3971_v14 = vpack.i.b16 %v7553_v60, %v7532_v0  ;;  %v3989_v11 = vpack.i.b16 %v7564_v4, %v7560_v31  ;;  %v3977_v61 = vpack.i.b16 %v7514_v24, %v7501_v35  ;;  %v3995_v18 = vpack.i.b16 %v7537_v45, %v7526_v7  ;;  %v5966_v60 = vld [vmem:[#allocation12 + $0x1c8] sm:$0xf]  ;;  %v6313_v31 = vld [vmem:[#allocation12 + $0x1d0] sm:$0xf0]  ;;  %v6016_v37 = vld [vmem:[#allocation12 + $0x234] sm:$0xf0] }
 0x49c   : > { %v4012_v29 = vpack.c.b16 %v4011_v1, %v4010_v16  ;;  %4552 = vmatpush.bf16.msra.mxu0 %v6003_v49  ;;  %v5979_v47 = vor.u32 %v6316_v30, %v5978_v26  ;;  %v5791_v28 = vor.u32 %v6267_v10, %v5788_v6  ;;  %v3965_v32 = vpack.i.b16 %v7529_v38, %v7509_v46  ;;  %v6310_v21 = vld [vmem:[#allocation12 + $0x1b8] sm:$0xf0]  ;;  %v6261_v51 = vld [vmem:[#allocation12 + $0x34] sm:$0xf]  ;;  %v5764_v40 = vld [vmem:[#allocation12 + $0x3c] sm:$0xf0] }
 0x49d   : > { %4566 = vmatpush.bf16.msra.mxu1 %v5815_v53  ;;  %v3983_v0 = vpack.i.b16 %v7550_v55, %v7542_v43  ;;  %v7583_v4 = vunpack.c.l.b16 %v3971_v14  ;;  %v7585_v35 = vunpack.c.l.b16 %v3989_v11  ;;  %v7587_v24 = vunpack.c.l.b16 %v3977_v61  ;;  %v5834_v43 = vld [vmem:[#allocation12 + $0xc0] sm:$0xf]  ;;  %v6280_v55 = vld [vmem:[#allocation12 + $0xc8] sm:$0xf0]  ;;  %v6321_v53 = vld [vmem:[#allocation12 + $0x214] sm:$0xf] }
 0x49e   : > { %4013 = vrot.lane.b32.xlu2 %v4012_v29, %s6742_s2  ;;  %4541 = vmatpush.bf16.msrb.mxu3 %v5871_v56  ;;  %v7589_v7 = vunpack.c.l.b16 %v3995_v18  ;;  %v5847_v45 = vor.u32 %v6283_v3, %v5846_v12  ;;  %v7591_v27 = vunpack.c.l.b16 %v3965_v32  ;;  %v5763_v38 = vor.u32 %v6262_v17, %v5762_v19  ;;  %v5738_v16 = vld [vmem:[#allocation12] sm:$0xf]  ;;  %v6256_v1 = vld [vmem:[#allocation12 + $0x8] sm:$0xf0]  ;;  %v5920_v54 = vld [vmem:[#allocation12 + $0x174] sm:$0xf0] }
 0x49f   : > { %4526 = vmatpush.bf16.msra.mxu2 %v5787_v5  ;;  %v7593_v46 = vunpack.c.l.b16 %v3983_v0  ;;  %v4009_v42 = vpack.c.b16 %v7585_v35, %v7583_v4  ;;  %v5967_v52 = vor.u32 %v6313_v31, %v5966_v60  ;;  %v5779_v63 = vor.u32 %v6264_v34, %v5776_v62  ;;  %v6004_v13 = vld [vmem:[#allocation12 + $0x21c] sm:$0xf0]  ;;  %v6300_v56 = vld [vmem:[#allocation12 + $0x16c] sm:$0xf]  ;;  %v6318_v2 = vld [vmem:[#allocation12 + $0x1fc] sm:$0xf] }
 0x4a0   : > { %4553 = vmatpush.bf16.msra.mxu0 %v5991_v23  ;;  %v4017_v58 = vpack.c.b16 %v7589_v7, %v7587_v24  ;;  %v5835_v48 = vor.u32 %v6280_v55, %v5834_v43  ;;  %v5751_v33 = vor.u32 %v6259_v36, %v5750_v25  ;;  %v6019_v49 = vor.u32 %v6324_v20, %v6016_v37  ;;  %v5992_v41 = vld [vmem:[#allocation12 + $0x204] sm:$0xf0]  ;;  %v6297_v57 = vld [vmem:[#allocation12 + $0x154] sm:$0xf]  ;;  %v5908_v23 = vld [vmem:[#allocation12 + $0x15c] sm:$0xf0] }
 0x4a1   : > { %4567 = vmatpush.bf16.msra.mxu1 %v5803_v50  ;;  %v4001_v39 = vpack.c.b16 %v7593_v46, %v7591_v27  ;;  %v5955_v22 = vor.u32 %v6310_v21, %v5954_v44  ;;  %v5767_v15 = vor.u32 %v6261_v51, %v5764_v40  ;;  %v5739_v59 = vor.u32 %v6256_v1, %v5738_v16  ;;  %v5942_v30 = vld [vmem:[#allocation12 + $0x198] sm:$0xf]  ;;  %v6307_v10 = vld [vmem:[#allocation12 + $0x1a0] sm:$0xf0]  ;;  %v6258_v12 = vld [vmem:[#allocation12 + $0x1c] sm:$0xf] }
 0x4a2   : > { %4542 = vmatpush.bf16.msrb.mxu3 %v5859_v8  ;;  %v6007_v29 = vor.u32 %v6321_v53, %v6004_v13  ;;  %v5923_v5 = vor.u32 %v6300_v56, %v5920_v54  ;;  %v5995_v26 = vor.u32 %v6318_v2, %v5992_v41  ;;  %v5911_v50 = vor.u32 %v6297_v57, %v5908_v23  ;;  %v6315_v8 = vld [vmem:[#allocation12 + $0x1e4] sm:$0xf]  ;;  %v5752_v14 = vld [vmem:[#allocation12 + $0x24] sm:$0xf0]  ;;  %v6294_v11 = vld [vmem:[#allocation12 + $0x13c] sm:$0xf] }
 0x4a3   : > { %4527 = vmatpush.bf16.msra.mxu2 %v5775_v9  ;;  %v5943_v6 = vor.u32 %v6307_v10, %v5942_v30  ;;  %v5980_v9 = vld [vmem:[#allocation12 + $0x1ec] sm:$0xf0]  ;;  %v5896_v61 = vld [vmem:[#allocation12 + $0x144] sm:$0xf0]  ;;  %v5755_v18 = vor.u32 %v6258_v12, %v5752_v14  ;;  %v5930_v17 = vld [vmem:[#allocation12 + $0x180] sm:$0xf] }
 0x4a4   : > { %4554 = vmatpush.bf16.msra.mxu0 %v5979_v47  ;;  %v5983_v3 = vor.u32 %v6315_v8, %v5980_v9  ;;  %v5899_v19 = vor.u32 %v6294_v11, %v5896_v61  ;;  %v6304_v47 = vld [vmem:[#allocation12 + $0x188] sm:$0xf0]  ;;  %v5968_v0 = vld [vmem:[#allocation12 + $0x1d4] sm:$0xf0]  ;;  %v5830_v60 = vld [vmem:[#allocation12 + $0xb0] sm:$0xf] }
 0x4a5   : > { %4568 = vmatpush.bf16.msra.mxu1 %v5791_v28  ;;  %v6312_v28 = vld [vmem:[#allocation12 + $0x1cc] sm:$0xf]  ;;  %v5931_v32 = vor.u32 %v6304_v47, %v5930_v17  ;;  %v6278_v31 = vld [vmem:[#allocation12 + $0xb8] sm:$0xf0]  ;;  %v6255_v62 = vld [vmem:[#allocation12 + $0x4] sm:$0xf] }
 0x4a6   : > { %4543 = vmatpush.bf16.msrb.mxu3 %v5847_v45  ;;  %v5971_v45 = vor.u32 %v6312_v28, %v5968_v0  ;;  %v5831_v34 = vor.u32 %v6278_v31, %v5830_v60  ;;  %v6291_v43 = vld [vmem:[#allocation12 + $0x124] sm:$0xf]  ;;  %v5884_v25 = vld [vmem:[#allocation12 + $0x12c] sm:$0xf0]  ;;  %v6302_v20 = vld [vmem:[#allocation12 + $0x178] sm:$0xf0] }
 0x4a7   : > { %4528 = vmatpush.bf16.msra.mxu2 %v5763_v38  ;;  %v5740_v38 = vld [vmem:[#allocation12 + $0xc] sm:$0xf0]  ;;  %v5887_v37 = vor.u32 %v6291_v43, %v5884_v25  ;;  %v5956_v44 = vld [vmem:[#allocation12 + $0x1bc] sm:$0xf0]  ;;  %v5818_v21 = vld [vmem:[#allocation12 + $0x98] sm:$0xf] }
 0x4a8   : > { %4555 = vmatpush.bf16.msra.mxu0 %v5967_v52  ;;  %v5743_v55 = vor.u32 %v6255_v62, %v5740_v38  ;;  %v5926_v36 = vld [vmem:[#allocation12 + $0x170] sm:$0xf]  ;;  %v6275_v51 = vld [vmem:[#allocation12 + $0xa0] sm:$0xf0]  ;;  %v6288_v40 = vld [vmem:[#allocation12 + $0x10c] sm:$0xf] }
 0x4a9   : > { %4569 = vmatpush.bf16.msra.mxu1 %v5779_v63  ;;  %v5927_v52 = vor.u32 %v6302_v20, %v5926_v36  ;;  %v6309_v63 = vld [vmem:[#allocation12 + $0x1b4] sm:$0xf]  ;;  %v5914_v1 = vld [vmem:[#allocation12 + $0x158] sm:$0xf]  ;;  %v6299_v53 = vld [vmem:[#allocation12 + $0x160] sm:$0xf0] }
 0x4aa   : > { %4544 = vmatpush.bf16.msrb.mxu3 %v5835_v48  ;;  %v5959_v48 = vor.u32 %v6309_v63, %v5956_v44  ;;  %v6306_v13 = vld [vmem:[#allocation12 + $0x19c] sm:$0xf]  ;;  %v5944_v56 = vld [vmem:[#allocation12 + $0x1a4] sm:$0xf0]  ;;  %v5806_v54 = vld [vmem:[#allocation12 + $0x80] sm:$0xf] }
 0x4ab   : > { %4529 = vmatpush.bf16.msra.mxu2 %v5751_v33  ;;  %v5872_v33 = vld [vmem:[#allocation12 + $0x114] sm:$0xf0]  ;;  %v5947_v2 = vor.u32 %v6306_v13, %v5944_v56  ;;  %v6296_v57 = vld [vmem:[#allocation12 + $0x148] sm:$0xf0]  ;;  %v6303_v23 = vld [vmem:[#allocation12 + $0x184] sm:$0xf] }
 0x4ac   : > { %4556 = vmatpush.bf16.msra.mxu0 %v5955_v22  ;;  %v5875_v16 = vor.u32 %v6288_v40, %v5872_v33  ;;  %v5915_v22 = vor.u32 %v6299_v53, %v5914_v1  ;;  %v5794_v30 = vld [vmem:[#allocation12 + $0x68] sm:$0xf]  ;;  %v6269_v10 = vld [vmem:[#allocation12 + $0x70] sm:$0xf0]  ;;  %v6282_v8 = vld [vmem:[#allocation12 + $0xdc] sm:$0xf] }
 0x4ad   : > { %4570 = vmatpush.bf16.msra.mxu1 %v5767_v15  ;;  %v6272_v15 = vld [vmem:[#allocation12 + $0x88] sm:$0xf0]  ;;  %v5848_v9 = vld [vmem:[#allocation12 + $0xe4] sm:$0xf0]  ;;  %v6293_v61 = vld [vmem:[#allocation12 + $0x130] sm:$0xf0] }
 0x4ae   : > { %4593 = vmatpush.bf16.msra.mxu3 %v6019_v49  ;;  %v5819_v49 = vor.u32 %v6275_v51, %v5818_v21  ;;  %v5807_v41 = vor.u32 %v6272_v15, %v5806_v54  ;;  %v5851_v14 = vor.u32 %v6282_v8, %v5848_v9  ;;  %v5890_v11 = vld [vmem:[#allocation12 + $0x128] sm:$0xf]  ;;  %v6266_v17 = vld [vmem:[#allocation12 + $0x58] sm:$0xf0]  ;;  %v6279_v28 = vld [vmem:[#allocation12 + $0xc4] sm:$0xf] }
 0x4af   : > { %4530 = vmatpush.bf16.msra.mxu2 %v5739_v59  ;;  %v6285_v59 = vld [vmem:[#allocation12 + $0xf4] sm:$0xf]  ;;  %v5878_v0 = vld [vmem:[#allocation12 + $0x110] sm:$0xf]  ;;  %v6290_v31 = vld [vmem:[#allocation12 + $0x118] sm:$0xf0] }
 0x4b0   : > { %4557 = vmatpush.bf16.msra.mxu0 %v5943_v6  ;;  %v6263_v62 = vld [vmem:[#allocation12 + $0x40] sm:$0xf0]  ;;  %v5866_v38 = vld [vmem:[#allocation12 + $0xf8] sm:$0xf]  ;;  %v5758_v36 = vld [vmem:[#allocation12 + $0x20] sm:$0xf] }
 0x4b1   : > { %4571 = vmatpush.bf16.msra.mxu1 %v5755_v18  ;;  %v5891_v18 = vor.u32 %v6293_v61, %v5890_v11  ;;  %v6260_v20 = vld [vmem:[#allocation12 + $0x28] sm:$0xf0]  ;;  %v6257_v51 = vld [vmem:[#allocation12 + $0x10] sm:$0xf0]  ;;  %v5842_v40 = vld [vmem:[#allocation12 + $0xc8] sm:$0xf] }
 0x4b2   : > { %4594 = vmatpush.bf16.msra.mxu3 %v6007_v29  ;;  %v5860_v29 = vld [vmem:[#allocation12 + $0xfc] sm:$0xf0]  ;;  %v6284_v63 = vld [vmem:[#allocation12 + $0xe8] sm:$0xf0]  ;;  %v6022_v53 = vld [vmem:[#allocation12 + $0x230] sm:$0xf] }
 0x4b3   : > { %4579 = vmatpush.bf16.msrb.mxu2 %v5923_v5  ;;  %v5902_v5 = vld [vmem:[#allocation12 + $0x140] sm:$0xf]  ;;  %v6326_v13 = vld [vmem:[#allocation12 + $0x238] sm:$0xf0]  ;;  %v6010_v35 = vld [vmem:[#allocation12 + $0x218] sm:$0xf] }
 0x4b4   : > { %4558 = vmatpush.bf16.msra.mxu0 %v5931_v32  ;;  %v5903_v6 = vor.u32 %v6296_v57, %v5902_v5  ;;  %v5836_v32 = vld [vmem:[#allocation12 + $0xcc] sm:$0xf0]  ;;  %v6023_v54 = vor.u32 %v6326_v13, %v6022_v53  ;;  %v6320_v5 = vld [vmem:[#allocation12 + $0x208] sm:$0xf0]  ;;  %v5986_v7 = vld [vmem:[#allocation12 + $0x1e8] sm:$0xf] }
 0x4b5   : > { %4572 = vmatpush.bf16.msra.mxu1 %v5743_v55  ;;  %v5839_v60 = vor.u32 %v6279_v28, %v5836_v32  ;;  %v6287_v55 = vld [vmem:[#allocation12 + $0x100] sm:$0xf0]  ;;  %v6314_v57 = vld [vmem:[#allocation12 + $0x1d8] sm:$0xf0]  ;;  %v5962_v27 = vld [vmem:[#allocation12 + $0x1b8] sm:$0xf] }
 0x4b6   : > { %4595 = vmatpush.bf16.msra.mxu3 %v5995_v26  ;;  %v5863_v26 = vor.u32 %v6285_v59, %v5860_v29  ;;  %v5867_v25 = vor.u32 %v6287_v55, %v5866_v38  ;;  %v5998_v29 = vld [vmem:[#allocation12 + $0x200] sm:$0xf]  ;;  %v6311_v46 = vld [vmem:[#allocation12 + $0x1c0] sm:$0xf0] }
 0x4b7   : > { %4580 = vmatpush.bf16.msrb.mxu2 %v5911_v50  ;;  %v5932_v50 = vld [vmem:[#allocation12 + $0x18c] sm:$0xf0]  ;;  %v5999_v24 = vor.u32 %v6320_v5, %v5998_v29  ;;  %v4131_v9 = vld [vmem:[%s7670_s5] sm:$0x7] }
 0x4b8   : > { %4607 = vmatpush.bf16.msrb.mxu0 %v5831_v34  ;;  %v5935_v12 = vor.u32 %v6303_v23, %v5932_v50  ;;  %v5770_v34 = vld [vmem:[#allocation12 + $0x38] sm:$0xf]  ;;  %v6308_v50 = vld [vmem:[#allocation12 + $0x1a8] sm:$0xf0] }
 0x4b9   : > { %4621 = vmatpush.bf16.msrb.mxu1 %v5927_v52  ;;  %v5771_v43 = vor.u32 %v6263_v62, %v5770_v34  ;;  %v5759_v52 = vor.u32 %v6260_v20, %v5758_v36 }
 0x4ba   : > { %4596 = vmatpush.bf16.msra.mxu3 %v5983_v3  ;;  %v5795_v3 = vor.u32 %v6269_v10, %v5794_v30  ;;  %v5938_v10 = vld [vmem:[#allocation12 + $0x188] sm:$0xf] }
 0x4bb   : > { %4581 = vmatpush.bf16.msrb.mxu2 %v5899_v19  ;;  %v5782_v19 = vld [vmem:[#allocation12 + $0x50] sm:$0xf] }
 0x4bc   : > { %4608 = vmatpush.bf16.msrb.mxu0 %v5819_v49  ;;  %v5783_v47 = vor.u32 %v6266_v17, %v5782_v19 }
 0x4bd   : > { %4622 = vmatpush.bf16.msrb.mxu1 %v5915_v22 }
 0x4be   : > { %4597 = vmatpush.bf16.msra.mxu3 %v5971_v45  ;;  %v5879_v45 = vor.u32 %v6290_v31, %v5878_v0  ;;  %v4134_v0 = vperm.slane %v4131_v9, 1 }
 0x4bf   : > { %4582 = vmatpush.bf16.msrb.mxu2 %v5887_v37  ;;  %v5854_v37 = vld [vmem:[#allocation12 + $0xe0] sm:$0xf] }
 0x4c0   : > { %4609 = vmatpush.bf16.msrb.mxu0 %v5807_v41  ;;  %v5855_v44 = vor.u32 %v6284_v63, %v5854_v37  ;;  %v5974_v41 = vld [vmem:[#allocation12 + $0x1d0] sm:$0xf]  ;;  %v4135_v37 = vperm.slane %v4131_v9, 2 }
 0x4c1   : > { %4623 = vmatpush.bf16.msrb.mxu1 %v5903_v6  ;;  %v5975_v23 = vor.u32 %v6314_v57, %v5974_v41  ;;  %v6305_v6 = vld [vmem:[#allocation12 + $0x190] sm:$0xf0] }
 0x4c2   : > { %4598 = vmatpush.bf16.msra.mxu3 %v5959_v48  ;;  %v5746_v48 = vld [vmem:[#allocation12 + $0x8] sm:$0xf]  ;;  %v5939_v8 = vor.u32 %v6305_v6, %v5938_v10 }
 0x4c3   : > { %4583 = vmatpush.bf16.msrb.mxu2 %v5875_v16  ;;  %v5747_v49 = vor.u32 %v6257_v51, %v5746_v48  ;;  %v6281_v16 = vld [vmem:[#allocation12 + $0xd0] sm:$0xf0] }
 0x4c4   : > { %4610 = vmatpush.bf16.msrb.mxu0 %v5795_v3  ;;  %v5843_v1 = vor.u32 %v6281_v16, %v5842_v40  ;;  %v4133_v3 = vperm.slane %v4131_v9, 0 }
 0x4c5   : > { %4624 = vmatpush.bf16.msrb.mxu1 %v5891_v18 }
 0x4c6   : > { %4599 = vmatpush.bf16.msra.mxu3 %v5947_v2 }
 0x4c7   : > { %4584 = vmatpush.bf16.msrb.mxu2 %v5863_v26  ;;  %v5950_v26 = vld [vmem:[#allocation12 + $0x1a0] sm:$0xf] }
 0x4c8   : > { %4611 = vmatpush.bf16.msrb.mxu0 %v5783_v47  ;;  %v5951_v30 = vor.u32 %v6308_v50, %v5950_v26 }
 0x4c9   : > { %4625 = vmatpush.bf16.msrb.mxu1 %v5879_v45 }
 0x4ca   : > { %4600 = vmatpush.bf16.msra.mxu3 %v5935_v12 }
 0x4cb   : > { %4585 = vmatpush.bf16.msrb.mxu2 %v5851_v14 }
 0x4cc   : > { %4612 = vmatpush.bf16.msrb.mxu0 %v5771_v43 }
 0x4cd   : > { %4626 = vmatpush.bf16.msrb.mxu1 %v5867_v25 }
 0x4cf   : > { %4586 = vmatpush.bf16.msrb.mxu2 %v5839_v60 }
 0x4d0   : > { %4613 = vmatpush.bf16.msrb.mxu0 %v5759_v52 }
 0x4d1   : > { %4627 = vmatpush.bf16.msrb.mxu1 %v5855_v44 }
 0x4d4   : > { %4614 = vmatpush.bf16.msrb.mxu0 %v5747_v49 }
 0x4d5   : > { %4628 = vmatpush.bf16.msrb.mxu1 %v5843_v1 }
 0x4f8   : > { %v4014_v21 = vpop.permute.xlu2 %4013 }
 0x4f9   : > { %v4029_v33 = vsel %vm3213_vm2, %v4009_v42, %v4014_v21  ;;  %v6323_v42 = vld [vmem:[#allocation12 + $0x220] sm:$0xf0] }
 0x4fa   : > { %4545 = vmatmul.bf16.vlgmr.msrb.gmra.mxu3 %v4029_v33  ;;  %v6011_v59 = vor.u32 %v6323_v42, %v6010_v35 }
 0x50b   : > { %v4022_v22 = vpop.permute.xlu1 %4021 }
 0x50c   : > { %v4033_v56 = vsel %vm3213_vm2, %v4017_v58, %v4022_v22  ;;  %v6317_v58 = vld [vmem:[#allocation12 + $0x1f0] sm:$0xf0] }
 0x50d   : > { %4559 = vmatmul.bf16.vlgmr.msra.gmra.mxu0 %v4033_v56  ;;  %v4006_v4 = vpop.permute.xlu0 %4005  ;;  %4601 = vmatmul.bf16.vlgmr.msra.gmra.mxu3 %v4033_v56  ;;  %v5987_v2 = vor.u32 %v6317_v58, %v5986_v7 }
 0x50e   : > { %v4025_v15 = vsel %vm3213_vm2, %v4001_v39, %v4006_v4  ;;  %v5963_v39 = vor.u32 %v6311_v46, %v5962_v27 }
 0x50f   : > { %4531 = vmatmul.bf16.vlgmr.msra.gmra.mxu2 %v4025_v15  ;;  %4573 = vmatmul.bf16.vlgmr.msra.gmra.mxu1 %v4025_v15 }
 0x510   : > { %4635 = vmatpush.bf16.msra.mxu2 %v6023_v54 }
 0x514   : > { %4636 = vmatpush.bf16.msra.mxu2 %v6011_v59 }
 0x518   : > { %4637 = vmatpush.bf16.msra.mxu2 %v5999_v24 }
 0x51c   : > { %4638 = vmatpush.bf16.msra.mxu2 %v5987_v2 }
 0x51d   : > { %4615 = vmatmul.bf16.vlgmr.msrb.gmra.mxu0 %v4025_v15 }
 0x51f   : > { %4587 = vmatmul.bf16.vlgmr.msrb.gmra.mxu2 %v4029_v33  ;;  %4629 = vmatmul.bf16.vlgmr.msrb.gmra.mxu1 %v4029_v33 }
 0x520   : > { %4639 = vmatpush.bf16.msra.mxu2 %v5975_v23 }
 0x524   : > { %4640 = vmatpush.bf16.msra.mxu2 %v5963_v39 }
 0x528   : > { %4641 = vmatpush.bf16.msra.mxu2 %v5951_v30 }
 0x52c   : > { %4642 = vmatpush.bf16.msra.mxu2 %v5939_v8 }
 0x52f   : > { %4643 = vmatmul.bf16.vlgmr.msra.gmra.mxu2 %v4033_v56 }
 0x57d   : > { %v4546_v12 = vpop.f32.mrf.mxu3 }
 0x585   : > { %v4548_v47 = vpop.f32.mrf.mxu3 }
 0x58a   : > { %v4560_v61 = vpop.f32.mrf.mxu0 }
 0x58c   : > { %v4574_v17 = vpop.f32.mrf.mxu1 }
 0x58d   : > { %v4575_v34 = vadd.f32 %v4574_v17, %v4134_v0 }
 0x590   : > { %v4602_v62 = vpop.f32.mrf.mxu3 }
 0x592   : > { %v4532_v14 = vpop.f32.mrf.mxu2  ;;  %v4562_v31 = vpop.f32.mrf.mxu0 }
 0x593   : > { %v4533_v11 = vadd.f32 %v4532_v14, %v4133_v3 }
 0x594   : > { %v4576_v38 = vpop.f32.mrf.mxu1 }
 0x595   : > { %v4547_v18 = vadd.f32 %v4546_v12, %v4533_v11  ;;  %v4577_v20 = vadd.f32 %v4576_v38, %v4134_v0 }
 0x597   : > { %v4561_v19 = vadd.f32 %v4560_v61, %v4547_v18 }
 0x598   : > { %v4604_v44 = vpop.f32.mrf.mxu3 }
 0x599   : > { %4649 = vst [vmem:[%s7618_s7] sm:$0xff] %v4561_v19 }
 0x59a   : > { %v4534_v28 = vpop.f32.mrf.mxu2  ;;  %v4616_v36 = vpop.f32.mrf.mxu0 }
 0x59b   : > { %v4535_v32 = vadd.f32 %v4534_v28, %v4133_v3  ;;  %v4617_v48 = vadd.f32 %v4616_v36, %v4135_v37 }
 0x59c   : > { %v4630_v21 = vpop.f32.mrf.mxu1 }
 0x59d   : > { %v4549_v60 = vadd.f32 %v4548_v47, %v4535_v32  ;;  %v4631_v40 = vadd.f32 %v4630_v21, %v4617_v48 }
 0x59f   : > { %v4563_v45 = vadd.f32 %v4562_v31, %v4549_v60 }
 0x5a1   : > { %4652 = vst [vmem:[%s7618_s7 + $0x18] sm:$0xff] %v4563_v45 }
 0x5a2   : > { %v4588_v43 = vpop.f32.mrf.mxu2  ;;  %v4618_v33 = vpop.f32.mrf.mxu0 }
 0x5a3   : > { %v4589_v55 = vadd.f32 %v4588_v43, %v4575_v34  ;;  %v4619_v1 = vadd.f32 %v4618_v33, %v4135_v37 }
 0x5a4   : > { %v4632_v53 = vpop.f32.mrf.mxu1 }
 0x5a5   : > { %v4603_v25 = vadd.f32 %v4602_v62, %v4589_v55  ;;  %v4633_v13 = vadd.f32 %v4632_v53, %v4619_v1 }
 0x5a7   : > { %4650 = vst [vmem:[%s7618_s7 + $0x8] sm:$0xff] %v4603_v25 }
 0x5aa   : > { %v4590_v52 = vpop.f32.mrf.mxu2 }
 0x5ab   : > { %v4591_v63 = vadd.f32 %v4590_v52, %v4577_v20 }
 0x5ad   : > { %v4605_v51 = vadd.f32 %v4604_v44, %v4591_v63 }
 0x5af   : > { %4653 = vst [vmem:[%s7618_s7 + $0x20] sm:$0xff] %v4605_v51 }
 0x5b2   : > { %v4644_v49 = vpop.f32.mrf.mxu2 }
 0x5b3   : > { %v4645_v16 = vadd.f32 %v4644_v49, %v4631_v40 }
 0x5b5   : > { %4651 = vst [vmem:[%s7618_s7 + $0x10] sm:$0xff] %v4645_v16 }
 0x5ba   : > { %v4646_v22 = vpop.f32.mrf.mxu2 }
 0x5bb   : > { %v4647_v56 = vadd.f32 %v4646_v22, %v4633_v13 }
 0x5bd   : > { %4654 = vst [vmem:[%s7618_s7 + $0x28] sm:$0xff] %v4647_v56 }
 0x5be   : > { %6669 = shalt.err (!%p6666_p0)
}
 0x5bf   : > { %s6746_s28 = smov 384   ;;  %s6747_s3 = smov 24  }
 0x5c0   : > { %6349 = dma.vmem_to_hbm [thread:$0]  (%p6880_p7), %s4672_s11, 768, %s4674_s14, %s4656_s24, %s6746_s28, %s6746_s28, %s6747_s3  }
 0x5c1 PF: > { %s4688_s29 = sand.u32 1, %s6712_s21   ;;  %p6369_p3 = pnand %p4805_p11, %p6832_p6 }
 0x5c2   : > { %s4689_s7 = scalar_lea.sflag [#allocation6], %s4688_s29 }
 0x5c3   : > { %p6370_p5 = pneg %p6369_p3 }
 0x5c5   : > { %6707 = dma.done.wait (%p6370_p5), %s4689_s7, 768  }
 0x5c6   : > { %6709 = vsyncadd (%p6370_p5), %s4689_s7, 4294966528  ;;  %s24_s26 = sadd.s32 1, %s6732_s26   ;;  %s7685_s21 = smov %s6716_s22 }
 0x5c7   : > { %p21_p9 = scmp.ge.s32.totalorder %s24_s26, 4   ;;  %s7686_s22 = smov %s6720_s23 }
 0x5c8   : > { %s7687_s23 = smov %s6888_s20  ;;  %s7688_s24 = smov %s6728_s25 }
 0x5c9   : > { %s7689_s25 = smov %s7691_s18  ;;  %23 = sbr.rel (!%p21_p9) target bundleno = 12 (0xc), region = 110 }
 0x5ce   :  { %4695 = vsyncpa [#allocation5], 1 }
 0x5cf   :  { %4697 = vsyncpa [#allocation5 + $0x1], 1 }
 0x5d0   :  { %4698 = vsyncpa [#allocation8], 1 }
 0x5d1   :  { %4699 = vsyncpa [#allocation11], 1 }
 0x5d2   :  { %4700 = vsyncpa [#allocation6], 1 }
 0x5d3   :  { %4702 = vsyncpa [#allocation6 + $0x1], 1 }

</bundles_post_ra>
